<compile_context>
chip_gen: v6e
topology: v6e:2x2x1
jax: 0.10.0
libtpu: 0.0.40
codegen_flags: <defaults>
</compile_context>

<pallas_src>
import functools

import numpy as np

import jax
import jax.numpy as jnp
from jax.experimental import pallas as pl
from jax.experimental.pallas import tpu as pltpu


# -----------------------------------------------------------------------------
# Pallas kernel: full bidirectional multi-layer LSTM + Linear head, one launch.
# -----------------------------------------------------------------------------
def _rnn_kernel(x_ref, *refs, seq_len, hidden, num_layers):
    """Fused bidirectional multi-layer LSTM + Linear head.

    x_ref : (T*B, F_in) bf16, time-major (row index = t*B + b)
    refs  : per layer (wih_all (F_in,8H) bf16, whh_all (2H,8H) bf16,
            b_all (1,8H) f32) with interleaved gate columns
            [i_f|i_b|f_f|f_b|g_f|g_b|o_f|o_b];
            then out_w (H, 128) bf16, out_b (1, 128) f32;
            then logits_ref (B, 128) f32 output;
            then scratch: (T*B, 2H) inter-layer slab, (T*B, 8H) x-gate slab.
    """
    T, H = seq_len, hidden
    n_w = 3 * num_layers
    layer_refs = refs[:n_w]
    ow_ref, ob_ref = refs[n_w], refs[n_w + 1]
    logits_ref = refs[n_w + 2]
    y_scr = refs[n_w + 3]            # (T*B, 2H) f32 inter-layer activations
    gx_scr = refs[n_w + 4]           # (T*B, 8H) f32 fused x-gate slab

    B = x_ref.shape[0] // T
    G = 8 * H                        # fused gate width (both directions)

    # Static column mask: True on forward-direction gate columns.
    col = jax.lax.broadcasted_iota(jnp.int32, (B, G), 1)
    if (H & (H - 1)) == 0:           # power-of-two H: cheap bit test
        fwd_cols = (col & H) == 0
    else:
        fwd_cols = ((col // H) % 2) == 0

    x = x_ref[...]                                   # (T*B, F_in) bf16
    h = None
    for layer in range(num_layers):
        wih_ref, whh_ref, b_ref = layer_refs[3 * layer:3 * layer + 3]

        # Hoisted fused input projection: ONE MXU matmul for both directions.
        gx_scr[...] = (
            jnp.dot(x, wih_ref[...], preferred_element_type=jnp.float32)
            + b_ref[...])

        h = jnp.zeros((B, 2 * H), jnp.float32)       # [h_fwd || h_bwd]
        c = jnp.zeros((B, 2 * H), jnp.float32)       # [c_fwd || c_bwd]

        last_layer = layer == num_layers - 1
        for t in range(T):                           # fully unrolled (static)
            tb = T - 1 - t                           # backward time index
            # fwd gate columns take x-gates of time t, bwd columns of time tb.
            gx = jnp.where(fwd_cols,
                           gx_scr[t * B:(t + 1) * B, :],
                           gx_scr[tb * B:(tb + 1) * B, :])
            gates = gx + jnp.dot(h.astype(jnp.bfloat16), whh_ref[...],
                                 preferred_element_type=jnp.float32)
            # PyTorch nn.LSTM gate order i|f|g|o; each slice is (B, 2H) = 128
            # lanes wide (lane-dense) and covers both directions at once.
            i_g = jax.nn.sigmoid(gates[:, 0 * H:2 * H])
            f_g = jax.nn.sigmoid(gates[:, 2 * H:4 * H])
            g_g = jnp.tanh(gates[:, 4 * H:6 * H])
            o_g = jax.nn.sigmoid(gates[:, 6 * H:8 * H])
            c = f_g * c + i_g * g_g
            h = o_g * jnp.tanh(c)
            if not last_layer:
                # Inter-layer slab, row block = input time index.  These two
                # (B,H) stores are lane-masked; hidden under MXU/EUP latency
                # at this size (flagged low-priority in the review).
                y_scr[t * B:(t + 1) * B, 0:H] = h[:, 0:H]
                y_scr[tb * B:(tb + 1) * B, H:2 * H] = h[:, H:2 * H]

        if not last_layer:
            x = y_scr[...].astype(jnp.bfloat16)      # (T*B, 2H) next-layer in
            # inter-layer dropout p=0.2 is identity in eval mode

    # TODO(synk): PyTorch module is shape-inconsistent (Linear(64,10) on 128-d
    # bidirectional features); we apply it to the forward half of the last
    # timestep, which equals the last layer's final forward hidden state.
    logits_ref[...] = (
        jnp.dot(h[:, 0:H].astype(jnp.bfloat16), ow_ref[...],
                preferred_element_type=jnp.float32)
        + ob_ref[...])


# -----------------------------------------------------------------------------
# Weight packing: build the fused, interleaved, bf16 kernel layout.
# -----------------------------------------------------------------------------
def _interleave_gate_cols(wf, wb, H):
    """Per-direction [i|f|g|o] (.,4H) -> fused [i_f|i_b|f_f|f_b|...] (.,8H)."""
    parts = []
    for g in range(4):
        parts.append(wf[:, g * H:(g + 1) * H])
        parts.append(wb[:, g * H:(g + 1) * H])
    return jnp.concatenate(parts, axis=1)


def _build_whh_fused(whh_f, whh_b, H):
    """Per-direction (H,4H) recurrent weights -> block-structured (2H,8H).

    Rows 0:H act on h_fwd (hit only fwd gate columns), rows H:2H act on h_bwd
    (hit only bwd gate columns); the off-blocks are zero.
    """
    z = jnp.zeros((H, H), whh_f.dtype)
    top = jnp.concatenate(
        [p for g in range(4) for p in (whh_f[:, g * H:(g + 1) * H], z)], axis=1)
    bot = jnp.concatenate(
        [p for g in range(4) for p in (z, whh_b[:, g * H:(g + 1) * H])], axis=1)
    return jnp.concatenate([top, bot], axis=0)


def pack_params(params):
    H = params["lstm"][0]["fwd"][1].shape[0]
    layers = []
    for lp in params["lstm"]:
        wih_f, whh_f, b_f = lp["fwd"]
        wih_b, whh_b, b_b = lp["bwd"]
        wih_all = _interleave_gate_cols(wih_f, wih_b, H).astype(jnp.bfloat16)
        whh_all = _build_whh_fused(whh_f, whh_b, H).astype(jnp.bfloat16)
        b_all = _interleave_gate_cols(b_f, b_b, H)               # (1,8H) f32
        layers.append((wih_all, whh_all, b_all))

    out_dim = params["out_b"].shape[-1]
    out_pad = ((out_dim + 127) // 128) * 128                     # lane-dense head
    ow = jnp.zeros((H, out_pad), jnp.float32).at[:, :out_dim].set(params["out_w"])
    ob = jnp.zeros((1, out_pad), jnp.float32).at[:, :out_dim].set(params["out_b"])
    return {"hidden": H, "out_dim": out_dim, "layers": layers,
            "out_w": ow.astype(jnp.bfloat16), "out_b": ob}


# -----------------------------------------------------------------------------
# Wrapper
# -----------------------------------------------------------------------------
def rnn_forward(x_bti, kparams):
    """Equivalent of RNN.forward (eval mode). x_bti: (B, T, F) batch-first."""
    B, T, F_in = x_bti.shape
    H = kparams["hidden"]
    num_layers = len(kparams["layers"])
    out_pad = kparams["out_w"].shape[-1]

    # Pad batch to a multiple of 8 (f32 sublane count) so in-kernel vregs and
    # stores are not sublane-masked; padded rows are dropped at the end.
    B_pad = ((B + 7) // 8) * 8
    x = jnp.transpose(x_bti, (1, 0, 2))              # (T, B, F) time-major
    if B_pad != B:
        x = jnp.pad(x, ((0, 0), (0, B_pad - B), (0, 0)))
    x2d = x.reshape(T * B_pad, F_in).astype(jnp.bfloat16)

    flat_w = [w for layer in kparams["layers"] for w in layer]

    kernel = functools.partial(
        _rnn_kernel, seq_len=T, hidden=H, num_layers=num_layers)

    logits = pl.pallas_call(
        kernel,
        out_shape=jax.ShapeDtypeStruct((B_pad, out_pad), jnp.float32),
        scratch_shapes=[
            pltpu.VMEM((T * B_pad, 2 * H), jnp.float32),   # inter-layer slab
            pltpu.VMEM((T * B_pad, 8 * H), jnp.float32),   # fused x-gate slab
        ],
    )(x2d, *flat_w, kparams["out_w"], kparams["out_b"])

    return logits[:B, :kparams["out_dim"]]


# -----------------------------------------------------------------------------
# Deterministic parameter init (matches PyTorch shapes; U(-1/sqrt(H), 1/sqrt(H)))
# -----------------------------------------------------------------------------
def init_params(key, input_size=28, hidden=64, num_layers=2, out_dim=10):
    k = 1.0 / jnp.sqrt(hidden)

    def uni(key, shape):
        return jax.random.uniform(key, shape, jnp.float32, -k, k)

    params = {"lstm": []}
    keys = jax.random.split(key, num_layers * 2 * 4 + 2)
    ki = 0
    for layer in range(num_layers):
        f_in = input_size if layer == 0 else 2 * hidden
        layer_p = {}
        for direction in ("fwd", "bwd"):
            wih = uni(keys[ki], (f_in, 4 * hidden)); ki += 1      # W_ih^T
            whh = uni(keys[ki], (hidden, 4 * hidden)); ki += 1    # W_hh^T
            b_ih = uni(keys[ki], (1, 4 * hidden)); ki += 1
            b_hh = uni(keys[ki], (1, 4 * hidden)); ki += 1
            layer_p[direction] = (wih, whh, b_ih + b_hh)
        params["lstm"].append(layer_p)

    params["out_w"] = uni(keys[ki], (hidden, out_dim)); ki += 1   # Linear W^T
    params["out_b"] = uni(keys[ki], (1, out_dim)); ki += 1
    return params


# -----------------------------------------------------------------------------
if __name__ == "__main__":
    B, T, INPUT_SIZE = 2, 8, 28

    key = jax.random.PRNGKey(0)
    k_x, k_p = jax.random.split(key)
    x = jax.random.normal(k_x, (B, T, INPUT_SIZE), dtype=jnp.float32)
    params = init_params(k_p, input_size=INPUT_SIZE)
    packed = pack_params(params)

    fwd = jax.jit(functools.partial(rnn_forward, kparams=packed))
    out = fwd(x)
    jax.block_until_ready(out)

    assert out.shape == (B, 10) and out.dtype == jnp.float32
    assert bool(jnp.all(jnp.isfinite(out)))
    print("KERNEL_OK")
</pallas_src>

<mosaic_0001>
module attributes {stable_mosaic.version = 11 : i64} {
  func.func @_rnn_kernel(%arg0: memref<64x28xbf16, #tpu.memory_space<vmem>>, %arg1: memref<28x512xbf16, #tpu.memory_space<vmem>>, %arg2: memref<128x512xbf16, #tpu.memory_space<vmem>>, %arg3: memref<1x512xf32, #tpu.memory_space<vmem>>, %arg4: memref<128x512xbf16, #tpu.memory_space<vmem>>, %arg5: memref<128x512xbf16, #tpu.memory_space<vmem>>, %arg6: memref<1x512xf32, #tpu.memory_space<vmem>>, %arg7: memref<64x128xbf16, #tpu.memory_space<vmem>>, %arg8: memref<1x128xf32, #tpu.memory_space<vmem>>, %arg9: memref<8x128xf32, #tpu.memory_space<vmem>>, %arg10: memref<64x128xf32, #tpu.memory_space<vmem>>, %arg11: memref<64x512xf32, #tpu.memory_space<vmem>>) attributes {dimension_semantics = [], scalar_prefetch = 0 : i64, scratch_operands = 2 : i64, tpu.core_type = #tpu.core_type<tc>} {
    %0 = tpu.iota {dimensions = array<i32: 1>} : vector<8x512xi32>
    %c64_i32 = arith.constant 64 : i32
    %1 = vector.broadcast %c64_i32 : i32 to vector<8x512xi32>
    %2 = arith.andi %0, %1 : vector<8x512xi32>
    %c0_i32 = arith.constant 0 : i32
    %3 = vector.broadcast %c0_i32 : i32 to vector<8x512xi32>
    %4 = arith.cmpi eq, %2, %3 : vector<8x512xi32>
    %c0 = arith.constant 0 : index
    %c0_0 = arith.constant 0 : index
    %5 = vector.load %arg0[%c0, %c0_0] : memref<64x28xbf16, #tpu.memory_space<vmem>>, vector<64x28xbf16>
    %c0_1 = arith.constant 0 : index
    %c0_2 = arith.constant 0 : index
    %6 = vector.load %arg1[%c0_1, %c0_2] : memref<28x512xbf16, #tpu.memory_space<vmem>>, vector<28x512xbf16>
    %cst = arith.constant dense<0.000000e+00> : vector<64x512xf32>
    %7 = tpu.matmul %5, %6, %cst {dimension_numbers = #tpu.dot_dimension_numbers<[1], [0], [0], [1], [0, 0, 1, 1], [], []>} : vector<64x28xbf16>, vector<28x512xbf16>, vector<64x512xf32> -> vector<64x512xf32>
    %c0_3 = arith.constant 0 : index
    %c0_4 = arith.constant 0 : index
    %8 = vector.load %arg3[%c0_3, %c0_4] : memref<1x512xf32, #tpu.memory_space<vmem>>, vector<1x512xf32>
    %9 = vector.broadcast %8 : vector<1x512xf32> to vector<64x512xf32>
    %10 = arith.addf %7, %9 : vector<64x512xf32>
    %c0_5 = arith.constant 0 : index
    %c0_6 = arith.constant 0 : index
    %11 = vector.load %arg11[%c0_5, %c0_6] : memref<64x512xf32, #tpu.memory_space<vmem>>, vector<64x512xf32>
    tpu.vector_store %arg11[%c0_5, %c0_6], %10 {strides = array<i32>} : memref<64x512xf32, #tpu.memory_space<vmem>>, vector<64x512xf32>,
    %cst_7 = arith.constant 0.000000e+00 : f32
    %12 = vector.broadcast %cst_7 : f32 to vector<8x128xf32>
    %cst_8 = arith.constant 0.000000e+00 : f32
    %13 = vector.broadcast %cst_8 : f32 to vector<8x128xf32>
    %c0_9 = arith.constant 0 : index
    %c0_10 = arith.constant 0 : index
    %14 = vector.load %arg11[%c0_9, %c0_10] : memref<64x512xf32, #tpu.memory_space<vmem>>, vector<8x512xf32>
    %c56 = arith.constant 56 : index
    %c0_11 = arith.constant 0 : index
    %15 = vector.load %arg11[%c56, %c0_11] : memref<64x512xf32, #tpu.memory_space<vmem>>, vector<8x512xf32>
    %16 = arith.select %4, %14, %15 : vector<8x512xi1>, vector<8x512xf32>
    %17 = arith.truncf %12 : vector<8x128xf32> to vector<8x128xbf16>
    %c0_12 = arith.constant 0 : index
    %c0_13 = arith.constant 0 : index
    %18 = vector.load %arg2[%c0_12, %c0_13] : memref<128x512xbf16, #tpu.memory_space<vmem>>, vector<128x512xbf16>
    %cst_14 = arith.constant dense<0.000000e+00> : vector<8x512xf32>
    %19 = tpu.matmul %17, %18, %cst_14 {dimension_numbers = #tpu.dot_dimension_numbers<[1], [0], [0], [1], [0, 0, 1, 1], [], []>} : vector<8x128xbf16>, vector<128x512xbf16>, vector<8x512xf32> -> vector<8x512xf32>
    %20 = arith.addf %16, %19 : vector<8x512xf32>
    %21 = vector.extract_strided_slice %20 {offsets = [0, 0], sizes = [8, 128], strides = [1, 1]} : vector<8x512xf32> to vector<8x128xf32>
    %22 = arith.negf %21 : vector<8x128xf32>
    %23 = math.exp %22 : vector<8x128xf32>
    %cst_15 = arith.constant 1.000000e+00 : f32
    %24 = vector.broadcast %cst_15 : f32 to vector<8x128xf32>
    %25 = arith.addf %24, %23 : vector<8x128xf32>
    %26 = arith.divf %24, %25 : vector<8x128xf32>
    %27 = vector.extract_strided_slice %20 {offsets = [0, 128], sizes = [8, 128], strides = [1, 1]} : vector<8x512xf32> to vector<8x128xf32>
    %28 = arith.negf %27 : vector<8x128xf32>
    %29 = math.exp %28 : vector<8x128xf32>
    %cst_16 = arith.constant 1.000000e+00 : f32
    %30 = vector.broadcast %cst_16 : f32 to vector<8x128xf32>
    %31 = arith.addf %30, %29 : vector<8x128xf32>
    %32 = arith.divf %30, %31 : vector<8x128xf32>
    %33 = vector.extract_strided_slice %20 {offsets = [0, 256], sizes = [8, 128], strides = [1, 1]} : vector<8x512xf32> to vector<8x128xf32>
    %34 = math.tanh %33 : vector<8x128xf32>
    %35 = vector.extract_strided_slice %20 {offsets = [0, 384], sizes = [8, 128], strides = [1, 1]} : vector<8x512xf32> to vector<8x128xf32>
    %36 = arith.negf %35 : vector<8x128xf32>
    %37 = math.exp %36 : vector<8x128xf32>
    %cst_17 = arith.constant 1.000000e+00 : f32
    %38 = vector.broadcast %cst_17 : f32 to vector<8x128xf32>
    %39 = arith.addf %38, %37 : vector<8x128xf32>
    %40 = arith.divf %38, %39 : vector<8x128xf32>
    %41 = arith.mulf %32, %13 : vector<8x128xf32>
    %42 = arith.mulf %26, %34 : vector<8x128xf32>
    %43 = arith.addf %41, %42 : vector<8x128xf32>
    %44 = math.tanh %43 : vector<8x128xf32>
    %45 = arith.mulf %40, %44 : vector<8x128xf32>
    %46 = vector.extract_strided_slice %45 {offsets = [0, 0], sizes = [8, 64], strides = [1, 1]} : vector<8x128xf32> to vector<8x64xf32>
    %c0_18 = arith.constant 0 : index
    %c0_19 = arith.constant 0 : index
    %47 = vector.load %arg10[%c0_18, %c0_19] : memref<64x128xf32, #tpu.memory_space<vmem>>, vector<8x64xf32>
    tpu.vector_store %arg10[%c0_18, %c0_19], %46 {strides = array<i32>} : memref<64x128xf32, #tpu.memory_space<vmem>>, vector<8x64xf32>,
    %48 = vector.extract_strided_slice %45 {offsets = [0, 64], sizes = [8, 64], strides = [1, 1]} : vector<8x128xf32> to vector<8x64xf32>
    %c56_20 = arith.constant 56 : index
    %c64 = arith.constant 64 : index
    %49 = vector.load %arg10[%c56_20, %c64] : memref<64x128xf32, #tpu.memory_space<vmem>>, vector<8x64xf32>
    tpu.vector_store %arg10[%c56_20, %c64], %48 {strides = array<i32>} : memref<64x128xf32, #tpu.memory_space<vmem>>, vector<8x64xf32>,
    %c8 = arith.constant 8 : index
    %c0_21 = arith.constant 0 : index
    %50 = vector.load %arg11[%c8, %c0_21] : memref<64x512xf32, #tpu.memory_space<vmem>>, vector<8x512xf32>
    %c48 = arith.constant 48 : index
    %c0_22 = arith.constant 0 : index
    %51 = vector.load %arg11[%c48, %c0_22] : memref<64x512xf32, #tpu.memory_space<vmem>>, vector<8x512xf32>
    %52 = arith.select %4, %50, %51 : vector<8x512xi1>, vector<8x512xf32>
    %53 = arith.truncf %45 : vector<8x128xf32> to vector<8x128xbf16>
    %c0_23 = arith.constant 0 : index
    %c0_24 = arith.constant 0 : index
    %54 = vector.load %arg2[%c0_23, %c0_24] : memref<128x512xbf16, #tpu.memory_space<vmem>>, vector<128x512xbf16>
    %cst_25 = arith.constant dense<0.000000e+00> : vector<8x512xf32>
    %55 = tpu.matmul %53, %54, %cst_25 {dimension_numbers = #tpu.dot_dimension_numbers<[1], [0], [0], [1], [0, 0, 1, 1], [], []>} : vector<8x128xbf16>, vector<128x512xbf16>, vector<8x512xf32> -> vector<8x512xf32>
    %56 = arith.addf %52, %55 : vector<8x512xf32>
    %57 = vector.extract_strided_slice %56 {offsets = [0, 0], sizes = [8, 128], strides = [1, 1]} : vector<8x512xf32> to vector<8x128xf32>
    %58 = arith.negf %57 : vector<8x128xf32>
    %59 = math.exp %58 : vector<8x128xf32>
    %cst_26 = arith.constant 1.000000e+00 : f32
    %60 = vector.broadcast %cst_26 : f32 to vector<8x128xf32>
    %61 = arith.addf %60, %59 : vector<8x128xf32>
    %62 = arith.divf %60, %61 : vector<8x128xf32>
    %63 = vector.extract_strided_slice %56 {offsets = [0, 128], sizes = [8, 128], strides = [1, 1]} : vector<8x512xf32> to vector<8x128xf32>
    %64 = arith.negf %63 : vector<8x128xf32>
    %65 = math.exp %64 : vector<8x128xf32>
    %cst_27 = arith.constant 1.000000e+00 : f32
    %66 = vector.broadcast %cst_27 : f32 to vector<8x128xf32>
    %67 = arith.addf %66, %65 : vector<8x128xf32>
    %68 = arith.divf %66, %67 : vector<8x128xf32>
    %69 = vector.extract_strided_slice %56 {offsets = [0, 256], sizes = [8, 128], strides = [1, 1]} : vector<8x512xf32> to vector<8x128xf32>
    %70 = math.tanh %69 : vector<8x128xf32>
    %71 = vector.extract_strided_slice %56 {offsets = [0, 384], sizes = [8, 128], strides = [1, 1]} : vector<8x512xf32> to vector<8x128xf32>
    %72 = arith.negf %71 : vector<8x128xf32>
    %73 = math.exp %72 : vector<8x128xf32>
    %cst_28 = arith.constant 1.000000e+00 : f32
    %74 = vector.broadcast %cst_28 : f32 to vector<8x128xf32>
    %75 = arith.addf %74, %73 : vector<8x128xf32>
    %76 = arith.divf %74, %75 : vector<8x128xf32>
    %77 = arith.mulf %68, %43 : vector<8x128xf32>
    %78 = arith.mulf %62, %70 : vector<8x128xf32>
    %79 = arith.addf %77, %78 : vector<8x128xf32>
    %80 = math.tanh %79 : vector<8x128xf32>
    %81 = arith.mulf %76, %80 : vector<8x128xf32>
    %82 = vector.extract_strided_slice %81 {offsets = [0, 0], sizes = [8, 64], strides = [1, 1]} : vector<8x128xf32> to vector<8x64xf32>
    %c8_29 = arith.constant 8 : index
    %c0_30 = arith.constant 0 : index
    %83 = vector.load %arg10[%c8_29, %c0_30] : memref<64x128xf32, #tpu.memory_space<vmem>>, vector<8x64xf32>
    tpu.vector_store %arg10[%c8_29, %c0_30], %82 {strides = array<i32>} : memref<64x128xf32, #tpu.memory_space<vmem>>, vector<8x64xf32>,
    %84 = vector.extract_strided_slice %81 {offsets = [0, 64], sizes = [8, 64], strides = [1, 1]} : vector<8x128xf32> to vector<8x64xf32>
    %c48_31 = arith.constant 48 : index
    %c64_32 = arith.constant 64 : index
    %85 = vector.load %arg10[%c48_31, %c64_32] : memref<64x128xf32, #tpu.memory_space<vmem>>, vector<8x64xf32>
    tpu.vector_store %arg10[%c48_31, %c64_32], %84 {strides = array<i32>} : memref<64x128xf32, #tpu.memory_space<vmem>>, vector<8x64xf32>,
    %c16 = arith.constant 16 : index
    %c0_33 = arith.constant 0 : index
    %86 = vector.load %arg11[%c16, %c0_33] : memref<64x512xf32, #tpu.memory_space<vmem>>, vector<8x512xf32>
    %c40 = arith.constant 40 : index
    %c0_34 = arith.constant 0 : index
    %87 = vector.load %arg11[%c40, %c0_34] : memref<64x512xf32, #tpu.memory_space<vmem>>, vector<8x512xf32>
    %88 = arith.select %4, %86, %87 : vector<8x512xi1>, vector<8x512xf32>
    %89 = arith.truncf %81 : vector<8x128xf32> to vector<8x128xbf16>
    %c0_35 = arith.constant 0 : index
    %c0_36 = arith.constant 0 : index
    %90 = vector.load %arg2[%c0_35, %c0_36] : memref<128x512xbf16, #tpu.memory_space<vmem>>, vector<128x512xbf16>
    %cst_37 = arith.constant dense<0.000000e+00> : vector<8x512xf32>
    %91 = tpu.matmul %89, %90, %cst_37 {dimension_numbers = #tpu.dot_dimension_numbers<[1], [0], [0], [1], [0, 0, 1, 1], [], []>} : vector<8x128xbf16>, vector<128x512xbf16>, vector<8x512xf32> -> vector<8x512xf32>
    %92 = arith.addf %88, %91 : vector<8x512xf32>
    %93 = vector.extract_strided_slice %92 {offsets = [0, 0], sizes = [8, 128], strides = [1, 1]} : vector<8x512xf32> to vector<8x128xf32>
    %94 = arith.negf %93 : vector<8x128xf32>
    %95 = math.exp %94 : vector<8x128xf32>
    %cst_38 = arith.constant 1.000000e+00 : f32
    %96 = vector.broadcast %cst_38 : f32 to vector<8x128xf32>
    %97 = arith.addf %96, %95 : vector<8x128xf32>
    %98 = arith.divf %96, %97 : vector<8x128xf32>
    %99 = vector.extract_strided_slice %92 {offsets = [0, 128], sizes = [8, 128], strides = [1, 1]} : vector<8x512xf32> to vector<8x128xf32>
    %100 = arith.negf %99 : vector<8x128xf32>
    %101 = math.exp %100 : vector<8x128xf32>
    %cst_39 = arith.constant 1.000000e+00 : f32
    %102 = vector.broadcast %cst_39 : f32 to vector<8x128xf32>
    %103 = arith.addf %102, %101 : vector<8x128xf32>
    %104 = arith.divf %102, %103 : vector<8x128xf32>
    %105 = vector.extract_strided_slice %92 {offsets = [0, 256], sizes = [8, 128], strides = [1, 1]} : vector<8x512xf32> to vector<8x128xf32>
    %106 = math.tanh %105 : vector<8x128xf32>
    %107 = vector.extract_strided_slice %92 {offsets = [0, 384], sizes = [8, 128], strides = [1, 1]} : vector<8x512xf32> to vector<8x128xf32>
    %108 = arith.negf %107 : vector<8x128xf32>
    %109 = math.exp %108 : vector<8x128xf32>
    %cst_40 = arith.constant 1.000000e+00 : f32
    %110 = vector.broadcast %cst_40 : f32 to vector<8x128xf32>
    %111 = arith.addf %110, %109 : vector<8x128xf32>
    %112 = arith.divf %110, %111 : vector<8x128xf32>
    %113 = arith.mulf %104, %79 : vector<8x128xf32>
    %114 = arith.mulf %98, %106 : vector<8x128xf32>
    %115 = arith.addf %113, %114 : vector<8x128xf32>
    %116 = math.tanh %115 : vector<8x128xf32>
    %117 = arith.mulf %112, %116 : vector<8x128xf32>
    %118 = vector.extract_strided_slice %117 {offsets = [0, 0], sizes = [8, 64], strides = [1, 1]} : vector<8x128xf32> to vector<8x64xf32>
    %c16_41 = arith.constant 16 : index
    %c0_42 = arith.constant 0 : index
    %119 = vector.load %arg10[%c16_41, %c0_42] : memref<64x128xf32, #tpu.memory_space<vmem>>, vector<8x64xf32>
    tpu.vector_store %arg10[%c16_41, %c0_42], %118 {strides = array<i32>} : memref<64x128xf32, #tpu.memory_space<vmem>>, vector<8x64xf32>,
    %120 = vector.extract_strided_slice %117 {offsets = [0, 64], sizes = [8, 64], strides = [1, 1]} : vector<8x128xf32> to vector<8x64xf32>
    %c40_43 = arith.constant 40 : index
    %c64_44 = arith.constant 64 : index
    %121 = vector.load %arg10[%c40_43, %c64_44] : memref<64x128xf32, #tpu.memory_space<vmem>>, vector<8x64xf32>
    tpu.vector_store %arg10[%c40_43, %c64_44], %120 {strides = array<i32>} : memref<64x128xf32, #tpu.memory_space<vmem>>, vector<8x64xf32>,
    %c24 = arith.constant 24 : index
    %c0_45 = arith.constant 0 : index
    %122 = vector.load %arg11[%c24, %c0_45] : memref<64x512xf32, #tpu.memory_space<vmem>>, vector<8x512xf32>
    %c32 = arith.constant 32 : index
    %c0_46 = arith.constant 0 : index
    %123 = vector.load %arg11[%c32, %c0_46] : memref<64x512xf32, #tpu.memory_space<vmem>>, vector<8x512xf32>
    %124 = arith.select %4, %122, %123 : vector<8x512xi1>, vector<8x512xf32>
    %125 = arith.truncf %117 : vector<8x128xf32> to vector<8x128xbf16>
    %c0_47 = arith.constant 0 : index
    %c0_48 = arith.constant 0 : index
    %126 = vector.load %arg2[%c0_47, %c0_48] : memref<128x512xbf16, #tpu.memory_space<vmem>>, vector<128x512xbf16>
    %cst_49 = arith.constant dense<0.000000e+00> : vector<8x512xf32>
    %127 = tpu.matmul %125, %126, %cst_49 {dimension_numbers = #tpu.dot_dimension_numbers<[1], [0], [0], [1], [0, 0, 1, 1], [], []>} : vector<8x128xbf16>, vector<128x512xbf16>, vector<8x512xf32> -> vector<8x512xf32>
    %128 = arith.addf %124, %127 : vector<8x512xf32>
    %129 = vector.extract_strided_slice %128 {offsets = [0, 0], sizes = [8, 128], strides = [1, 1]} : vector<8x512xf32> to vector<8x128xf32>
    %130 = arith.negf %129 : vector<8x128xf32>
    %131 = math.exp %130 : vector<8x128xf32>
    %cst_50 = arith.constant 1.000000e+00 : f32
    %132 = vector.broadcast %cst_50 : f32 to vector<8x128xf32>
    %133 = arith.addf %132, %131 : vector<8x128xf32>
    %134 = arith.divf %132, %133 : vector<8x128xf32>
    %135 = vector.extract_strided_slice %128 {offsets = [0, 128], sizes = [8, 128], strides = [1, 1]} : vector<8x512xf32> to vector<8x128xf32>
    %136 = arith.negf %135 : vector<8x128xf32>
    %137 = math.exp %136 : vector<8x128xf32>
    %cst_51 = arith.constant 1.000000e+00 : f32
    %138 = vector.broadcast %cst_51 : f32 to vector<8x128xf32>
    %139 = arith.addf %138, %137 : vector<8x128xf32>
    %140 = arith.divf %138, %139 : vector<8x128xf32>
    %141 = vector.extract_strided_slice %128 {offsets = [0, 256], sizes = [8, 128], strides = [1, 1]} : vector<8x512xf32> to vector<8x128xf32>
    %142 = math.tanh %141 : vector<8x128xf32>
    %143 = vector.extract_strided_slice %128 {offsets = [0, 384], sizes = [8, 128], strides = [1, 1]} : vector<8x512xf32> to vector<8x128xf32>
    %144 = arith.negf %143 : vector<8x128xf32>
    %145 = math.exp %144 : vector<8x128xf32>
    %cst_52 = arith.constant 1.000000e+00 : f32
    %146 = vector.broadcast %cst_52 : f32 to vector<8x128xf32>
    %147 = arith.addf %146, %145 : vector<8x128xf32>
    %148 = arith.divf %146, %147 : vector<8x128xf32>
    %149 = arith.mulf %140, %115 : vector<8x128xf32>
    %150 = arith.mulf %134, %142 : vector<8x128xf32>
    %151 = arith.addf %149, %150 : vector<8x128xf32>
    %152 = math.tanh %151 : vector<8x128xf32>
    %153 = arith.mulf %148, %152 : vector<8x128xf32>
    %154 = vector.extract_strided_slice %153 {offsets = [0, 0], sizes = [8, 64], strides = [1, 1]} : vector<8x128xf32> to vector<8x64xf32>
    %c24_53 = arith.constant 24 : index
    %c0_54 = arith.constant 0 : index
    %155 = vector.load %arg10[%c24_53, %c0_54] : memref<64x128xf32, #tpu.memory_space<vmem>>, vector<8x64xf32>
    tpu.vector_store %arg10[%c24_53, %c0_54], %154 {strides = array<i32>} : memref<64x128xf32, #tpu.memory_space<vmem>>, vector<8x64xf32>,
    %156 = vector.extract_strided_slice %153 {offsets = [0, 64], sizes = [8, 64], strides = [1, 1]} : vector<8x128xf32> to vector<8x64xf32>
    %c32_55 = arith.constant 32 : index
    %c64_56 = arith.constant 64 : index
    %157 = vector.load %arg10[%c32_55, %c64_56] : memref<64x128xf32, #tpu.memory_space<vmem>>, vector<8x64xf32>
    tpu.vector_store %arg10[%c32_55, %c64_56], %156 {strides = array<i32>} : memref<64x128xf32, #tpu.memory_space<vmem>>, vector<8x64xf32>,
    %c32_57 = arith.constant 32 : index
    %c0_58 = arith.constant 0 : index
    %158 = vector.load %arg11[%c32_57, %c0_58] : memref<64x512xf32, #tpu.memory_space<vmem>>, vector<8x512xf32>
    %c24_59 = arith.constant 24 : index
    %c0_60 = arith.constant 0 : index
    %159 = vector.load %arg11[%c24_59, %c0_60] : memref<64x512xf32, #tpu.memory_space<vmem>>, vector<8x512xf32>
    %160 = arith.select %4, %158, %159 : vector<8x512xi1>, vector<8x512xf32>
    %161 = arith.truncf %153 : vector<8x128xf32> to vector<8x128xbf16>
    %c0_61 = arith.constant 0 : index
    %c0_62 = arith.constant 0 : index
    %162 = vector.load %arg2[%c0_61, %c0_62] : memref<128x512xbf16, #tpu.memory_space<vmem>>, vector<128x512xbf16>
    %cst_63 = arith.constant dense<0.000000e+00> : vector<8x512xf32>
    %163 = tpu.matmul %161, %162, %cst_63 {dimension_numbers = #tpu.dot_dimension_numbers<[1], [0], [0], [1], [0, 0, 1, 1], [], []>} : vector<8x128xbf16>, vector<128x512xbf16>, vector<8x512xf32> -> vector<8x512xf32>
    %164 = arith.addf %160, %163 : vector<8x512xf32>
    %165 = vector.extract_strided_slice %164 {offsets = [0, 0], sizes = [8, 128], strides = [1, 1]} : vector<8x512xf32> to vector<8x128xf32>
    %166 = arith.negf %165 : vector<8x128xf32>
    %167 = math.exp %166 : vector<8x128xf32>
    %cst_64 = arith.constant 1.000000e+00 : f32
    %168 = vector.broadcast %cst_64 : f32 to vector<8x128xf32>
    %169 = arith.addf %168, %167 : vector<8x128xf32>
    %170 = arith.divf %168, %169 : vector<8x128xf32>
    %171 = vector.extract_strided_slice %164 {offsets = [0, 128], sizes = [8, 128], strides = [1, 1]} : vector<8x512xf32> to vector<8x128xf32>
    %172 = arith.negf %171 : vector<8x128xf32>
    %173 = math.exp %172 : vector<8x128xf32>
    %cst_65 = arith.constant 1.000000e+00 : f32
    %174 = vector.broadcast %cst_65 : f32 to vector<8x128xf32>
    %175 = arith.addf %174, %173 : vector<8x128xf32>
    %176 = arith.divf %174, %175 : vector<8x128xf32>
    %177 = vector.extract_strided_slice %164 {offsets = [0, 256], sizes = [8, 128], strides = [1, 1]} : vector<8x512xf32> to vector<8x128xf32>
    %178 = math.tanh %177 : vector<8x128xf32>
    %179 = vector.extract_strided_slice %164 {offsets = [0, 384], sizes = [8, 128], strides = [1, 1]} : vector<8x512xf32> to vector<8x128xf32>
    %180 = arith.negf %179 : vector<8x128xf32>
    %181 = math.exp %180 : vector<8x128xf32>
    %cst_66 = arith.constant 1.000000e+00 : f32
    %182 = vector.broadcast %cst_66 : f32 to vector<8x128xf32>
    %183 = arith.addf %182, %181 : vector<8x128xf32>
    %184 = arith.divf %182, %183 : vector<8x128xf32>
    %185 = arith.mulf %176, %151 : vector<8x128xf32>
    %186 = arith.mulf %170, %178 : vector<8x128xf32>
    %187 = arith.addf %185, %186 : vector<8x128xf32>
    %188 = math.tanh %187 : vector<8x128xf32>
    %189 = arith.mulf %184, %188 : vector<8x128xf32>
    %190 = vector.extract_strided_slice %189 {offsets = [0, 0], sizes = [8, 64], strides = [1, 1]} : vector<8x128xf32> to vector<8x64xf32>
    %c32_67 = arith.constant 32 : index
    %c0_68 = arith.constant 0 : index
    %191 = vector.load %arg10[%c32_67, %c0_68] : memref<64x128xf32, #tpu.memory_space<vmem>>, vector<8x64xf32>
    tpu.vector_store %arg10[%c32_67, %c0_68], %190 {strides = array<i32>} : memref<64x128xf32, #tpu.memory_space<vmem>>, vector<8x64xf32>,
    %192 = vector.extract_strided_slice %189 {offsets = [0, 64], sizes = [8, 64], strides = [1, 1]} : vector<8x128xf32> to vector<8x64xf32>
    %c24_69 = arith.constant 24 : index
    %c64_70 = arith.constant 64 : index
    %193 = vector.load %arg10[%c24_69, %c64_70] : memref<64x128xf32, #tpu.memory_space<vmem>>, vector<8x64xf32>
    tpu.vector_store %arg10[%c24_69, %c64_70], %192 {strides = array<i32>} : memref<64x128xf32, #tpu.memory_space<vmem>>, vector<8x64xf32>,
    %c40_71 = arith.constant 40 : index
    %c0_72 = arith.constant 0 : index
    %194 = vector.load %arg11[%c40_71, %c0_72] : memref<64x512xf32, #tpu.memory_space<vmem>>, vector<8x512xf32>
    %c16_73 = arith.constant 16 : index
    %c0_74 = arith.constant 0 : index
    %195 = vector.load %arg11[%c16_73, %c0_74] : memref<64x512xf32, #tpu.memory_space<vmem>>, vector<8x512xf32>
    %196 = arith.select %4, %194, %195 : vector<8x512xi1>, vector<8x512xf32>
    %197 = arith.truncf %189 : vector<8x128xf32> to vector<8x128xbf16>
    %c0_75 = arith.constant 0 : index
    %c0_76 = arith.constant 0 : index
    %198 = vector.load %arg2[%c0_75, %c0_76] : memref<128x512xbf16, #tpu.memory_space<vmem>>, vector<128x512xbf16>
    %cst_77 = arith.constant dense<0.000000e+00> : vector<8x512xf32>
    %199 = tpu.matmul %197, %198, %cst_77 {dimension_numbers = #tpu.dot_dimension_numbers<[1], [0], [0], [1], [0, 0, 1, 1], [], []>} : vector<8x128xbf16>, vector<128x512xbf16>, vector<8x512xf32> -> vector<8x512xf32>
    %200 = arith.addf %196, %199 : vector<8x512xf32>
    %201 = vector.extract_strided_slice %200 {offsets = [0, 0], sizes = [8, 128], strides = [1, 1]} : vector<8x512xf32> to vector<8x128xf32>
    %202 = arith.negf %201 : vector<8x128xf32>
    %203 = math.exp %202 : vector<8x128xf32>
    %cst_78 = arith.constant 1.000000e+00 : f32
    %204 = vector.broadcast %cst_78 : f32 to vector<8x128xf32>
    %205 = arith.addf %204, %203 : vector<8x128xf32>
    %206 = arith.divf %204, %205 : vector<8x128xf32>
    %207 = vector.extract_strided_slice %200 {offsets = [0, 128], sizes = [8, 128], strides = [1, 1]} : vector<8x512xf32> to vector<8x128xf32>
    %208 = arith.negf %207 : vector<8x128xf32>
    %209 = math.exp %208 : vector<8x128xf32>
    %cst_79 = arith.constant 1.000000e+00 : f32
    %210 = vector.broadcast %cst_79 : f32 to vector<8x128xf32>
    %211 = arith.addf %210, %209 : vector<8x128xf32>
    %212 = arith.divf %210, %211 : vector<8x128xf32>
    %213 = vector.extract_strided_slice %200 {offsets = [0, 256], sizes = [8, 128], strides = [1, 1]} : vector<8x512xf32> to vector<8x128xf32>
    %214 = math.tanh %213 : vector<8x128xf32>
    %215 = vector.extract_strided_slice %200 {offsets = [0, 384], sizes = [8, 128], strides = [1, 1]} : vector<8x512xf32> to vector<8x128xf32>
    %216 = arith.negf %215 : vector<8x128xf32>
    %217 = math.exp %216 : vector<8x128xf32>
    %cst_80 = arith.constant 1.000000e+00 : f32
    %218 = vector.broadcast %cst_80 : f32 to vector<8x128xf32>
    %219 = arith.addf %218, %217 : vector<8x128xf32>
    %220 = arith.divf %218, %219 : vector<8x128xf32>
    %221 = arith.mulf %212, %187 : vector<8x128xf32>
    %222 = arith.mulf %206, %214 : vector<8x128xf32>
    %223 = arith.addf %221, %222 : vector<8x128xf32>
    %224 = math.tanh %223 : vector<8x128xf32>
    %225 = arith.mulf %220, %224 : vector<8x128xf32>
    %226 = vector.extract_strided_slice %225 {offsets = [0, 0], sizes = [8, 64], strides = [1, 1]} : vector<8x128xf32> to vector<8x64xf32>
    %c40_81 = arith.constant 40 : index
    %c0_82 = arith.constant 0 : index
    %227 = vector.load %arg10[%c40_81, %c0_82] : memref<64x128xf32, #tpu.memory_space<vmem>>, vector<8x64xf32>
    tpu.vector_store %arg10[%c40_81, %c0_82], %226 {strides = array<i32>} : memref<64x128xf32, #tpu.memory_space<vmem>>, vector<8x64xf32>,
    %228 = vector.extract_strided_slice %225 {offsets = [0, 64], sizes = [8, 64], strides = [1, 1]} : vector<8x128xf32> to vector<8x64xf32>
    %c16_83 = arith.constant 16 : index
    %c64_84 = arith.constant 64 : index
    %229 = vector.load %arg10[%c16_83, %c64_84] : memref<64x128xf32, #tpu.memory_space<vmem>>, vector<8x64xf32>
    tpu.vector_store %arg10[%c16_83, %c64_84], %228 {strides = array<i32>} : memref<64x128xf32, #tpu.memory_space<vmem>>, vector<8x64xf32>,
    %c48_85 = arith.constant 48 : index
    %c0_86 = arith.constant 0 : index
    %230 = vector.load %arg11[%c48_85, %c0_86] : memref<64x512xf32, #tpu.memory_space<vmem>>, vector<8x512xf32>
    %c8_87 = arith.constant 8 : index
    %c0_88 = arith.constant 0 : index
    %231 = vector.load %arg11[%c8_87, %c0_88] : memref<64x512xf32, #tpu.memory_space<vmem>>, vector<8x512xf32>
    %232 = arith.select %4, %230, %231 : vector<8x512xi1>, vector<8x512xf32>
    %233 = arith.truncf %225 : vector<8x128xf32> to vector<8x128xbf16>
    %c0_89 = arith.constant 0 : index
    %c0_90 = arith.constant 0 : index
    %234 = vector.load %arg2[%c0_89, %c0_90] : memref<128x512xbf16, #tpu.memory_space<vmem>>, vector<128x512xbf16>
    %cst_91 = arith.constant dense<0.000000e+00> : vector<8x512xf32>
    %235 = tpu.matmul %233, %234, %cst_91 {dimension_numbers = #tpu.dot_dimension_numbers<[1], [0], [0], [1], [0, 0, 1, 1], [], []>} : vector<8x128xbf16>, vector<128x512xbf16>, vector<8x512xf32> -> vector<8x512xf32>
    %236 = arith.addf %232, %235 : vector<8x512xf32>
    %237 = vector.extract_strided_slice %236 {offsets = [0, 0], sizes = [8, 128], strides = [1, 1]} : vector<8x512xf32> to vector<8x128xf32>
    %238 = arith.negf %237 : vector<8x128xf32>
    %239 = math.exp %238 : vector<8x128xf32>
    %cst_92 = arith.constant 1.000000e+00 : f32
    %240 = vector.broadcast %cst_92 : f32 to vector<8x128xf32>
    %241 = arith.addf %240, %239 : vector<8x128xf32>
    %242 = arith.divf %240, %241 : vector<8x128xf32>
    %243 = vector.extract_strided_slice %236 {offsets = [0, 128], sizes = [8, 128], strides = [1, 1]} : vector<8x512xf32> to vector<8x128xf32>
    %244 = arith.negf %243 : vector<8x128xf32>
    %245 = math.exp %244 : vector<8x128xf32>
    %cst_93 = arith.constant 1.000000e+00 : f32
    %246 = vector.broadcast %cst_93 : f32 to vector<8x128xf32>
    %247 = arith.addf %246, %245 : vector<8x128xf32>
    %248 = arith.divf %246, %247 : vector<8x128xf32>
    %249 = vector.extract_strided_slice %236 {offsets = [0, 256], sizes = [8, 128], strides = [1, 1]} : vector<8x512xf32> to vector<8x128xf32>
    %250 = math.tanh %249 : vector<8x128xf32>
    %251 = vector.extract_strided_slice %236 {offsets = [0, 384], sizes = [8, 128], strides = [1, 1]} : vector<8x512xf32> to vector<8x128xf32>
    %252 = arith.negf %251 : vector<8x128xf32>
    %253 = math.exp %252 : vector<8x128xf32>
    %cst_94 = arith.constant 1.000000e+00 : f32
    %254 = vector.broadcast %cst_94 : f32 to vector<8x128xf32>
    %255 = arith.addf %254, %253 : vector<8x128xf32>
    %256 = arith.divf %254, %255 : vector<8x128xf32>
    %257 = arith.mulf %248, %223 : vector<8x128xf32>
    %258 = arith.mulf %242, %250 : vector<8x128xf32>
    %259 = arith.addf %257, %258 : vector<8x128xf32>
    %260 = math.tanh %259 : vector<8x128xf32>
    %261 = arith.mulf %256, %260 : vector<8x128xf32>
    %262 = vector.extract_strided_slice %261 {offsets = [0, 0], sizes = [8, 64], strides = [1, 1]} : vector<8x128xf32> to vector<8x64xf32>
    %c48_95 = arith.constant 48 : index
    %c0_96 = arith.constant 0 : index
    %263 = vector.load %arg10[%c48_95, %c0_96] : memref<64x128xf32, #tpu.memory_space<vmem>>, vector<8x64xf32>
    tpu.vector_store %arg10[%c48_95, %c0_96], %262 {strides = array<i32>} : memref<64x128xf32, #tpu.memory_space<vmem>>, vector<8x64xf32>,
    %264 = vector.extract_strided_slice %261 {offsets = [0, 64], sizes = [8, 64], strides = [1, 1]} : vector<8x128xf32> to vector<8x64xf32>
    %c8_97 = arith.constant 8 : index
    %c64_98 = arith.constant 64 : index
    %265 = vector.load %arg10[%c8_97, %c64_98] : memref<64x128xf32, #tpu.memory_space<vmem>>, vector<8x64xf32>
    tpu.vector_store %arg10[%c8_97, %c64_98], %264 {strides = array<i32>} : memref<64x128xf32, #tpu.memory_space<vmem>>, vector<8x64xf32>,
    %c56_99 = arith.constant 56 : index
    %c0_100 = arith.constant 0 : index
    %266 = vector.load %arg11[%c56_99, %c0_100] : memref<64x512xf32, #tpu.memory_space<vmem>>, vector<8x512xf32>
    %c0_101 = arith.constant 0 : index
    %c0_102 = arith.constant 0 : index
    %267 = vector.load %arg11[%c0_101, %c0_102] : memref<64x512xf32, #tpu.memory_space<vmem>>, vector<8x512xf32>
    %268 = arith.select %4, %266, %267 : vector<8x512xi1>, vector<8x512xf32>
    %269 = arith.truncf %261 : vector<8x128xf32> to vector<8x128xbf16>
    %c0_103 = arith.constant 0 : index
    %c0_104 = arith.constant 0 : index
    %270 = vector.load %arg2[%c0_103, %c0_104] : memref<128x512xbf16, #tpu.memory_space<vmem>>, vector<128x512xbf16>
    %cst_105 = arith.constant dense<0.000000e+00> : vector<8x512xf32>
    %271 = tpu.matmul %269, %270, %cst_105 {dimension_numbers = #tpu.dot_dimension_numbers<[1], [0], [0], [1], [0, 0, 1, 1], [], []>} : vector<8x128xbf16>, vector<128x512xbf16>, vector<8x512xf32> -> vector<8x512xf32>
    %272 = arith.addf %268, %271 : vector<8x512xf32>
    %273 = vector.extract_strided_slice %272 {offsets = [0, 0], sizes = [8, 128], strides = [1, 1]} : vector<8x512xf32> to vector<8x128xf32>
    %274 = arith.negf %273 : vector<8x128xf32>
    %275 = math.exp %274 : vector<8x128xf32>
    %cst_106 = arith.constant 1.000000e+00 : f32
    %276 = vector.broadcast %cst_106 : f32 to vector<8x128xf32>
    %277 = arith.addf %276, %275 : vector<8x128xf32>
    %278 = arith.divf %276, %277 : vector<8x128xf32>
    %279 = vector.extract_strided_slice %272 {offsets = [0, 128], sizes = [8, 128], strides = [1, 1]} : vector<8x512xf32> to vector<8x128xf32>
    %280 = arith.negf %279 : vector<8x128xf32>
    %281 = math.exp %280 : vector<8x128xf32>
    %cst_107 = arith.constant 1.000000e+00 : f32
    %282 = vector.broadcast %cst_107 : f32 to vector<8x128xf32>
    %283 = arith.addf %282, %281 : vector<8x128xf32>
    %284 = arith.divf %282, %283 : vector<8x128xf32>
    %285 = vector.extract_strided_slice %272 {offsets = [0, 256], sizes = [8, 128], strides = [1, 1]} : vector<8x512xf32> to vector<8x128xf32>
    %286 = math.tanh %285 : vector<8x128xf32>
    %287 = vector.extract_strided_slice %272 {offsets = [0, 384], sizes = [8, 128], strides = [1, 1]} : vector<8x512xf32> to vector<8x128xf32>
    %288 = arith.negf %287 : vector<8x128xf32>
    %289 = math.exp %288 : vector<8x128xf32>
    %cst_108 = arith.constant 1.000000e+00 : f32
    %290 = vector.broadcast %cst_108 : f32 to vector<8x128xf32>
    %291 = arith.addf %290, %289 : vector<8x128xf32>
    %292 = arith.divf %290, %291 : vector<8x128xf32>
    %293 = arith.mulf %284, %259 : vector<8x128xf32>
    %294 = arith.mulf %278, %286 : vector<8x128xf32>
    %295 = arith.addf %293, %294 : vector<8x128xf32>
    %296 = math.tanh %295 : vector<8x128xf32>
    %297 = arith.mulf %292, %296 : vector<8x128xf32>
    %298 = vector.extract_strided_slice %297 {offsets = [0, 0], sizes = [8, 64], strides = [1, 1]} : vector<8x128xf32> to vector<8x64xf32>
    %c56_109 = arith.constant 56 : index
    %c0_110 = arith.constant 0 : index
    %299 = vector.load %arg10[%c56_109, %c0_110] : memref<64x128xf32, #tpu.memory_space<vmem>>, vector<8x64xf32>
    tpu.vector_store %arg10[%c56_109, %c0_110], %298 {strides = array<i32>} : memref<64x128xf32, #tpu.memory_space<vmem>>, vector<8x64xf32>,
    %300 = vector.extract_strided_slice %297 {offsets = [0, 64], sizes = [8, 64], strides = [1, 1]} : vector<8x128xf32> to vector<8x64xf32>
    %c0_111 = arith.constant 0 : index
    %c64_112 = arith.constant 64 : index
    %301 = vector.load %arg10[%c0_111, %c64_112] : memref<64x128xf32, #tpu.memory_space<vmem>>, vector<8x64xf32>
    tpu.vector_store %arg10[%c0_111, %c64_112], %300 {strides = array<i32>} : memref<64x128xf32, #tpu.memory_space<vmem>>, vector<8x64xf32>,
    %c0_113 = arith.constant 0 : index
    %c0_114 = arith.constant 0 : index
    %302 = vector.load %arg10[%c0_113, %c0_114] : memref<64x128xf32, #tpu.memory_space<vmem>>, vector<64x128xf32>
    %303 = arith.truncf %302 : vector<64x128xf32> to vector<64x128xbf16>
    %c0_115 = arith.constant 0 : index
    %c0_116 = arith.constant 0 : index
    %304 = vector.load %arg4[%c0_115, %c0_116] : memref<128x512xbf16, #tpu.memory_space<vmem>>, vector<128x512xbf16>
    %cst_117 = arith.constant dense<0.000000e+00> : vector<64x512xf32>
    %305 = tpu.matmul %303, %304, %cst_117 {dimension_numbers = #tpu.dot_dimension_numbers<[1], [0], [0], [1], [0, 0, 1, 1], [], []>} : vector<64x128xbf16>, vector<128x512xbf16>, vector<64x512xf32> -> vector<64x512xf32>
    %c0_118 = arith.constant 0 : index
    %c0_119 = arith.constant 0 : index
    %306 = vector.load %arg6[%c0_118, %c0_119] : memref<1x512xf32, #tpu.memory_space<vmem>>, vector<1x512xf32>
    %307 = vector.broadcast %306 : vector<1x512xf32> to vector<64x512xf32>
    %308 = arith.addf %305, %307 : vector<64x512xf32>
    %c0_120 = arith.constant 0 : index
    %c0_121 = arith.constant 0 : index
    %309 = vector.load %arg11[%c0_120, %c0_121] : memref<64x512xf32, #tpu.memory_space<vmem>>, vector<64x512xf32>
    tpu.vector_store %arg11[%c0_120, %c0_121], %308 {strides = array<i32>} : memref<64x512xf32, #tpu.memory_space<vmem>>, vector<64x512xf32>,
    %cst_122 = arith.constant 0.000000e+00 : f32
    %310 = vector.broadcast %cst_122 : f32 to vector<8x128xf32>
    %cst_123 = arith.constant 0.000000e+00 : f32
    %311 = vector.broadcast %cst_123 : f32 to vector<8x128xf32>
    %c0_124 = arith.constant 0 : index
    %c0_125 = arith.constant 0 : index
    %312 = vector.load %arg11[%c0_124, %c0_125] : memref<64x512xf32, #tpu.memory_space<vmem>>, vector<8x512xf32>
    %c56_126 = arith.constant 56 : index
    %c0_127 = arith.constant 0 : index
    %313 = vector.load %arg11[%c56_126, %c0_127] : memref<64x512xf32, #tpu.memory_space<vmem>>, vector<8x512xf32>
    %314 = arith.select %4, %312, %313 : vector<8x512xi1>, vector<8x512xf32>
    %315 = arith.truncf %310 : vector<8x128xf32> to vector<8x128xbf16>
    %c0_128 = arith.constant 0 : index
    %c0_129 = arith.constant 0 : index
    %316 = vector.load %arg5[%c0_128, %c0_129] : memref<128x512xbf16, #tpu.memory_space<vmem>>, vector<128x512xbf16>
    %cst_130 = arith.constant dense<0.000000e+00> : vector<8x512xf32>
    %317 = tpu.matmul %315, %316, %cst_130 {dimension_numbers = #tpu.dot_dimension_numbers<[1], [0], [0], [1], [0, 0, 1, 1], [], []>} : vector<8x128xbf16>, vector<128x512xbf16>, vector<8x512xf32> -> vector<8x512xf32>
    %318 = arith.addf %314, %317 : vector<8x512xf32>
    %319 = vector.extract_strided_slice %318 {offsets = [0, 0], sizes = [8, 128], strides = [1, 1]} : vector<8x512xf32> to vector<8x128xf32>
    %320 = arith.negf %319 : vector<8x128xf32>
    %321 = math.exp %320 : vector<8x128xf32>
    %cst_131 = arith.constant 1.000000e+00 : f32
    %322 = vector.broadcast %cst_131 : f32 to vector<8x128xf32>
    %323 = arith.addf %322, %321 : vector<8x128xf32>
    %324 = arith.divf %322, %323 : vector<8x128xf32>
    %325 = vector.extract_strided_slice %318 {offsets = [0, 128], sizes = [8, 128], strides = [1, 1]} : vector<8x512xf32> to vector<8x128xf32>
    %326 = arith.negf %325 : vector<8x128xf32>
    %327 = math.exp %326 : vector<8x128xf32>
    %cst_132 = arith.constant 1.000000e+00 : f32
    %328 = vector.broadcast %cst_132 : f32 to vector<8x128xf32>
    %329 = arith.addf %328, %327 : vector<8x128xf32>
    %330 = arith.divf %328, %329 : vector<8x128xf32>
    %331 = vector.extract_strided_slice %318 {offsets = [0, 256], sizes = [8, 128], strides = [1, 1]} : vector<8x512xf32> to vector<8x128xf32>
    %332 = math.tanh %331 : vector<8x128xf32>
    %333 = vector.extract_strided_slice %318 {offsets = [0, 384], sizes = [8, 128], strides = [1, 1]} : vector<8x512xf32> to vector<8x128xf32>
    %334 = arith.negf %333 : vector<8x128xf32>
    %335 = math.exp %334 : vector<8x128xf32>
    %cst_133 = arith.constant 1.000000e+00 : f32
    %336 = vector.broadcast %cst_133 : f32 to vector<8x128xf32>
    %337 = arith.addf %336, %335 : vector<8x128xf32>
    %338 = arith.divf %336, %337 : vector<8x128xf32>
    %339 = arith.mulf %330, %311 : vector<8x128xf32>
    %340 = arith.mulf %324, %332 : vector<8x128xf32>
    %341 = arith.addf %339, %340 : vector<8x128xf32>
    %342 = math.tanh %341 : vector<8x128xf32>
    %343 = arith.mulf %338, %342 : vector<8x128xf32>
    %c8_134 = arith.constant 8 : index
    %c0_135 = arith.constant 0 : index
    %344 = vector.load %arg11[%c8_134, %c0_135] : memref<64x512xf32, #tpu.memory_space<vmem>>, vector<8x512xf32>
    %c48_136 = arith.constant 48 : index
    %c0_137 = arith.constant 0 : index
    %345 = vector.load %arg11[%c48_136, %c0_137] : memref<64x512xf32, #tpu.memory_space<vmem>>, vector<8x512xf32>
    %346 = arith.select %4, %344, %345 : vector<8x512xi1>, vector<8x512xf32>
    %347 = arith.truncf %343 : vector<8x128xf32> to vector<8x128xbf16>
    %c0_138 = arith.constant 0 : index
    %c0_139 = arith.constant 0 : index
    %348 = vector.load %arg5[%c0_138, %c0_139] : memref<128x512xbf16, #tpu.memory_space<vmem>>, vector<128x512xbf16>
    %cst_140 = arith.constant dense<0.000000e+00> : vector<8x512xf32>
    %349 = tpu.matmul %347, %348, %cst_140 {dimension_numbers = #tpu.dot_dimension_numbers<[1], [0], [0], [1], [0, 0, 1, 1], [], []>} : vector<8x128xbf16>, vector<128x512xbf16>, vector<8x512xf32> -> vector<8x512xf32>
    %350 = arith.addf %346, %349 : vector<8x512xf32>
    %351 = vector.extract_strided_slice %350 {offsets = [0, 0], sizes = [8, 128], strides = [1, 1]} : vector<8x512xf32> to vector<8x128xf32>
    %352 = arith.negf %351 : vector<8x128xf32>
    %353 = math.exp %352 : vector<8x128xf32>
    %cst_141 = arith.constant 1.000000e+00 : f32
    %354 = vector.broadcast %cst_141 : f32 to vector<8x128xf32>
    %355 = arith.addf %354, %353 : vector<8x128xf32>
    %356 = arith.divf %354, %355 : vector<8x128xf32>
    %357 = vector.extract_strided_slice %350 {offsets = [0, 128], sizes = [8, 128], strides = [1, 1]} : vector<8x512xf32> to vector<8x128xf32>
    %358 = arith.negf %357 : vector<8x128xf32>
    %359 = math.exp %358 : vector<8x128xf32>
    %cst_142 = arith.constant 1.000000e+00 : f32
    %360 = vector.broadcast %cst_142 : f32 to vector<8x128xf32>
    %361 = arith.addf %360, %359 : vector<8x128xf32>
    %362 = arith.divf %360, %361 : vector<8x128xf32>
    %363 = vector.extract_strided_slice %350 {offsets = [0, 256], sizes = [8, 128], strides = [1, 1]} : vector<8x512xf32> to vector<8x128xf32>
    %364 = math.tanh %363 : vector<8x128xf32>
    %365 = vector.extract_strided_slice %350 {offsets = [0, 384], sizes = [8, 128], strides = [1, 1]} : vector<8x512xf32> to vector<8x128xf32>
    %366 = arith.negf %365 : vector<8x128xf32>
    %367 = math.exp %366 : vector<8x128xf32>
    %cst_143 = arith.constant 1.000000e+00 : f32
    %368 = vector.broadcast %cst_143 : f32 to vector<8x128xf32>
    %369 = arith.addf %368, %367 : vector<8x128xf32>
    %370 = arith.divf %368, %369 : vector<8x128xf32>
    %371 = arith.mulf %362, %341 : vector<8x128xf32>
    %372 = arith.mulf %356, %364 : vector<8x128xf32>
    %373 = arith.addf %371, %372 : vector<8x128xf32>
    %374 = math.tanh %373 : vector<8x128xf32>
    %375 = arith.mulf %370, %374 : vector<8x128xf32>
    %c16_144 = arith.constant 16 : index
    %c0_145 = arith.constant 0 : index
    %376 = vector.load %arg11[%c16_144, %c0_145] : memref<64x512xf32, #tpu.memory_space<vmem>>, vector<8x512xf32>
    %c40_146 = arith.constant 40 : index
    %c0_147 = arith.constant 0 : index
    %377 = vector.load %arg11[%c40_146, %c0_147] : memref<64x512xf32, #tpu.memory_space<vmem>>, vector<8x512xf32>
    %378 = arith.select %4, %376, %377 : vector<8x512xi1>, vector<8x512xf32>
    %379 = arith.truncf %375 : vector<8x128xf32> to vector<8x128xbf16>
    %c0_148 = arith.constant 0 : index
    %c0_149 = arith.constant 0 : index
    %380 = vector.load %arg5[%c0_148, %c0_149] : memref<128x512xbf16, #tpu.memory_space<vmem>>, vector<128x512xbf16>
    %cst_150 = arith.constant dense<0.000000e+00> : vector<8x512xf32>
    %381 = tpu.matmul %379, %380, %cst_150 {dimension_numbers = #tpu.dot_dimension_numbers<[1], [0], [0], [1], [0, 0, 1, 1], [], []>} : vector<8x128xbf16>, vector<128x512xbf16>, vector<8x512xf32> -> vector<8x512xf32>
    %382 = arith.addf %378, %381 : vector<8x512xf32>
    %383 = vector.extract_strided_slice %382 {offsets = [0, 0], sizes = [8, 128], strides = [1, 1]} : vector<8x512xf32> to vector<8x128xf32>
    %384 = arith.negf %383 : vector<8x128xf32>
    %385 = math.exp %384 : vector<8x128xf32>
    %cst_151 = arith.constant 1.000000e+00 : f32
    %386 = vector.broadcast %cst_151 : f32 to vector<8x128xf32>
    %387 = arith.addf %386, %385 : vector<8x128xf32>
    %388 = arith.divf %386, %387 : vector<8x128xf32>
    %389 = vector.extract_strided_slice %382 {offsets = [0, 128], sizes = [8, 128], strides = [1, 1]} : vector<8x512xf32> to vector<8x128xf32>
    %390 = arith.negf %389 : vector<8x128xf32>
    %391 = math.exp %390 : vector<8x128xf32>
    %cst_152 = arith.constant 1.000000e+00 : f32
    %392 = vector.broadcast %cst_152 : f32 to vector<8x128xf32>
    %393 = arith.addf %392, %391 : vector<8x128xf32>
    %394 = arith.divf %392, %393 : vector<8x128xf32>
    %395 = vector.extract_strided_slice %382 {offsets = [0, 256], sizes = [8, 128], strides = [1, 1]} : vector<8x512xf32> to vector<8x128xf32>
    %396 = math.tanh %395 : vector<8x128xf32>
    %397 = vector.extract_strided_slice %382 {offsets = [0, 384], sizes = [8, 128], strides = [1, 1]} : vector<8x512xf32> to vector<8x128xf32>
    %398 = arith.negf %397 : vector<8x128xf32>
    %399 = math.exp %398 : vector<8x128xf32>
    %cst_153 = arith.constant 1.000000e+00 : f32
    %400 = vector.broadcast %cst_153 : f32 to vector<8x128xf32>
    %401 = arith.addf %400, %399 : vector<8x128xf32>
    %402 = arith.divf %400, %401 : vector<8x128xf32>
    %403 = arith.mulf %394, %373 : vector<8x128xf32>
    %404 = arith.mulf %388, %396 : vector<8x128xf32>
    %405 = arith.addf %403, %404 : vector<8x128xf32>
    %406 = math.tanh %405 : vector<8x128xf32>
    %407 = arith.mulf %402, %406 : vector<8x128xf32>
    %c24_154 = arith.constant 24 : index
    %c0_155 = arith.constant 0 : index
    %408 = vector.load %arg11[%c24_154, %c0_155] : memref<64x512xf32, #tpu.memory_space<vmem>>, vector<8x512xf32>
    %c32_156 = arith.constant 32 : index
    %c0_157 = arith.constant 0 : index
    %409 = vector.load %arg11[%c32_156, %c0_157] : memref<64x512xf32, #tpu.memory_space<vmem>>, vector<8x512xf32>
    %410 = arith.select %4, %408, %409 : vector<8x512xi1>, vector<8x512xf32>
    %411 = arith.truncf %407 : vector<8x128xf32> to vector<8x128xbf16>
    %c0_158 = arith.constant 0 : index
    %c0_159 = arith.constant 0 : index
    %412 = vector.load %arg5[%c0_158, %c0_159] : memref<128x512xbf16, #tpu.memory_space<vmem>>, vector<128x512xbf16>
    %cst_160 = arith.constant dense<0.000000e+00> : vector<8x512xf32>
    %413 = tpu.matmul %411, %412, %cst_160 {dimension_numbers = #tpu.dot_dimension_numbers<[1], [0], [0], [1], [0, 0, 1, 1], [], []>} : vector<8x128xbf16>, vector<128x512xbf16>, vector<8x512xf32> -> vector<8x512xf32>
    %414 = arith.addf %410, %413 : vector<8x512xf32>
    %415 = vector.extract_strided_slice %414 {offsets = [0, 0], sizes = [8, 128], strides = [1, 1]} : vector<8x512xf32> to vector<8x128xf32>
    %416 = arith.negf %415 : vector<8x128xf32>
    %417 = math.exp %416 : vector<8x128xf32>
    %cst_161 = arith.constant 1.000000e+00 : f32
    %418 = vector.broadcast %cst_161 : f32 to vector<8x128xf32>
    %419 = arith.addf %418, %417 : vector<8x128xf32>
    %420 = arith.divf %418, %419 : vector<8x128xf32>
    %421 = vector.extract_strided_slice %414 {offsets = [0, 128], sizes = [8, 128], strides = [1, 1]} : vector<8x512xf32> to vector<8x128xf32>
    %422 = arith.negf %421 : vector<8x128xf32>
    %423 = math.exp %422 : vector<8x128xf32>
    %cst_162 = arith.constant 1.000000e+00 : f32
    %424 = vector.broadcast %cst_162 : f32 to vector<8x128xf32>
    %425 = arith.addf %424, %423 : vector<8x128xf32>
    %426 = arith.divf %424, %425 : vector<8x128xf32>
    %427 = vector.extract_strided_slice %414 {offsets = [0, 256], sizes = [8, 128], strides = [1, 1]} : vector<8x512xf32> to vector<8x128xf32>
    %428 = math.tanh %427 : vector<8x128xf32>
    %429 = vector.extract_strided_slice %414 {offsets = [0, 384], sizes = [8, 128], strides = [1, 1]} : vector<8x512xf32> to vector<8x128xf32>
    %430 = arith.negf %429 : vector<8x128xf32>
    %431 = math.exp %430 : vector<8x128xf32>
    %cst_163 = arith.constant 1.000000e+00 : f32
    %432 = vector.broadcast %cst_163 : f32 to vector<8x128xf32>
    %433 = arith.addf %432, %431 : vector<8x128xf32>
    %434 = arith.divf %432, %433 : vector<8x128xf32>
    %435 = arith.mulf %426, %405 : vector<8x128xf32>
    %436 = arith.mulf %420, %428 : vector<8x128xf32>
    %437 = arith.addf %435, %436 : vector<8x128xf32>
    %438 = math.tanh %437 : vector<8x128xf32>
    %439 = arith.mulf %434, %438 : vector<8x128xf32>
    %c32_164 = arith.constant 32 : index
    %c0_165 = arith.constant 0 : index
    %440 = vector.load %arg11[%c32_164, %c0_165] : memref<64x512xf32, #tpu.memory_space<vmem>>, vector<8x512xf32>
    %c24_166 = arith.constant 24 : index
    %c0_167 = arith.constant 0 : index
    %441 = vector.load %arg11[%c24_166, %c0_167] : memref<64x512xf32, #tpu.memory_space<vmem>>, vector<8x512xf32>
    %442 = arith.select %4, %440, %441 : vector<8x512xi1>, vector<8x512xf32>
    %443 = arith.truncf %439 : vector<8x128xf32> to vector<8x128xbf16>
    %c0_168 = arith.constant 0 : index
    %c0_169 = arith.constant 0 : index
    %444 = vector.load %arg5[%c0_168, %c0_169] : memref<128x512xbf16, #tpu.memory_space<vmem>>, vector<128x512xbf16>
    %cst_170 = arith.constant dense<0.000000e+00> : vector<8x512xf32>
    %445 = tpu.matmul %443, %444, %cst_170 {dimension_numbers = #tpu.dot_dimension_numbers<[1], [0], [0], [1], [0, 0, 1, 1], [], []>} : vector<8x128xbf16>, vector<128x512xbf16>, vector<8x512xf32> -> vector<8x512xf32>
    %446 = arith.addf %442, %445 : vector<8x512xf32>
    %447 = vector.extract_strided_slice %446 {offsets = [0, 0], sizes = [8, 128], strides = [1, 1]} : vector<8x512xf32> to vector<8x128xf32>
    %448 = arith.negf %447 : vector<8x128xf32>
    %449 = math.exp %448 : vector<8x128xf32>
    %cst_171 = arith.constant 1.000000e+00 : f32
    %450 = vector.broadcast %cst_171 : f32 to vector<8x128xf32>
    %451 = arith.addf %450, %449 : vector<8x128xf32>
    %452 = arith.divf %450, %451 : vector<8x128xf32>
    %453 = vector.extract_strided_slice %446 {offsets = [0, 128], sizes = [8, 128], strides = [1, 1]} : vector<8x512xf32> to vector<8x128xf32>
    %454 = arith.negf %453 : vector<8x128xf32>
    %455 = math.exp %454 : vector<8x128xf32>
    %cst_172 = arith.constant 1.000000e+00 : f32
    %456 = vector.broadcast %cst_172 : f32 to vector<8x128xf32>
    %457 = arith.addf %456, %455 : vector<8x128xf32>
    %458 = arith.divf %456, %457 : vector<8x128xf32>
    %459 = vector.extract_strided_slice %446 {offsets = [0, 256], sizes = [8, 128], strides = [1, 1]} : vector<8x512xf32> to vector<8x128xf32>
    %460 = math.tanh %459 : vector<8x128xf32>
    %461 = vector.extract_strided_slice %446 {offsets = [0, 384], sizes = [8, 128], strides = [1, 1]} : vector<8x512xf32> to vector<8x128xf32>
    %462 = arith.negf %461 : vector<8x128xf32>
    %463 = math.exp %462 : vector<8x128xf32>
    %cst_173 = arith.constant 1.000000e+00 : f32
    %464 = vector.broadcast %cst_173 : f32 to vector<8x128xf32>
    %465 = arith.addf %464, %463 : vector<8x128xf32>
    %466 = arith.divf %464, %465 : vector<8x128xf32>
    %467 = arith.mulf %458, %437 : vector<8x128xf32>
    %468 = arith.mulf %452, %460 : vector<8x128xf32>
    %469 = arith.addf %467, %468 : vector<8x128xf32>
    %470 = math.tanh %469 : vector<8x128xf32>
    %471 = arith.mulf %466, %470 : vector<8x128xf32>
    %c40_174 = arith.constant 40 : index
    %c0_175 = arith.constant 0 : index
    %472 = vector.load %arg11[%c40_174, %c0_175] : memref<64x512xf32, #tpu.memory_space<vmem>>, vector<8x512xf32>
    %c16_176 = arith.constant 16 : index
    %c0_177 = arith.constant 0 : index
    %473 = vector.load %arg11[%c16_176, %c0_177] : memref<64x512xf32, #tpu.memory_space<vmem>>, vector<8x512xf32>
    %474 = arith.select %4, %472, %473 : vector<8x512xi1>, vector<8x512xf32>
    %475 = arith.truncf %471 : vector<8x128xf32> to vector<8x128xbf16>
    %c0_178 = arith.constant 0 : index
    %c0_179 = arith.constant 0 : index
    %476 = vector.load %arg5[%c0_178, %c0_179] : memref<128x512xbf16, #tpu.memory_space<vmem>>, vector<128x512xbf16>
    %cst_180 = arith.constant dense<0.000000e+00> : vector<8x512xf32>
    %477 = tpu.matmul %475, %476, %cst_180 {dimension_numbers = #tpu.dot_dimension_numbers<[1], [0], [0], [1], [0, 0, 1, 1], [], []>} : vector<8x128xbf16>, vector<128x512xbf16>, vector<8x512xf32> -> vector<8x512xf32>
    %478 = arith.addf %474, %477 : vector<8x512xf32>
    %479 = vector.extract_strided_slice %478 {offsets = [0, 0], sizes = [8, 128], strides = [1, 1]} : vector<8x512xf32> to vector<8x128xf32>
    %480 = arith.negf %479 : vector<8x128xf32>
    %481 = math.exp %480 : vector<8x128xf32>
    %cst_181 = arith.constant 1.000000e+00 : f32
    %482 = vector.broadcast %cst_181 : f32 to vector<8x128xf32>
    %483 = arith.addf %482, %481 : vector<8x128xf32>
    %484 = arith.divf %482, %483 : vector<8x128xf32>
    %485 = vector.extract_strided_slice %478 {offsets = [0, 128], sizes = [8, 128], strides = [1, 1]} : vector<8x512xf32> to vector<8x128xf32>
    %486 = arith.negf %485 : vector<8x128xf32>
    %487 = math.exp %486 : vector<8x128xf32>
    %cst_182 = arith.constant 1.000000e+00 : f32
    %488 = vector.broadcast %cst_182 : f32 to vector<8x128xf32>
    %489 = arith.addf %488, %487 : vector<8x128xf32>
    %490 = arith.divf %488, %489 : vector<8x128xf32>
    %491 = vector.extract_strided_slice %478 {offsets = [0, 256], sizes = [8, 128], strides = [1, 1]} : vector<8x512xf32> to vector<8x128xf32>
    %492 = math.tanh %491 : vector<8x128xf32>
    %493 = vector.extract_strided_slice %478 {offsets = [0, 384], sizes = [8, 128], strides = [1, 1]} : vector<8x512xf32> to vector<8x128xf32>
    %494 = arith.negf %493 : vector<8x128xf32>
    %495 = math.exp %494 : vector<8x128xf32>
    %cst_183 = arith.constant 1.000000e+00 : f32
    %496 = vector.broadcast %cst_183 : f32 to vector<8x128xf32>
    %497 = arith.addf %496, %495 : vector<8x128xf32>
    %498 = arith.divf %496, %497 : vector<8x128xf32>
    %499 = arith.mulf %490, %469 : vector<8x128xf32>
    %500 = arith.mulf %484, %492 : vector<8x128xf32>
    %501 = arith.addf %499, %500 : vector<8x128xf32>
    %502 = math.tanh %501 : vector<8x128xf32>
    %503 = arith.mulf %498, %502 : vector<8x128xf32>
    %c48_184 = arith.constant 48 : index
    %c0_185 = arith.constant 0 : index
    %504 = vector.load %arg11[%c48_184, %c0_185] : memref<64x512xf32, #tpu.memory_space<vmem>>, vector<8x512xf32>
    %c8_186 = arith.constant 8 : index
    %c0_187 = arith.constant 0 : index
    %505 = vector.load %arg11[%c8_186, %c0_187] : memref<64x512xf32, #tpu.memory_space<vmem>>, vector<8x512xf32>
    %506 = arith.select %4, %504, %505 : vector<8x512xi1>, vector<8x512xf32>
    %507 = arith.truncf %503 : vector<8x128xf32> to vector<8x128xbf16>
    %c0_188 = arith.constant 0 : index
    %c0_189 = arith.constant 0 : index
    %508 = vector.load %arg5[%c0_188, %c0_189] : memref<128x512xbf16, #tpu.memory_space<vmem>>, vector<128x512xbf16>
    %cst_190 = arith.constant dense<0.000000e+00> : vector<8x512xf32>
    %509 = tpu.matmul %507, %508, %cst_190 {dimension_numbers = #tpu.dot_dimension_numbers<[1], [0], [0], [1], [0, 0, 1, 1], [], []>} : vector<8x128xbf16>, vector<128x512xbf16>, vector<8x512xf32> -> vector<8x512xf32>
    %510 = arith.addf %506, %509 : vector<8x512xf32>
    %511 = vector.extract_strided_slice %510 {offsets = [0, 0], sizes = [8, 128], strides = [1, 1]} : vector<8x512xf32> to vector<8x128xf32>
    %512 = arith.negf %511 : vector<8x128xf32>
    %513 = math.exp %512 : vector<8x128xf32>
    %cst_191 = arith.constant 1.000000e+00 : f32
    %514 = vector.broadcast %cst_191 : f32 to vector<8x128xf32>
    %515 = arith.addf %514, %513 : vector<8x128xf32>
    %516 = arith.divf %514, %515 : vector<8x128xf32>
    %517 = vector.extract_strided_slice %510 {offsets = [0, 128], sizes = [8, 128], strides = [1, 1]} : vector<8x512xf32> to vector<8x128xf32>
    %518 = arith.negf %517 : vector<8x128xf32>
    %519 = math.exp %518 : vector<8x128xf32>
    %cst_192 = arith.constant 1.000000e+00 : f32
    %520 = vector.broadcast %cst_192 : f32 to vector<8x128xf32>
    %521 = arith.addf %520, %519 : vector<8x128xf32>
    %522 = arith.divf %520, %521 : vector<8x128xf32>
    %523 = vector.extract_strided_slice %510 {offsets = [0, 256], sizes = [8, 128], strides = [1, 1]} : vector<8x512xf32> to vector<8x128xf32>
    %524 = math.tanh %523 : vector<8x128xf32>
    %525 = vector.extract_strided_slice %510 {offsets = [0, 384], sizes = [8, 128], strides = [1, 1]} : vector<8x512xf32> to vector<8x128xf32>
    %526 = arith.negf %525 : vector<8x128xf32>
    %527 = math.exp %526 : vector<8x128xf32>
    %cst_193 = arith.constant 1.000000e+00 : f32
    %528 = vector.broadcast %cst_193 : f32 to vector<8x128xf32>
    %529 = arith.addf %528, %527 : vector<8x128xf32>
    %530 = arith.divf %528, %529 : vector<8x128xf32>
    %531 = arith.mulf %522, %501 : vector<8x128xf32>
    %532 = arith.mulf %516, %524 : vector<8x128xf32>
    %533 = arith.addf %531, %532 : vector<8x128xf32>
    %534 = math.tanh %533 : vector<8x128xf32>
    %535 = arith.mulf %530, %534 : vector<8x128xf32>
    %c56_194 = arith.constant 56 : index
    %c0_195 = arith.constant 0 : index
    %536 = vector.load %arg11[%c56_194, %c0_195] : memref<64x512xf32, #tpu.memory_space<vmem>>, vector<8x512xf32>
    %c0_196 = arith.constant 0 : index
    %c0_197 = arith.constant 0 : index
    %537 = vector.load %arg11[%c0_196, %c0_197] : memref<64x512xf32, #tpu.memory_space<vmem>>, vector<8x512xf32>
    %538 = arith.select %4, %536, %537 : vector<8x512xi1>, vector<8x512xf32>
    %539 = arith.truncf %535 : vector<8x128xf32> to vector<8x128xbf16>
    %c0_198 = arith.constant 0 : index
    %c0_199 = arith.constant 0 : index
    %540 = vector.load %arg5[%c0_198, %c0_199] : memref<128x512xbf16, #tpu.memory_space<vmem>>, vector<128x512xbf16>
    %cst_200 = arith.constant dense<0.000000e+00> : vector<8x512xf32>
    %541 = tpu.matmul %539, %540, %cst_200 {dimension_numbers = #tpu.dot_dimension_numbers<[1], [0], [0], [1], [0, 0, 1, 1], [], []>} : vector<8x128xbf16>, vector<128x512xbf16>, vector<8x512xf32> -> vector<8x512xf32>
    %542 = arith.addf %538, %541 : vector<8x512xf32>
    %543 = vector.extract_strided_slice %542 {offsets = [0, 0], sizes = [8, 128], strides = [1, 1]} : vector<8x512xf32> to vector<8x128xf32>
    %544 = arith.negf %543 : vector<8x128xf32>
    %545 = math.exp %544 : vector<8x128xf32>
    %cst_201 = arith.constant 1.000000e+00 : f32
    %546 = vector.broadcast %cst_201 : f32 to vector<8x128xf32>
    %547 = arith.addf %546, %545 : vector<8x128xf32>
    %548 = arith.divf %546, %547 : vector<8x128xf32>
    %549 = vector.extract_strided_slice %542 {offsets = [0, 128], sizes = [8, 128], strides = [1, 1]} : vector<8x512xf32> to vector<8x128xf32>
    %550 = arith.negf %549 : vector<8x128xf32>
    %551 = math.exp %550 : vector<8x128xf32>
    %cst_202 = arith.constant 1.000000e+00 : f32
    %552 = vector.broadcast %cst_202 : f32 to vector<8x128xf32>
    %553 = arith.addf %552, %551 : vector<8x128xf32>
    %554 = arith.divf %552, %553 : vector<8x128xf32>
    %555 = vector.extract_strided_slice %542 {offsets = [0, 256], sizes = [8, 128], strides = [1, 1]} : vector<8x512xf32> to vector<8x128xf32>
    %556 = math.tanh %555 : vector<8x128xf32>
    %557 = vector.extract_strided_slice %542 {offsets = [0, 384], sizes = [8, 128], strides = [1, 1]} : vector<8x512xf32> to vector<8x128xf32>
    %558 = arith.negf %557 : vector<8x128xf32>
    %559 = math.exp %558 : vector<8x128xf32>
    %cst_203 = arith.constant 1.000000e+00 : f32
    %560 = vector.broadcast %cst_203 : f32 to vector<8x128xf32>
    %561 = arith.addf %560, %559 : vector<8x128xf32>
    %562 = arith.divf %560, %561 : vector<8x128xf32>
    %563 = arith.mulf %554, %533 : vector<8x128xf32>
    %564 = arith.mulf %548, %556 : vector<8x128xf32>
    %565 = arith.addf %563, %564 : vector<8x128xf32>
    %566 = math.tanh %565 : vector<8x128xf32>
    %567 = arith.mulf %562, %566 : vector<8x128xf32>
    %568 = vector.extract_strided_slice %567 {offsets = [0, 0], sizes = [8, 64], strides = [1, 1]} : vector<8x128xf32> to vector<8x64xf32>
    %569 = arith.truncf %568 : vector<8x64xf32> to vector<8x64xbf16>
    %c0_204 = arith.constant 0 : index
    %c0_205 = arith.constant 0 : index
    %570 = vector.load %arg7[%c0_204, %c0_205] : memref<64x128xbf16, #tpu.memory_space<vmem>>, vector<64x128xbf16>
    %cst_206 = arith.constant dense<0.000000e+00> : vector<8x128xf32>
    %571 = tpu.matmul %569, %570, %cst_206 {dimension_numbers = #tpu.dot_dimension_numbers<[1], [0], [0], [1], [0, 0, 1, 1], [], []>} : vector<8x64xbf16>, vector<64x128xbf16>, vector<8x128xf32> -> vector<8x128xf32>
    %c0_207 = arith.constant 0 : index
    %c0_208 = arith.constant 0 : index
    %572 = vector.load %arg8[%c0_207, %c0_208] : memref<1x128xf32, #tpu.memory_space<vmem>>, vector<1x128xf32>
    %573 = vector.broadcast %572 : vector<1x128xf32> to vector<8x128xf32>
    %574 = arith.addf %571, %573 : vector<8x128xf32>
    %c0_209 = arith.constant 0 : index
    %c0_210 = arith.constant 0 : index
    %575 = vector.load %arg9[%c0_209, %c0_210] : memref<8x128xf32, #tpu.memory_space<vmem>>, vector<8x128xf32>
    tpu.vector_store %arg9[%c0_209, %c0_210], %574 {strides = array<i32>} : memref<8x128xf32, #tpu.memory_space<vmem>>, vector<8x128xf32>,
    return
  }
}

</mosaic_0001>

<bundles_post_ra>
// kernel: rnn_forward.1
= control target key start
LH: loop header
LB: loop body
LE: loop exit
PB: predicated region body
PF: predicated region fallthrough
CT: control target
= control target key end

     0   :  { %14 = vsyncpa [#allocation5], 0  ;;  %s7412_s0 = inlined_call_operand.vmem [shape: bf16[64,28], index: 0, kind: input, shape index: {}]   ;;  %s7413_s1 = inlined_call_operand.vmem [shape: bf16[28,512], index: 1, kind: input, shape index: {}]   ;;  %s7414_s2 = inlined_call_operand.hbm [shape: bf16[128,512], index: 2, kind: input, shape index: {}]   ;;  %s7415_s3 = inlined_call_operand.vmem [shape: f32[1,512], index: 3, kind: input, shape index: {}]   ;;  %s7416_s4 = inlined_call_operand.hbm [shape: bf16[128,512], index: 4, kind: input, shape index: {}]   ;;  %s7417_s5 = inlined_call_operand.hbm [shape: bf16[128,512], index: 5, kind: input, shape index: {}]   ;;  %s7418_s6 = inlined_call_operand.vmem [shape: f32[1,512], index: 6, kind: input, shape index: {}]   ;;  %s7419_s7 = inlined_call_operand.hbm [shape: bf16[64,128], index: 7, kind: input, shape index: {}]   ;;  %s7420_s8 = inlined_call_operand.vmem [shape: f32[1,128], index: 8, kind: input, shape index: {}]   ;;  %s7421_s9 = inlined_call_operand.vmem [shape: f32[8,128], index: 9, kind: output, shape index: {}]  }
   0x1   :  { %15 = vsyncpa [#allocation7], 0 }
   0x2   :  { %16 = vsyncpa [#allocation10], 0  ;;  %s5596_s30 = smov [#allocation6]   ;;  %s5597_s11 = smov [#allocation4]  }
   0x3   :  { %s40_s10 = sshll.u32 %s5596_s30, 4  ;;  %s26_s12 = sshll.u32 %s5597_s11, 4  ;;  %s41_s10 = int_to_ptr.vmem [resolvable:$true] %s40_s10  ;;  %s27_s12 = int_to_ptr.vmem [resolvable:$true] %s26_s12 }
   0x4   :  { %s5518_s13 = scalar_lea.vmem %s41_s10, 4096  ;;  %p5523_p1 = scmp.lt.s32.totalorder %s41_s10, %s41_s10 }
   0x5   :  { %p5519_p0 = scmp.ne.s32.totalorder %s41_s10, %s5518_s13  ;;  %p5524_p2 = scmp.lt.s32.totalorder %s5518_s13, %s5518_s13 }
   0x7   :  { %p5525_p3 = por %p5524_p2, %p5523_p1 }
   0x9   :  { %p5526_p4 = pnand %p5525_p3, %p5519_p0 }
   0xb   :  { %5529 = shalt.err (!%p5526_p4)
}
   0xc   :  { %s5598_s14 = smov 256   ;;  %s5599_s15 = smov 16  }
   0xd   :  { %46 = dma.hbm_to_vmem [thread:$0]  %s7416_s4, 4096, %s41_s10, [#allocation7], %s5598_s14, %s5598_s14, %s5599_s15  }
   0xe   :  { %s5538_s18 = scalar_lea.vmem %s27_s12, 4096  ;;  %p5543_p6 = scmp.lt.s32.totalorder %s27_s12, %s27_s12 }
   0xf   :  { %p5539_p5 = scmp.ne.s32.totalorder %s27_s12, %s5538_s18  ;;  %p5544_p7 = scmp.lt.s32.totalorder %s5538_s18, %s5538_s18 }
  0x11   :  { %p5545_p8 = por %p5544_p7, %p5543_p6 }
  0x13   :  { %p5546_p9 = pnand %p5545_p8, %p5539_p5 }
  0x15   :  { %5549 = shalt.err (!%p5546_p9)
}
  0x16   :  { %32 = dma.hbm_to_vmem [thread:$0]  %s7414_s2, 4096, %s27_s12, [#allocation5], %s5598_s14, %s5598_s14, %s5599_s15  }
  0x17   :  { %s5600_s21 = smov [#allocation8]   ;;  %s5601_s23 = smov [#allocation9]  }
  0x18   :  { %s52_s22 = sshll.u32 %s5600_s21, 4  ;;  %s66_s24 = sshll.u32 %s5601_s23, 4  ;;  %s53_s22 = int_to_ptr.vmem [resolvable:$true] %s52_s22  ;;  %s67_s24 = int_to_ptr.vmem [resolvable:$true] %s66_s24 }
  0x19   :  { %s5558_s25 = scalar_lea.vmem %s53_s22, 4096  ;;  %p5563_p11 = scmp.lt.s32.totalorder %s53_s22, %s53_s22 }
  0x1a   :  { %p5559_p10 = scmp.ne.s32.totalorder %s53_s22, %s5558_s25  ;;  %p5564_p12 = scmp.lt.s32.totalorder %s5558_s25, %s5558_s25 }
  0x1c   :  { %p5565_p13 = por %p5564_p12, %p5563_p11 }
  0x1e   :  { %p5566_p0 = pnand %p5565_p13, %p5559_p10 }
  0x20   :  { %5569 = shalt.err (!%p5566_p0)
}
  0x21   :  { %58 = dma.hbm_to_vmem [thread:$0]  %s7417_s5, 4096, %s53_s22, [#allocation7], %s5598_s14, %s5598_s14, %s5599_s15  }
  0x22   :  { %s5578_s27 = scalar_lea.vmem %s67_s24, 512  ;;  %p5583_p2 = scmp.lt.s32.totalorder %s67_s24, %s67_s24 }
  0x23   :  { %p5579_p1 = scmp.ne.s32.totalorder %s67_s24, %s5578_s27  ;;  %p5584_p3 = scmp.lt.s32.totalorder %s5578_s27, %s5578_s27 }
  0x25   :  { %p5585_p4 = por %p5584_p3, %p5583_p2 }
  0x27   :  { %p5586_p5 = pnand %p5585_p4, %p5579_p1 }
  0x29   :  { %5589 = shalt.err (!%p5586_p5)
}
  0x2a   :  { %s5602_s2 = smov 64   ;;  %s5603_s28 = smov 4  }
  0x2b   :  { %72 = dma.hbm_to_vmem [thread:$0]  %s7419_s7, 512, %s67_s24, [#allocation10], %s5602_s2, %s5602_s2, %s5603_s28  }
  0x2c   :  { %5590 = dma.done.wait [#allocation5], 4096  }
  0x2d   :  { %5591 = vsyncadd [#allocation5], 4294963200 }
  0x2e   :  { %5592 = dma.done.wait [#allocation7], 8192  }
  0x2f   :  { %5593 = vsyncadd [#allocation7], 4294959104 }
  0x30   :  { %5594 = dma.done.wait [#allocation10], 512  }
  0x31   :  { %5595 = vsyncadd [#allocation10], 4294966784  ;;  %v7426_v0 = vmov 0   ;;  %vm208_vm0 = vcmask 1045504   ;;  %v5004_v5 = vld [vmem:[%s7413_s1 + $0x4] ss:$16 sps:$4 sm:$0xff]   ;;  %v88_v47 = vlaneseq }
  0x32   :  { %253 = vmatprep.mubr.bf16.mxu0 %v7426_v0  ;;  %326 = vmatprep.mubr.bf16.mxu1 %v7426_v0  ;;  %v4998_v1 = vld [vmem:[%s7413_s1 + $0x24] ss:$16 sps:$4 sm:$0x3f]   ;;  %v5000_v2 = vld [vmem:[%s7413_s1 + $0x2c] ss:$16 sps:$4 sm:$0x3f]  }
  0x33   :  { %4586 = vmatprep.subr.msk.bf16.mxu0 %vm208_vm0, %v4998_v1  ;;  %v5002_v3 = vld [vmem:[%s7413_s1 + $0x20] ss:$16 sps:$4 sm:$0x3f]   ;;  %v5003_v4 = vld [vmem:[%s7413_s1 + $0x28] ss:$16 sps:$4 sm:$0x3f]   ;;  %4591 = vmatprep.subr.msk.bf16.mxu1 %vm208_vm0, %v5000_v2 }
  0x34   :  { %v210_v6 = vsel %vm208_vm0, %v5002_v3, 0  ;;  %v216_v7 = vsel %vm208_vm0, %v5003_v4, 0  ;;  %v5006_v8 = vld [vmem:[%s7413_s1 + $0xc] ss:$16 sps:$4 sm:$0xff]   ;;  %v5008_v9 = vld [vmem:[%s7413_s1] ss:$16 sps:$4 sm:$0xff]  }
  0x35   :  { %234 = vmatpush1.bf16.msra.mxu0 %v210_v6  ;;  %307 = vmatpush1.bf16.msra.mxu1 %v216_v7  ;;  %v5009_v10 = vld [vmem:[%s7413_s1 + $0x8] ss:$16 sps:$4 sm:$0xff]   ;;  %v5010_v11 = vld [vmem:[%s7412_s0] sm:$0xff]   ;;  %vm195_vm1 = vcmask 228352   ;;  %v5704_v15 = vld [vmem:[#allocation4 + $0xec] ss:$16 sps:$4 sm:$0xff]  }
  0x36   :  { %235 = vmatprep.subr.bf16.mxu0 %v5004_v5  ;;  %308 = vmatprep.subr.bf16.mxu1 %v5006_v8  ;;  %v5698_v12 = vld [vmem:[#allocation4 + $0xe0] ss:$16 sps:$4 sm:$0xff]   ;;  %v5700_v13 = vld [vmem:[#allocation4 + $0xe4] ss:$16 sps:$4 sm:$0xff]   ;;  %v5702_v14 = vld [vmem:[#allocation4 + $0xe8] ss:$16 sps:$4 sm:$0xff]  }
  0x37   :  { %v5707_v16 = vld [vmem:[#allocation4 + $0xc4] ss:$16 sps:$4 sm:$0xff]   ;;  %v5710_v17 = vld [vmem:[#allocation4 + $0xcc] ss:$16 sps:$4 sm:$0xff]   ;;  %v5714_v18 = vld [vmem:[#allocation4 + $0xc0] ss:$16 sps:$4 sm:$0xff]  }
  0x38   :  { %v5718_v19 = vld [vmem:[#allocation4 + $0xc8] ss:$16 sps:$4 sm:$0xff]   ;;  %v5722_v20 = vld [vmem:[#allocation4 + $0xa4] ss:$16 sps:$4 sm:$0xff]   ;;  %v5729_v22 = vld [vmem:[#allocation4 + $0xac] ss:$16 sps:$4 sm:$0xff]  }
  0x39   :  { %236 = vmatpush1.bf16.msra.mxu0 %v5008_v9  ;;  %309 = vmatpush1.bf16.msra.mxu1 %v5009_v10  ;;  %v5023_v21 = vld [vmem:[%s7412_s0 + $0x8] sm:$0xff]   ;;  %v5731_v23 = vld [vmem:[#allocation4 + $0xa0] ss:$16 sps:$4 sm:$0xff]   ;;  %v5737_v25 = vld [vmem:[#allocation4 + $0x84] ss:$16 sps:$4 sm:$0xff]   ;;  %v5857_v48 = vshrl.u32 %v88_v47, 7 }
  0x3a   :  { %603 = vmatprep.subr.bf16.mxu0 %v5700_v13  ;;  %644 = vmatprep.subr.bf16.mxu1 %v5704_v15  ;;  %v5733_v24 = vld [vmem:[#allocation4 + $0xa8] ss:$16 sps:$4 sm:$0xff]   ;;  %v5741_v26 = vld [vmem:[#allocation4 + $0x8c] ss:$16 sps:$4 sm:$0xff]   ;;  %v5745_v27 = vld [vmem:[#allocation4 + $0x80] ss:$16 sps:$4 sm:$0xff]  }
  0x3b   :  { %v5749_v28 = vld [vmem:[#allocation4 + $0x88] ss:$16 sps:$4 sm:$0xff]   ;;  %v5751_v29 = vld [vmem:[#allocation4 + $0x64] ss:$16 sps:$4 sm:$0xff]   ;;  %v5755_v30 = vld [vmem:[#allocation4 + $0x6c] ss:$16 sps:$4 sm:$0xff]  }
  0x3c   :  { %4587 = vmatmul.mubr.msk.bf16.vlgmr.msra.gmra.mxu0 %vm195_vm1, %v5010_v11  ;;  %4592 = vmatmul.mubr.msk.bf16.vlgmr.msra.gmra.mxu1 %vm195_vm1, %v5010_v11  ;;  %v5036_v31 = vld [vmem:[%s7412_s0 + $0x10] sm:$0xff]   ;;  %v5766_v33 = vld [vmem:[#allocation4 + $0x68] ss:$16 sps:$4 sm:$0xff]   ;;  %v5772_v35 = vld [vmem:[#allocation4 + $0x4c] ss:$16 sps:$4 sm:$0xff]   ;;  %7530 = vst [vmem:[#allocation15_spill] sm:$0xff] %v5857_v48 }
  0x3d   :  { %604 = vmatpush1.bf16.msra.mxu0 %v5698_v12  ;;  %645 = vmatpush1.bf16.msra.mxu1 %v5702_v14  ;;  %v5762_v32 = vld [vmem:[#allocation4 + $0x60] ss:$16 sps:$4 sm:$0xff]   ;;  %v5770_v34 = vld [vmem:[#allocation4 + $0x44] ss:$16 sps:$4 sm:$0xff]   ;;  %v5780_v37 = vld [vmem:[#allocation4 + $0x48] ss:$16 sps:$4 sm:$0xff]  }
  0x3e   :  { %605 = vmatprep.subr.bf16.mxu0 %v5707_v16  ;;  %646 = vmatprep.subr.bf16.mxu1 %v5710_v17  ;;  %v5778_v36 = vld [vmem:[#allocation4 + $0x40] ss:$16 sps:$4 sm:$0xff]   ;;  %v5049_v38 = vld [vmem:[%s7412_s0 + $0x18] sm:$0xff]   ;;  %v5787_v39 = vld [vmem:[#allocation4 + $0x24] ss:$16 sps:$4 sm:$0xff]   ;;  %v7424_v49 = vsub.s32 2, %v5857_v48 }
  0x3f   :  { %263 = vmatprep.mubr.bf16.mxu0 %v7426_v0  ;;  %336 = vmatprep.mubr.bf16.mxu1 %v7426_v0  ;;  %v5789_v40 = vld [vmem:[#allocation4 + $0x2c] ss:$16 sps:$4 sm:$0xff]   ;;  %v5793_v41 = vld [vmem:[#allocation4 + $0x20] ss:$16 sps:$4 sm:$0xff]   ;;  %v5795_v42 = vld [vmem:[#allocation4 + $0x28] ss:$16 sps:$4 sm:$0xff]  }
  0x40   :  { %v5797_v43 = vld [vmem:[#allocation4 + $0x4] ss:$16 sps:$4 sm:$0xff]   ;;  %v5799_v44 = vld [vmem:[#allocation4 + $0xc] ss:$16 sps:$4 sm:$0xff]   ;;  %v5805_v45 = vld [vmem:[#allocation4] ss:$16 sps:$4 sm:$0xff]  }
  0x41   :  { %606 = vmatpush1.bf16.msra.mxu0 %v5714_v18  ;;  %647 = vmatpush1.bf16.msra.mxu1 %v5718_v19  ;;  %v5807_v46 = vld [vmem:[#allocation4 + $0x8] ss:$16 sps:$4 sm:$0xff]   ;;  %v7425_v50 = vsub.s32 0, %v5857_v48  ;;  %v7422_v51 = vsub.s32 3, %v5857_v48  ;;  %v117_v52 = vld [vmem:[%s7415_s3] sm:$0xf] }
  0x42   :  { %607 = vmatprep.subr.bf16.mxu0 %v5722_v20  ;;  %648 = vmatprep.subr.bf16.mxu1 %v5729_v22  ;;  %7529 = vst [vmem:[#allocation14_spill] sm:$0xff] %v5807_v46  ;;  %v5871_v55 = vrot.slane %v117_v52, %v7424_v49  ;;  %v7423_v56 = vsub.s32 1, %v5857_v48  ;;  %v89_v3 = vand.u32 127, %v88_v47  ;;  %vm713_vm6 = vcmask 523264  }
  0x43   :  { %v5880_v59 = vrot.slane %v117_v52, %v7425_v50  ;;  %v5884_v60 = vrot.slane %v117_v52, %v7422_v51  ;;  %vm715_vm7 = vcmask 1048064   ;;  %vm5606_vm8 = vmmov 0  }
  0x44   :  { %4588 = vmatmul.mubr.msk.bf16.gmra.mxu0 %vm195_vm1, %v5023_v21  ;;  %4593 = vmatmul.mubr.msk.bf16.gmra.mxu1 %vm195_vm1, %v5023_v21  ;;  %v5888_v63 = vrot.slane %v117_v52, %v7423_v56  ;;  %v92_v21 = vadd.s32 384, %v89_v3 }
  0x45   :  { %608 = vmatpush1.bf16.msra.mxu0 %v5731_v23  ;;  %649 = vmatpush1.bf16.msra.mxu1 %v5733_v24 }
  0x46   :  { %609 = vmatprep.subr.bf16.mxu0 %v5737_v25  ;;  %650 = vmatprep.subr.bf16.mxu1 %v5741_v26  ;;  %v96_v56 = vand.u32 64, %v92_v21 }
  0x47   :  { %273 = vmatprep.mubr.bf16.mxu0 %v7426_v0  ;;  %346 = vmatprep.mubr.bf16.mxu1 %v7426_v0 }
  0x48   :  { %vm5944_vm5 = vcmp.eq.s32.totalorder %v96_v56, 0 }
  0x49   :  { %610 = vmatpush1.bf16.msra.mxu0 %v5745_v27  ;;  %651 = vmatpush1.bf16.msra.mxu1 %v5749_v28 }
  0x4a   :  { %611 = vmatprep.subr.bf16.mxu0 %v5751_v29  ;;  %652 = vmatprep.subr.bf16.mxu1 %v5755_v30 }
  0x4c   :  { %4589 = vmatmul.mubr.msk.bf16.gmra.mxu0 %vm195_vm1, %v5036_v31  ;;  %4594 = vmatmul.mubr.msk.bf16.gmra.mxu1 %vm195_vm1, %v5036_v31 }
  0x4d   :  { %612 = vmatpush1.bf16.msra.mxu0 %v5762_v32  ;;  %653 = vmatpush1.bf16.msra.mxu1 %v5766_v33 }
  0x4e   :  { %613 = vmatprep.subr.bf16.mxu0 %v5770_v34  ;;  %654 = vmatprep.subr.bf16.mxu1 %v5772_v35 }
  0x4f   :  { %283 = vmatprep.mubr.bf16.mxu0 %v7426_v0  ;;  %356 = vmatprep.mubr.bf16.mxu1 %v7426_v0 }
  0x51   :  { %614 = vmatpush1.bf16.msra.mxu0 %v5778_v36  ;;  %655 = vmatpush1.bf16.msra.mxu1 %v5780_v37 }
  0x52   :  { %615 = vmatprep.subr.bf16.mxu0 %v5787_v39  ;;  %656 = vmatprep.subr.bf16.mxu1 %v5789_v40 }
  0x54   :  { %4590 = vmatmul.mubr.msk.bf16.gmra.mxu0 %vm195_vm1, %v5049_v38  ;;  %4595 = vmatmul.mubr.msk.bf16.gmra.mxu1 %vm195_vm1, %v5049_v38 }
  0x55   :  { %616 = vmatpush1.bf16.msra.mxu0 %v5793_v41  ;;  %657 = vmatpush1.bf16.msra.mxu1 %v5795_v42 }
  0x56   :  { %617 = vmatprep.subr.bf16.mxu0 %v5797_v43  ;;  %658 = vmatprep.subr.bf16.mxu1 %v5799_v44 }
  0x57   :  { %635 = vmatprep.mubr.bf16.mxu0 %v7426_v0  ;;  %676 = vmatprep.mubr.bf16.mxu1 %v7426_v0 }
  0x59   :  { %618 = vmatpush1.bf16.msra.mxu0 %v5805_v45  ;;  %659 = vmatpush1.bf16.msra.mxu1 %v5807_v46 }
  0x5a   :  { %922 = vmatprep.subr.bf16.mxu0 %v5700_v13  ;;  %963 = vmatprep.subr.bf16.mxu1 %v5704_v15 }
  0x5c   :  { %636 = vmatmul.mubr.bf16.vlgmr.msra.gmra.mxu0 %v7426_v0  ;;  %677 = vmatmul.mubr.bf16.vlgmr.msra.gmra.mxu1 %v7426_v0 }
  0x5d   :  { %923 = vmatpush1.bf16.msra.mxu0 %v5698_v12  ;;  %964 = vmatpush1.bf16.msra.mxu1 %v5702_v14 }
  0x5e   :  { %924 = vmatprep.subr.bf16.mxu0 %v5707_v16  ;;  %965 = vmatprep.subr.bf16.mxu1 %v5710_v17 }
  0x5f   :  { %954 = vmatprep.mubr.bf16.mxu0 %v7426_v0  ;;  %995 = vmatprep.mubr.bf16.mxu1 %v7426_v0 }
  0x61   :  { %925 = vmatpush1.bf16.msra.mxu0 %v5714_v18  ;;  %966 = vmatpush1.bf16.msra.mxu1 %v5718_v19 }
  0x62   :  { %926 = vmatprep.subr.bf16.mxu0 %v5722_v20  ;;  %967 = vmatprep.subr.bf16.mxu1 %v5729_v22 }
  0x65   :  { %927 = vmatpush1.bf16.msra.mxu0 %v5731_v23  ;;  %968 = vmatpush1.bf16.msra.mxu1 %v5733_v24 }
  0x66   :  { %928 = vmatprep.subr.bf16.mxu0 %v5737_v25  ;;  %969 = vmatprep.subr.bf16.mxu1 %v5741_v26 }
  0x69   :  { %929 = vmatpush1.bf16.msra.mxu0 %v5745_v27  ;;  %970 = vmatpush1.bf16.msra.mxu1 %v5749_v28 }
  0x6a   :  { %930 = vmatprep.subr.bf16.mxu0 %v5751_v29  ;;  %971 = vmatprep.subr.bf16.mxu1 %v5755_v30 }
  0x6d   :  { %931 = vmatpush1.bf16.msra.mxu0 %v5762_v32  ;;  %972 = vmatpush1.bf16.msra.mxu1 %v5766_v33 }
  0x6e   :  { %932 = vmatprep.subr.bf16.mxu0 %v5770_v34  ;;  %973 = vmatprep.subr.bf16.mxu1 %v5772_v35 }
  0x71   :  { %933 = vmatpush1.bf16.msra.mxu0 %v5778_v36  ;;  %974 = vmatpush1.bf16.msra.mxu1 %v5780_v37 }
  0x72   :  { %934 = vmatprep.subr.bf16.mxu0 %v5787_v39  ;;  %975 = vmatprep.subr.bf16.mxu1 %v5789_v40 }
  0x75   :  { %935 = vmatpush1.bf16.msra.mxu0 %v5793_v41  ;;  %976 = vmatpush1.bf16.msra.mxu1 %v5795_v42 }
  0x76   :  { %936 = vmatprep.subr.bf16.mxu0 %v5797_v43  ;;  %977 = vmatprep.subr.bf16.mxu1 %v5799_v44 }
  0x79   :  { %937 = vmatpush1.bf16.msra.mxu0 %v5805_v45  ;;  %978 = vmatpush1.bf16.msra.mxu1 %v5807_v46 }
  0x7a   :  { %1239 = vmatprep.subr.bf16.mxu0 %v5700_v13  ;;  %1280 = vmatprep.subr.bf16.mxu1 %v5704_v15  ;;  %v90_v13 = vadd.s32 128, %v89_v3  ;;  %v91_v15 = vadd.s32 256, %v89_v3 }
  0x7c   :  { %v95_v51 = vand.u32 64, %v91_v15 }
  0x7e   :  { %vm5940_vm4 = vcmp.eq.s32.totalorder %v95_v51, 0 }
  0xfc   :  { %v5865_v53 = vpop.f32.mrf.mxu0  ;;  %v5867_v54 = vpop.f32.mrf.mxu1 }
  0xfe   :  { %v5874_v57 = vpop.f32.mrf.mxu0  ;;  %v5876_v58 = vpop.f32.mrf.mxu1 }
 0x100   :  { %v259_v61 = vpop.f32.mrf.mxu0  ;;  %v332_v62 = vpop.f32.mrf.mxu1 }
 0x101   :  { %v5891_v1 = vadd.f32 %v259_v61, %v5880_v59  ;;  %v5894_v2 = vadd.f32 %v332_v62, %v5871_v55  ;;  %v93_v61 = vand.u32 64, %v89_v3 }
 0x102   :  { %v261_v4 = vpop.f32.mrf.mxu0  ;;  %v334_v5 = vpop.f32.mrf.mxu1 }
 0x103   :  { %7531 = vst [vmem:[#allocation16_spill] sm:$0xff] %v5891_v1  ;;  %7532 = vst [vmem:[#allocation17_spill] sm:$0xff] %v5894_v2  ;;  %v5897_v6 = vadd.f32 %v261_v4, %v5888_v63  ;;  %v5900_v7 = vadd.f32 %v334_v5, %v5884_v60  ;;  %vm5926_vm2 = vcmp.eq.s32.totalorder %v93_v61, 0 }
 0x104   :  { %v265_v8 = vpop.f32.mrf.mxu0  ;;  %v338_v9 = vpop.f32.mrf.mxu1 }
 0x105   :  { %7533 = vst [vmem:[#allocation18_spill] sm:$0xff] %v5897_v6  ;;  %7534 = vst [vmem:[#allocation19_spill] sm:$0xff] %v5900_v7  ;;  %v5903_v10 = vadd.f32 %v265_v8, %v5880_v59  ;;  %v5906_v11 = vadd.f32 %v338_v9, %v5871_v55  ;;  %v94_v9 = vand.u32 64, %v90_v13 }
 0x106   :  { %v267_v31 = vpop.f32.mrf.mxu0  ;;  %v340_v38 = vpop.f32.mrf.mxu1 }
 0x107   :  { %7535 = vst [vmem:[#allocation20_spill] sm:$0xff] %v5903_v10  ;;  %7536 = vst [vmem:[#allocation21_spill] sm:$0xff] %v5906_v11  ;;  %v5909_v47 = vadd.f32 %v267_v31, %v5888_v63  ;;  %v5912_v52 = vadd.f32 %v340_v38, %v5884_v60  ;;  %vm5936_vm3 = vcmp.eq.s32.totalorder %v94_v9, 0 }
 0x108   :  { %v269_v62 = vpop.f32.mrf.mxu0  ;;  %v342_v4 = vpop.f32.mrf.mxu1 }
 0x109   :  { %7537 = vst [vmem:[#allocation22_spill] sm:$0xff] %v5909_v47  ;;  %7538 = vst [vmem:[#allocation23_spill] sm:$0xff] %v5912_v52  ;;  %v5915_v5 = vadd.f32 %v269_v62, %v5880_v59  ;;  %v5918_v8 = vadd.f32 %v342_v4, %v5871_v55 }
 0x10a   :  { %v271_v49 = vpop.f32.mrf.mxu0  ;;  %v344_v50 = vpop.f32.mrf.mxu1 }
 0x10b   :  { %7539 = vst [vmem:[#allocation24_spill] sm:$0xff] %v5915_v5  ;;  %7540 = vst [vmem:[#allocation25_spill] sm:$0xff] %v5918_v8  ;;  %v5921_v31 = vadd.f32 %v271_v49, %v5888_v63  ;;  %v5924_v38 = vadd.f32 %v344_v50, %v5884_v60 }
 0x10c   :  { %v275_v62 = vpop.f32.mrf.mxu0  ;;  %v348_v0 = vpop.f32.mrf.mxu1 }
 0x10d   :  { %7541 = vst [vmem:[#allocation26_spill] sm:$0xff] %v5921_v31  ;;  %7542 = vst [vmem:[#allocation27_spill] sm:$0xff] %v5924_v38  ;;  %v5931_v4 = vadd.f32 %v275_v62, %v5880_v59  ;;  %v5934_v13 = vadd.f32 %v348_v0, %v5871_v55 }
 0x10e   :  { %v277_v21 = vpop.f32.mrf.mxu0  ;;  %v350_v61 = vpop.f32.mrf.mxu1 }
 0x10f   :  { %7545 = vst [vmem:[#allocation28_spill] sm:$0xff] %v5931_v4  ;;  %7546 = vst [vmem:[#allocation29_spill] sm:$0xff] %v5934_v13  ;;  %v5949_v62 = vadd.f32 %v277_v21, %v5888_v63  ;;  %v5952_v0 = vadd.f32 %v350_v61, %v5884_v60 }
 0x110   :  { %v279_v9 = vpop.f32.mrf.mxu0  ;;  %v352_v48 = vpop.f32.mrf.mxu1 }
 0x111   :  { %7553 = vst [vmem:[#allocation30_spill] sm:$0xff] %v5949_v62  ;;  %7554 = vst [vmem:[#allocation31_spill] sm:$0xff] %v5952_v0  ;;  %v5971_v46 = vadd.f32 %v279_v9, %v5880_v59  ;;  %v5974_v51 = vadd.f32 %v352_v48, %v5871_v55  ;;  %v6052_v62 = vadd.f32 %v5865_v53, %v5880_v59 }
 0x112   :  { %v281_v4 = vpop.f32.mrf.mxu0  ;;  %v354_v5 = vpop.f32.mrf.mxu1  ;;  %v6090_v53 = vadd.f32 %v5874_v57, %v5888_v63 }
 0x113   :  { %7555 = vst [vmem:[#allocation32_spill] sm:$0xff] %v5974_v51  ;;  %v5993_v61 = vadd.f32 %v281_v4, %v5888_v63  ;;  %v5996_v56 = vadd.f32 %v354_v5, %v5884_v60  ;;  %7562 = vst [vmem:[#allocation39_spill] sm:$0xff] %v6052_v62  ;;  %v6078_v51 = vadd.f32 %v5867_v54, %v5871_v55 }
 0x114   :  { %v285_v13 = vpop.f32.mrf.mxu0  ;;  %v358_v8 = vpop.f32.mrf.mxu1  ;;  %7566 = vst [vmem:[#allocation43_spill] sm:$0xff] %v6090_v53 }
 0x115   :  { %7556 = vst [vmem:[#allocation33_spill] sm:$0xff] %v5993_v61  ;;  %7557 = vst [vmem:[#allocation34_spill] sm:$0xff] %v5996_v56  ;;  %v6015_v48 = vadd.f32 %v285_v13, %v5880_v59  ;;  %v6018_v21 = vadd.f32 %v358_v8, %v5871_v55 }
 0x116   :  { %v287_v0 = vpop.f32.mrf.mxu0  ;;  %v360_v38 = vpop.f32.mrf.mxu1  ;;  %7565 = vst [vmem:[#allocation42_spill] sm:$0xff] %v6078_v51 }
 0x117   :  { %7558 = vst [vmem:[#allocation35_spill] sm:$0xff] %v6015_v48  ;;  %7559 = vst [vmem:[#allocation36_spill] sm:$0xff] %v6018_v21  ;;  %v6037_v5 = vadd.f32 %v287_v0, %v5888_v63  ;;  %v6040_v9 = vadd.f32 %v360_v38, %v5884_v60 }
 0x118   :  { %v289_v8 = vpop.f32.mrf.mxu0  ;;  %v362_v0 = vpop.f32.mrf.mxu1 }
 0x119   :  { %7560 = vst [vmem:[#allocation37_spill] sm:$0xff] %v6037_v5  ;;  %7561 = vst [vmem:[#allocation38_spill] sm:$0xff] %v6040_v9  ;;  %v6063_v31 = vadd.f32 %v289_v8, %v5880_v59  ;;  %v6066_v13 = vadd.f32 %v362_v0, %v5871_v55  ;;  %v6104_v8 = vadd.f32 %v5876_v58, %v5884_v60 }
 0x11a   :  { %v291_v4 = vpop.f32.mrf.mxu0  ;;  %v364_v59 = vpop.f32.mrf.mxu1 }
 0x11b   :  { %7563 = vst [vmem:[#allocation40_spill] sm:$0xff] %v6063_v31  ;;  %7564 = vst [vmem:[#allocation41_spill] sm:$0xff] %v6066_v13  ;;  %v6093_v38 = vadd.f32 %v291_v4, %v5888_v63  ;;  %v6096_v54 = vadd.f32 %v364_v59, %v5884_v60  ;;  %v407_v55 = vsel %vm5926_vm2, %v6052_v62, %v6063_v31 }
 0x11c   :  { %7569 = vst [vmem:[#allocation46_spill] sm:$0xff] %v6104_v8  ;;  %v637_v0 = vpop.f32.mrf.mxu0  ;;  %v678_v11 = vpop.f32.mrf.mxu1  ;;  %v409_v57 = vsel %vm5940_vm4, %v6078_v51, %v6066_v13 }
 0x11d   :  { %7567 = vst [vmem:[#allocation44_spill] sm:$0xff] %v6093_v38  ;;  %7568 = vst [vmem:[#allocation45_spill] sm:$0xff] %v6096_v54  ;;  %v685_v4 = vadd.f32 %v637_v0, %v407_v55  ;;  %v408_v59 = vsel %vm5936_vm3, %v6090_v53, %v6093_v38  ;;  %v410_v47 = vsel %vm5944_vm5, %v6104_v8, %v6096_v54  ;;  %v7589_v38 = vld [vmem:[#allocation26_spill] sm:$0xff] }
 0x11e   :  { %v639_v58 = vpop.f32.mrf.mxu0  ;;  %v680_v60 = vpop.f32.mrf.mxu1 }
 0x11f   :  { %v4628_v62 = vmul.f32 -1.442695, %v685_v4  ;;  %v686_v63 = vadd.f32 %v639_v58, %v408_v59  ;;  %v688_v56 = vadd.f32 %v680_v60, %v410_v47  ;;  %v687_v58 = vadd.f32 %v678_v11, %v409_v57 }
 0x120   :  { %v641_v0 = vpop.f32.mrf.mxu0  ;;  %v682_v55 = vpop.f32.mrf.mxu1 }
 0x121   :  { %5222 = vpow2.f32 %v4628_v62  ;;  %v4629_v31 = vmul.f32 -1.442695, %v686_v63  ;;  %v4630_v4 = vmul.f32 -1.442695, %v688_v56 }
 0x122   :  { %v642_v52 = vpop.f32.mrf.mxu0  ;;  %v683_v61 = vpop.f32.mrf.mxu1 }
 0x123   :  { %5224 = vpow2.f32 %v4629_v31 }
 0x124   :  { %5226 = vpow2.f32 %v4630_v4 }
 0x12e   :  { %v5223_v59 = vpop.eup %5222 }
 0x12f   :  { %v692_v0 = vadd.f32 1.0, %v5223_v59 }
 0x130   :  { %v5225_v62 = vpop.eup %5224 }
 0x131   :  { %5228 = vrcp.f32 %v692_v0  ;;  %v698_v52 = vadd.f32 1.0, %v5225_v62  ;;  %v5227_v31 = vpop.eup %5226  ;;  %v7573_v0 = vsel %vm5936_vm3, %v5897_v6, %v6037_v5 }
 0x132   :  { %5230 = vtanh.f32 %v687_v58  ;;  %v705_v47 = vadd.f32 1.0, %v5227_v31 }
 0x133   :  { %5232 = vrcp.f32 %v698_v52 }
 0x134   :  { %5234 = vrcp.f32 %v705_v47  ;;  %v7574_v47 = vsel %vm5944_vm5, %v5900_v7, %v6040_v9 }
 0x13e   :  { %v5229_v61 = vpop.eup %5228 }
 0x13f   :  { %v5231_v63 = vpop.eup %5230 }
 0x140   :  { %v5233_v55 = vpop.eup %5232  ;;  %v709_v8 = vmul.f32 %v5231_v63, %v5229_v61 }
 0x141   :  { %v708_v60 = vmul.f32 0.0, %v5233_v55  ;;  %v5235_v11 = vpop.eup %5234 }
 0x143   :  { %v6134_v54 = vadd.f32 %v709_v8, %v708_v60  ;;  %v7570_v8 = vmov 0  }
 0x145   :  { %5236 = vtanh.f32 %v6134_v54 }
 0x152   :  { %v5237_v56 = vpop.eup %5236 }
 0x153   :  { %v712_v57 = vmul.f32 %v5237_v56, %v5235_v11  ;;  %v7575_v11 = vsel %vm5940_vm4, %v5894_v2, %v6018_v21  ;;  %v7590_v2 = vld [vmem:[#allocation30_spill] sm:$0xff] }
 0x154   :  { %v7591_v21 = vsel %vm5936_vm3, %v7589_v38, %v7590_v2 }
 0x155   :  { %714 = vst.msk [vmem:[#allocation2] sm:$0xff] %vm713_vm6, %v712_v57  ;;  %v729_v4 = vpack.c.bf16 %v712_v57, %v712_v57 }
 0x156   :  { %716 = vst.msk [vmem:[#allocation2 + $0x38] sm:$0xff] %vm715_vm7, %v712_v57 }
 0x157   :  { %955 = vmatmul.mubr.bf16.vlgmr.msra.gmra.mxu0 %v729_v4  ;;  %996 = vmatmul.mubr.bf16.vlgmr.msra.gmra.mxu1 %v729_v4 }
 0x158   :  { %1240 = vmatpush1.bf16.msra.mxu0 %v5698_v12  ;;  %1281 = vmatpush1.bf16.msra.mxu1 %v5702_v14  ;;  %v7571_v12 = vld [vmem:[#allocation14_spill] sm:$0xff] }
 0x159   :  { %1241 = vmatprep.subr.bf16.mxu0 %v5707_v16  ;;  %1282 = vmatprep.subr.bf16.mxu1 %v5710_v17  ;;  %v7572_v17 = vsel %vm5926_vm2, %v5891_v1, %v6015_v48 }
 0x15a   :  { %1271 = vmatprep.mubr.bf16.mxu0 %v7570_v8  ;;  %1312 = vmatprep.mubr.bf16.mxu1 %v7570_v8 }
 0x15c   :  { %1242 = vmatpush1.bf16.msra.mxu0 %v5714_v18  ;;  %1283 = vmatpush1.bf16.msra.mxu1 %v5718_v19 }
 0x15d   :  { %1243 = vmatprep.subr.bf16.mxu0 %v5722_v20  ;;  %1284 = vmatprep.subr.bf16.mxu1 %v5729_v22 }
 0x160   :  { %1244 = vmatpush1.bf16.msra.mxu0 %v5731_v23  ;;  %1285 = vmatpush1.bf16.msra.mxu1 %v5733_v24 }
 0x161   :  { %1245 = vmatprep.subr.bf16.mxu0 %v5737_v25  ;;  %1286 = vmatprep.subr.bf16.mxu1 %v5741_v26 }
 0x164   :  { %1246 = vmatpush1.bf16.msra.mxu0 %v5745_v27  ;;  %1287 = vmatpush1.bf16.msra.mxu1 %v5749_v28 }
 0x165   :  { %1247 = vmatprep.subr.bf16.mxu0 %v5751_v29  ;;  %1288 = vmatprep.subr.bf16.mxu1 %v5755_v30 }
 0x168   :  { %1248 = vmatpush1.bf16.msra.mxu0 %v5762_v32  ;;  %1289 = vmatpush1.bf16.msra.mxu1 %v5766_v33 }
 0x169   :  { %1249 = vmatprep.subr.bf16.mxu0 %v5770_v34  ;;  %1290 = vmatprep.subr.bf16.mxu1 %v5772_v35 }
 0x16c   :  { %1250 = vmatpush1.bf16.msra.mxu0 %v5778_v36  ;;  %1291 = vmatpush1.bf16.msra.mxu1 %v5780_v37 }
 0x16d   :  { %1251 = vmatprep.subr.bf16.mxu0 %v5787_v39  ;;  %1292 = vmatprep.subr.bf16.mxu1 %v5789_v40 }
 0x170   :  { %1252 = vmatpush1.bf16.msra.mxu0 %v5793_v41  ;;  %1293 = vmatpush1.bf16.msra.mxu1 %v5795_v42 }
 0x171   :  { %1253 = vmatprep.subr.bf16.mxu0 %v5797_v43  ;;  %1294 = vmatprep.subr.bf16.mxu1 %v5799_v44 }
 0x174   :  { %1254 = vmatpush1.bf16.msra.mxu0 %v5805_v45  ;;  %1295 = vmatpush1.bf16.msra.mxu1 %v7571_v12 }
 0x217   :  { %v956_v14 = vpop.f32.mrf.mxu0  ;;  %v997_v16 = vpop.f32.mrf.mxu1 }
 0x218   :  { %v1004_v18 = vadd.f32 %v956_v14, %v7572_v17  ;;  %v1006_v56 = vadd.f32 %v997_v16, %v7575_v11  ;;  %v6203_v11 = vld [vmem:[#allocation4 + $0xe0] ss:$16 sps:$4 sm:$0xff]  }
 0x219   :  { %v958_v19 = vpop.f32.mrf.mxu0  ;;  %v999_v59 = vpop.f32.mrf.mxu1 }
 0x21a   :  { %v4663_v58 = vmul.f32 -1.442695, %v1004_v18  ;;  %v1005_v62 = vadd.f32 %v958_v19, %v7573_v0  ;;  %v1007_v60 = vadd.f32 %v999_v59, %v7574_v47 }
 0x21b   :  { %v960_v52 = vpop.f32.mrf.mxu0  ;;  %v1001_v31 = vpop.f32.mrf.mxu1 }
 0x21c   :  { %5238 = vpow2.f32 %v4663_v58  ;;  %v4664_v61 = vmul.f32 -1.442695, %v1005_v62  ;;  %v4665_v57 = vmul.f32 -1.442695, %v1007_v60  ;;  %v6201_v60 = vld [vmem:[#allocation4 + $0xec] ss:$16 sps:$4 sm:$0xff]  }
 0x21d   :  { %v961_v63 = vpop.f32.mrf.mxu0  ;;  %v1002_v55 = vpop.f32.mrf.mxu1  ;;  %1597 = vmatprep.subr.bf16.mxu1 %v6201_v60 }
 0x21e   :  { %5240 = vpow2.f32 %v4664_v61 }
 0x21f   :  { %5242 = vtanh.f32 %v1006_v56  ;;  %v6205_v56 = vld [vmem:[#allocation4 + $0xe8] ss:$16 sps:$4 sm:$0xff]  }
 0x220   :  { %5244 = vpow2.f32 %v4665_v57  ;;  %v6211_v57 = vld [vmem:[#allocation4 + $0xc4] ss:$16 sps:$4 sm:$0xff]  }
 0x229   :  { %v5239_v4 = vpop.eup %5238 }
 0x22a   :  { %v1011_v14 = vadd.f32 1.0, %v5239_v4  ;;  %v6213_v4 = vld [vmem:[#allocation4 + $0xcc] ss:$16 sps:$4 sm:$0xff]  }
 0x22b   :  { %v5241_v17 = vpop.eup %5240 }
 0x22c   :  { %5246 = vrcp.f32 %v1011_v14  ;;  %v1017_v18 = vadd.f32 1.0, %v5241_v17  ;;  %v5243_v19 = vpop.eup %5242  ;;  %v6215_v14 = vld [vmem:[#allocation4 + $0xc0] ss:$16 sps:$4 sm:$0xff]   ;;  %v6217_v17 = vld [vmem:[#allocation4 + $0xc8] ss:$16 sps:$4 sm:$0xff]  }
 0x22d   :  { %v5245_v58 = vpop.eup %5244 }
 0x22e   :  { %5248 = vrcp.f32 %v1017_v18  ;;  %v1024_v52 = vadd.f32 1.0, %v5245_v58 }
 0x230   :  { %5250 = vrcp.f32 %v1024_v52 }
 0x239   :  { %v5247_v0 = vpop.eup %5246 }
 0x23a   :  { %v1028_v62 = vmul.f32 %v5247_v0, %v5243_v19 }
 0x23b   :  { %v5249_v59 = vpop.eup %5248 }
 0x23c   :  { %v1027_v31 = vmul.f32 %v5249_v59, %v6134_v54  ;;  %v6199_v54 = vld [vmem:[#allocation4 + $0xe4] ss:$16 sps:$4 sm:$0xff]  }
 0x23d   :  { %v5251_v16 = vpop.eup %5250  ;;  %1556 = vmatprep.subr.bf16.mxu0 %v6199_v54 }
 0x23e   :  { %v6192_v61 = vadd.f32 %v1028_v62, %v1027_v31 }
 0x240   :  { %5252 = vtanh.f32 %v6192_v61 }
 0x24d   :  { %v5253_v63 = vpop.eup %5252 }
 0x24e   :  { %v1031_v55 = vmul.f32 %v5253_v63, %v5251_v16 }
 0x250   :  { %1032 = vst.msk [vmem:[#allocation2 + $0x8] sm:$0xff] %vm713_vm6, %v1031_v55  ;;  %v1046_v47 = vpack.c.bf16 %v1031_v55, %v1031_v55 }
 0x251   :  { %1033 = vst.msk [vmem:[#allocation2 + $0x30] sm:$0xff] %vm715_vm7, %v1031_v55 }
 0x252   :  { %1272 = vmatmul.mubr.bf16.vlgmr.msra.gmra.mxu0 %v1046_v47  ;;  %1313 = vmatmul.mubr.bf16.vlgmr.msra.gmra.mxu1 %v1046_v47 }
 0x253   :  { %1588 = vmatprep.mubr.bf16.mxu0 %v7570_v8  ;;  %1629 = vmatprep.mubr.bf16.mxu1 %v7570_v8 }
 0x254   :  { %1557 = vmatpush1.bf16.msra.mxu0 %v6203_v11  ;;  %1598 = vmatpush1.bf16.msra.mxu1 %v6205_v56 }
 0x255   :  { %1558 = vmatprep.subr.bf16.mxu0 %v6211_v57  ;;  %1599 = vmatprep.subr.bf16.mxu1 %v6213_v4 }
 0x258   :  { %1559 = vmatpush1.bf16.msra.mxu0 %v6215_v14  ;;  %1600 = vmatpush1.bf16.msra.mxu1 %v6217_v17 }
 0x259   :  { %1560 = vmatprep.subr.bf16.mxu0 %v5722_v20  ;;  %1601 = vmatprep.subr.bf16.mxu1 %v5729_v22 }
 0x25c   :  { %1561 = vmatpush1.bf16.msra.mxu0 %v5731_v23  ;;  %1602 = vmatpush1.bf16.msra.mxu1 %v5733_v24  ;;  %v7576_v23 = vsel %vm5926_vm2, %v5903_v10, %v5971_v46 }
 0x25d   :  { %1562 = vmatprep.subr.bf16.mxu0 %v5737_v25  ;;  %1603 = vmatprep.subr.bf16.mxu1 %v5741_v26 }
 0x260   :  { %1563 = vmatpush1.bf16.msra.mxu0 %v5745_v27  ;;  %1604 = vmatpush1.bf16.msra.mxu1 %v5749_v28  ;;  %v7577_v28 = vld [vmem:[#allocation22_spill] sm:$0xff] }
 0x261   :  { %1564 = vmatprep.subr.bf16.mxu0 %v5751_v29  ;;  %1605 = vmatprep.subr.bf16.mxu1 %v5755_v30  ;;  %v7578_v29 = vld [vmem:[#allocation33_spill] sm:$0xff] }
 0x262   :  { %v7579_v30 = vsel %vm5936_vm3, %v7577_v28, %v7578_v29 }
 0x264   :  { %1565 = vmatpush1.bf16.msra.mxu0 %v5762_v32  ;;  %1606 = vmatpush1.bf16.msra.mxu1 %v5766_v33 }
 0x265   :  { %1566 = vmatprep.subr.bf16.mxu0 %v5770_v34  ;;  %1607 = vmatprep.subr.bf16.mxu1 %v5772_v35 }
 0x268   :  { %1567 = vmatpush1.bf16.msra.mxu0 %v5778_v36  ;;  %1608 = vmatpush1.bf16.msra.mxu1 %v5780_v37 }
 0x269   :  { %1568 = vmatprep.subr.bf16.mxu0 %v5787_v39  ;;  %1609 = vmatprep.subr.bf16.mxu1 %v5789_v40  ;;  %v7580_v39 = vld [vmem:[#allocation23_spill] sm:$0xff]  ;;  %v7581_v40 = vld [vmem:[#allocation34_spill] sm:$0xff] }
 0x26c   :  { %1569 = vmatpush1.bf16.msra.mxu0 %v5793_v41  ;;  %1610 = vmatpush1.bf16.msra.mxu1 %v5795_v42  ;;  %v7582_v41 = vsel %vm5944_vm5, %v7580_v39, %v7581_v40  ;;  %v7596_v39 = vld [vmem:[#allocation29_spill] sm:$0xff] }
 0x26d   :  { %1570 = vmatprep.subr.bf16.mxu0 %v5797_v43  ;;  %1611 = vmatprep.subr.bf16.mxu1 %v5799_v44  ;;  %v7583_v43 = vld [vmem:[#allocation21_spill] sm:$0xff]  ;;  %v7584_v44 = vld [vmem:[#allocation32_spill] sm:$0xff] }
 0x270   :  { %1571 = vmatpush1.bf16.msra.mxu0 %v5805_v45  ;;  %1612 = vmatpush1.bf16.msra.mxu1 %v7571_v12  ;;  %v7585_v45 = vsel %vm5940_vm4, %v7583_v43, %v7584_v44  ;;  %v7592_v43 = vld [vmem:[#allocation27_spill] sm:$0xff] }
 0x271   :  { %1873 = vmatprep.subr.bf16.mxu0 %v6199_v54  ;;  %1914 = vmatprep.subr.bf16.mxu1 %v6201_v60 }
 0x312   :  { %v1273_v20 = vpop.f32.mrf.mxu0  ;;  %v1314_v22 = vpop.f32.mrf.mxu1 }
 0x313   :  { %v1321_v24 = vadd.f32 %v1273_v20, %v7576_v23  ;;  %v1323_v12 = vadd.f32 %v1314_v22, %v7585_v45  ;;  %v6315_v45 = vld [vmem:[#allocation4 + $0x44] ss:$16 sps:$4 sm:$0xff]  }
 0x314   :  { %v1275_v25 = vpop.f32.mrf.mxu0  ;;  %v1316_v26 = vpop.f32.mrf.mxu1 }
 0x315   :  { %v4698_v27 = vmul.f32 -1.442695, %v1321_v24  ;;  %v1322_v32 = vadd.f32 %v1275_v25, %v7579_v30  ;;  %v1324_v42 = vadd.f32 %v1316_v26, %v7582_v41  ;;  %v6285_v26 = vld [vmem:[#allocation4 + $0xac] ss:$16 sps:$4 sm:$0xff]   ;;  %v6289_v30 = vld [vmem:[#allocation4 + $0xa8] ss:$16 sps:$4 sm:$0xff]  }
 0x316   :  { %v1277_v33 = vpop.f32.mrf.mxu0  ;;  %v1318_v34 = vpop.f32.mrf.mxu1  ;;  %v6311_v41 = vld [vmem:[#allocation4 + $0x68] ss:$16 sps:$4 sm:$0xff]  }
 0x317   :  { %5254 = vpow2.f32 %v4698_v27  ;;  %v4699_v35 = vmul.f32 -1.442695, %v1322_v32  ;;  %v4700_v18 = vmul.f32 -1.442695, %v1324_v42  ;;  %v6287_v27 = vld [vmem:[#allocation4 + $0xa0] ss:$16 sps:$4 sm:$0xff]  }
 0x318   :  { %v1278_v36 = vpop.f32.mrf.mxu0  ;;  %v1319_v37 = vpop.f32.mrf.mxu1  ;;  %v6295_v32 = vld [vmem:[#allocation4 + $0x84] ss:$16 sps:$4 sm:$0xff]   ;;  %v6297_v33 = vld [vmem:[#allocation4 + $0x8c] ss:$16 sps:$4 sm:$0xff]   ;;  %v6299_v34 = vld [vmem:[#allocation4 + $0x80] ss:$16 sps:$4 sm:$0xff]  }
 0x319   :  { %5256 = vpow2.f32 %v4699_v35  ;;  %v6301_v35 = vld [vmem:[#allocation4 + $0x88] ss:$16 sps:$4 sm:$0xff]   ;;  %v6307_v36 = vld [vmem:[#allocation4 + $0x60] ss:$16 sps:$4 sm:$0xff]   ;;  %v6309_v37 = vld [vmem:[#allocation4 + $0x64] ss:$16 sps:$4 sm:$0xff]  }
 0x31a   :  { %5258 = vtanh.f32 %v1323_v12  ;;  %v6313_v42 = vld [vmem:[#allocation4 + $0x6c] ss:$16 sps:$4 sm:$0xff]  }
 0x31b   :  { %5260 = vpow2.f32 %v4700_v18  ;;  %v6318_v12 = vld [vmem:[#allocation4 + $0x4c] ss:$16 sps:$4 sm:$0xff]   ;;  %v6323_v18 = vld [vmem:[#allocation4 + $0x40] ss:$16 sps:$4 sm:$0xff]  }
 0x324   :  { %v5255_v19 = vpop.eup %5254 }
 0x325   :  { %v1328_v58 = vadd.f32 1.0, %v5255_v19  ;;  %v6325_v19 = vld [vmem:[#allocation4 + $0x48] ss:$16 sps:$4 sm:$0xff]  }
 0x326   :  { %v5257_v0 = vpop.eup %5256 }
 0x327   :  { %5262 = vrcp.f32 %v1328_v58  ;;  %v1334_v62 = vadd.f32 1.0, %v5257_v0  ;;  %v5259_v59 = vpop.eup %5258  ;;  %v6329_v58 = vld [vmem:[#allocation4 + $0x24] ss:$16 sps:$4 sm:$0xff]   ;;  %v6331_v0 = vld [vmem:[#allocation4 + $0x2c] ss:$16 sps:$4 sm:$0xff]  }
 0x328   :  { %v5261_v52 = vpop.eup %5260 }
 0x329   :  { %5264 = vrcp.f32 %v1334_v62  ;;  %v1341_v55 = vadd.f32 1.0, %v5261_v52  ;;  %v6335_v62 = vld [vmem:[#allocation4 + $0x20] ss:$16 sps:$4 sm:$0xff]   ;;  %v6341_v52 = vld [vmem:[#allocation4 + $0x4] ss:$16 sps:$4 sm:$0xff]  }
 0x32b   :  { %5266 = vrcp.f32 %v1341_v55 }
 0x334   :  { %v5263_v31 = vpop.eup %5262 }
 0x335   :  { %v1345_v16 = vmul.f32 %v5263_v31, %v5259_v59  ;;  %v6337_v59 = vld [vmem:[#allocation4 + $0x28] ss:$16 sps:$4 sm:$0xff]   ;;  %v6343_v31 = vld [vmem:[#allocation4 + $0xc] ss:$16 sps:$4 sm:$0xff]  }
 0x336   :  { %v5265_v63 = vpop.eup %5264 }
 0x337   :  { %v1344_v47 = vmul.f32 %v5265_v63, %v6192_v61  ;;  %v6283_v61 = vld [vmem:[#allocation4 + $0xa4] ss:$16 sps:$4 sm:$0xff]   ;;  %v6349_v63 = vld [vmem:[#allocation4 + $0x8] ss:$16 sps:$4 sm:$0xff]  }
 0x338   :  { %v5267_v22 = vpop.eup %5266 }
 0x339   :  { %v6270_v20 = vadd.f32 %v1345_v16, %v1344_v47  ;;  %v6347_v16 = vld [vmem:[#allocation4] ss:$16 sps:$4 sm:$0xff]  }
 0x33b   :  { %5268 = vtanh.f32 %v6270_v20 }
 0x348   :  { %v5269_v23 = vpop.eup %5268 }
 0x349   :  { %v1348_v24 = vmul.f32 %v5269_v23, %v5267_v22  ;;  %v7586_v22 = vld [vmem:[#allocation24_spill] sm:$0xff] }
 0x34a   :  { %v7587_v23 = vld [vmem:[#allocation28_spill] sm:$0xff] }
 0x34b   :  { %1349 = vst.msk [vmem:[#allocation2 + $0x10] sm:$0xff] %vm713_vm6, %v1348_v24  ;;  %v1363_v25 = vpack.c.bf16 %v1348_v24, %v1348_v24 }
 0x34c   :  { %1350 = vst.msk [vmem:[#allocation2 + $0x28] sm:$0xff] %vm715_vm7, %v1348_v24  ;;  %v7588_v24 = vsel %vm5926_vm2, %v7586_v22, %v7587_v23 }
 0x34d   :  { %1589 = vmatmul.mubr.bf16.vlgmr.msra.gmra.mxu0 %v1363_v25  ;;  %1630 = vmatmul.mubr.bf16.vlgmr.msra.gmra.mxu1 %v1363_v25 }
 0x34e   :  { %1874 = vmatpush1.bf16.msra.mxu0 %v6203_v11  ;;  %1915 = vmatpush1.bf16.msra.mxu1 %v6205_v56 }
 0x34f   :  { %1875 = vmatprep.subr.bf16.mxu0 %v6211_v57  ;;  %1916 = vmatprep.subr.bf16.mxu1 %v6213_v4 }
 0x350   :  { %1905 = vmatprep.mubr.bf16.mxu0 %v7570_v8  ;;  %1946 = vmatprep.mubr.bf16.mxu1 %v7570_v8 }
 0x352   :  { %1876 = vmatpush1.bf16.msra.mxu0 %v6215_v14  ;;  %1917 = vmatpush1.bf16.msra.mxu1 %v6217_v17 }
 0x353   :  { %1877 = vmatprep.subr.bf16.mxu0 %v6283_v61  ;;  %1918 = vmatprep.subr.bf16.mxu1 %v6285_v26 }
 0x356   :  { %1878 = vmatpush1.bf16.msra.mxu0 %v6287_v27  ;;  %1919 = vmatpush1.bf16.msra.mxu1 %v6289_v30 }
 0x357   :  { %1879 = vmatprep.subr.bf16.mxu0 %v6295_v32  ;;  %1920 = vmatprep.subr.bf16.mxu1 %v6297_v33 }
 0x35a   :  { %1880 = vmatpush1.bf16.msra.mxu0 %v6299_v34  ;;  %1921 = vmatpush1.bf16.msra.mxu1 %v6301_v35 }
 0x35b   :  { %1881 = vmatprep.subr.bf16.mxu0 %v6309_v37  ;;  %1922 = vmatprep.subr.bf16.mxu1 %v6313_v42 }
 0x35e   :  { %1882 = vmatpush1.bf16.msra.mxu0 %v6307_v36  ;;  %1923 = vmatpush1.bf16.msra.mxu1 %v6311_v41 }
 0x35f   :  { %1883 = vmatprep.subr.bf16.mxu0 %v6315_v45  ;;  %1924 = vmatprep.subr.bf16.mxu1 %v6318_v12 }
 0x362   :  { %1884 = vmatpush1.bf16.msra.mxu0 %v6323_v18  ;;  %1925 = vmatpush1.bf16.msra.mxu1 %v6325_v19 }
 0x363   :  { %1885 = vmatprep.subr.bf16.mxu0 %v6329_v58  ;;  %1926 = vmatprep.subr.bf16.mxu1 %v6331_v0 }
 0x366   :  { %1886 = vmatpush1.bf16.msra.mxu0 %v6335_v62  ;;  %1927 = vmatpush1.bf16.msra.mxu1 %v6337_v59 }
 0x367   :  { %1887 = vmatprep.subr.bf16.mxu0 %v6341_v52  ;;  %1928 = vmatprep.subr.bf16.mxu1 %v6343_v31 }
 0x36a   :  { %1888 = vmatpush1.bf16.msra.mxu0 %v6347_v16  ;;  %1929 = vmatpush1.bf16.msra.mxu1 %v6349_v63 }
 0x36b   :  { %2190 = vmatprep.subr.bf16.mxu0 %v6199_v54  ;;  %2231 = vmatprep.subr.bf16.mxu1 %v6201_v60 }
 0x40d   :  { %v1590_v55 = vpop.f32.mrf.mxu0  ;;  %v1631_v47 = vpop.f32.mrf.mxu1 }
 0x40e   :  { %v1638_v25 = vadd.f32 %v1590_v55, %v7588_v24  ;;  %v7593_v55 = vld [vmem:[#allocation31_spill] sm:$0xff] }
 0x40f   :  { %v1592_v51 = vpop.f32.mrf.mxu0  ;;  %v1633_v13 = vpop.f32.mrf.mxu1  ;;  %v7594_v24 = vsel %vm5944_vm5, %v7592_v43, %v7593_v55 }
 0x410   :  { %v4733_v53 = vmul.f32 -1.442695, %v1638_v25  ;;  %v1639_v7 = vadd.f32 %v1592_v51, %v7591_v21  ;;  %v1641_v44 = vadd.f32 %v1633_v13, %v7594_v24  ;;  %v7595_v25 = vld [vmem:[#allocation25_spill] sm:$0xff] }
 0x411   :  { %v1594_v9 = vpop.f32.mrf.mxu0  ;;  %v1635_v6 = vpop.f32.mrf.mxu1  ;;  %v7597_v40 = vsel %vm5940_vm4, %v7595_v25, %v7596_v39 }
 0x412   :  { %5270 = vpow2.f32 %v4733_v53  ;;  %v4734_v5 = vmul.f32 -1.442695, %v1639_v7  ;;  %v1640_v28 = vadd.f32 %v1631_v47, %v7597_v40  ;;  %v4735_v51 = vmul.f32 -1.442695, %v1641_v44 }
 0x413   :  { %v1595_v1 = vpop.f32.mrf.mxu0  ;;  %v1636_v48 = vpop.f32.mrf.mxu1 }
 0x414   :  { %5272 = vpow2.f32 %v4734_v5 }
 0x415   :  { %5274 = vtanh.f32 %v1640_v28 }
 0x416   :  { %5276 = vpow2.f32 %v4735_v51  ;;  %v7598_v51 = vsel %vm5926_vm2, %v7587_v23, %v7586_v22  ;;  %v7600_v22 = vsel %vm5944_vm5, %v7593_v55, %v7592_v43 }
 0x41f   :  { %v5271_v21 = vpop.eup %5270 }
 0x420   :  { %v1645_v6 = vadd.f32 1.0, %v5271_v21 }
 0x421   :  { %v5273_v7 = vpop.eup %5272 }
 0x422   :  { %5278 = vrcp.f32 %v1645_v6  ;;  %v1651_v1 = vadd.f32 1.0, %v5273_v7  ;;  %v5275_v9 = vpop.eup %5274 }
 0x423   :  { %v5277_v48 = vpop.eup %5276 }
 0x424   :  { %5280 = vrcp.f32 %v1651_v1  ;;  %v1658_v24 = vadd.f32 1.0, %v5277_v48 }
 0x426   :  { %5282 = vrcp.f32 %v1658_v24  ;;  %v7601_v24 = vsel %vm5940_vm4, %v7596_v39, %v7595_v25 }
 0x42f   :  { %v5279_v5 = vpop.eup %5278 }
 0x430   :  { %v1662_v53 = vmul.f32 %v5279_v5, %v5275_v9  ;;  %v7599_v9 = vsel %vm5936_vm3, %v7590_v2, %v7589_v38 }
 0x431   :  { %v5281_v13 = vpop.eup %5280 }
 0x432   :  { %v1661_v29 = vmul.f32 %v5281_v13, %v6270_v20 }
 0x433   :  { %v5283_v40 = vpop.eup %5282 }
 0x434   :  { %v6378_v10 = vadd.f32 %v1662_v53, %v1661_v29 }
 0x436   :  { %5284 = vtanh.f32 %v6378_v10 }
 0x443   :  { %v5285_v28 = vpop.eup %5284 }
 0x444   :  { %v1665_v44 = vmul.f32 %v5285_v28, %v5283_v40 }
 0x446   :  { %1666 = vst.msk [vmem:[#allocation2 + $0x18] sm:$0xff] %vm713_vm6, %v1665_v44  ;;  %v1680_v47 = vpack.c.bf16 %v1665_v44, %v1665_v44 }
 0x447   :  { %1667 = vst.msk [vmem:[#allocation2 + $0x20] sm:$0xff] %vm715_vm7, %v1665_v44 }
 0x448   :  { %1906 = vmatmul.mubr.bf16.vlgmr.msra.gmra.mxu0 %v1680_v47  ;;  %1947 = vmatmul.mubr.bf16.vlgmr.msra.gmra.mxu1 %v1680_v47 }
 0x449   :  { %2191 = vmatpush1.bf16.msra.mxu0 %v6203_v11  ;;  %2232 = vmatpush1.bf16.msra.mxu1 %v6205_v56 }
 0x44a   :  { %2192 = vmatprep.subr.bf16.mxu0 %v6211_v57  ;;  %2233 = vmatprep.subr.bf16.mxu1 %v6213_v4 }
 0x44b   :  { %2222 = vmatprep.mubr.bf16.mxu0 %v7570_v8  ;;  %2263 = vmatprep.mubr.bf16.mxu1 %v7570_v8 }
 0x44d   :  { %2193 = vmatpush1.bf16.msra.mxu0 %v6215_v14  ;;  %2234 = vmatpush1.bf16.msra.mxu1 %v6217_v17 }
 0x44e   :  { %2194 = vmatprep.subr.bf16.mxu0 %v6283_v61  ;;  %2235 = vmatprep.subr.bf16.mxu1 %v6285_v26 }
 0x451   :  { %2195 = vmatpush1.bf16.msra.mxu0 %v6287_v27  ;;  %2236 = vmatpush1.bf16.msra.mxu1 %v6289_v30 }
 0x452   :  { %2196 = vmatprep.subr.bf16.mxu0 %v6295_v32  ;;  %2237 = vmatprep.subr.bf16.mxu1 %v6297_v33 }
 0x455   :  { %2197 = vmatpush1.bf16.msra.mxu0 %v6299_v34  ;;  %2238 = vmatpush1.bf16.msra.mxu1 %v6301_v35 }
 0x456   :  { %2198 = vmatprep.subr.bf16.mxu0 %v6309_v37  ;;  %2239 = vmatprep.subr.bf16.mxu1 %v6313_v42 }
 0x459   :  { %2199 = vmatpush1.bf16.msra.mxu0 %v6307_v36  ;;  %2240 = vmatpush1.bf16.msra.mxu1 %v6311_v41 }
 0x45a   :  { %2200 = vmatprep.subr.bf16.mxu0 %v6315_v45  ;;  %2241 = vmatprep.subr.bf16.mxu1 %v6318_v12 }
 0x45d   :  { %2201 = vmatpush1.bf16.msra.mxu0 %v6323_v18  ;;  %2242 = vmatpush1.bf16.msra.mxu1 %v6325_v19 }
 0x45e   :  { %2202 = vmatprep.subr.bf16.mxu0 %v6329_v58  ;;  %2243 = vmatprep.subr.bf16.mxu1 %v6331_v0 }
 0x461   :  { %2203 = vmatpush1.bf16.msra.mxu0 %v6335_v62  ;;  %2244 = vmatpush1.bf16.msra.mxu1 %v6337_v59 }
 0x462   :  { %2204 = vmatprep.subr.bf16.mxu0 %v6341_v52  ;;  %2245 = vmatprep.subr.bf16.mxu1 %v6343_v31 }
 0x465   :  { %2205 = vmatpush1.bf16.msra.mxu0 %v6347_v16  ;;  %2246 = vmatpush1.bf16.msra.mxu1 %v6349_v63 }
 0x466   :  { %2507 = vmatprep.subr.bf16.mxu0 %v6199_v54  ;;  %2548 = vmatprep.subr.bf16.mxu1 %v6201_v60 }
 0x508   :  { %v1907_v29 = vpop.f32.mrf.mxu0  ;;  %v1948_v20 = vpop.f32.mrf.mxu1 }
 0x509   :  { %v1955_v21 = vadd.f32 %v1907_v29, %v7598_v51  ;;  %v1957_v2 = vadd.f32 %v1948_v20, %v7601_v24 }
 0x50a   :  { %v1909_v6 = vpop.f32.mrf.mxu0  ;;  %v1950_v7 = vpop.f32.mrf.mxu1 }
 0x50b   :  { %v4768_v1 = vmul.f32 -1.442695, %v1955_v21  ;;  %v1956_v48 = vadd.f32 %v1909_v6, %v7599_v9  ;;  %v1958_v23 = vadd.f32 %v1950_v7, %v7600_v22 }
 0x50c   :  { %v1911_v54 = vpop.f32.mrf.mxu0  ;;  %v1952_v5 = vpop.f32.mrf.mxu1 }
 0x50d   :  { %5286 = vpow2.f32 %v4768_v1  ;;  %v4769_v60 = vmul.f32 -1.442695, %v1956_v48  ;;  %v4770_v38 = vmul.f32 -1.442695, %v1958_v23  ;;  %v7604_v54 = vld [vmem:[#allocation33_spill] sm:$0xff]  ;;  %v7605_v5 = vld [vmem:[#allocation22_spill] sm:$0xff] }
 0x50e   :  { %v1912_v53 = vpop.f32.mrf.mxu0  ;;  %v1953_v13 = vpop.f32.mrf.mxu1 }
 0x50f   :  { %5288 = vpow2.f32 %v4769_v60  ;;  %v7606_v60 = vsel %vm5936_vm3, %v7604_v54, %v7605_v5  ;;  %v5115_v54 = vld [vmem:[#allocation4 + $0xec] ss:$16 sps:$4 sm:$0xff]   ;;  %v5110_v5 = vld [vmem:[#allocation4 + $0xe0] ss:$16 sps:$4 sm:$0xff]  }
 0x510   :  { %5290 = vtanh.f32 %v1957_v2 }
 0x511   :  { %5292 = vpow2.f32 %v4770_v38  ;;  %v7608_v38 = vld [vmem:[#allocation23_spill] sm:$0xff] }
 0x51a   :  { %v5287_v40 = vpop.eup %5286 }
 0x51b   :  { %v1962_v28 = vadd.f32 1.0, %v5287_v40 }
 0x51c   :  { %v5289_v44 = vpop.eup %5288 }
 0x51d   :  { %5294 = vrcp.f32 %v1962_v28  ;;  %v1968_v47 = vadd.f32 1.0, %v5289_v44  ;;  %v5291_v29 = vpop.eup %5290  ;;  %v7610_v44 = vld [vmem:[#allocation32_spill] sm:$0xff] }
 0x51e   :  { %v5293_v51 = vpop.eup %5292 }
 0x51f   :  { %5296 = vrcp.f32 %v1968_v47  ;;  %v1975_v6 = vadd.f32 1.0, %v5293_v51  ;;  %v7611_v47 = vld [vmem:[#allocation21_spill] sm:$0xff] }
 0x521   :  { %5298 = vrcp.f32 %v1975_v6 }
 0x52a   :  { %v5295_v21 = vpop.eup %5294 }
 0x52b   :  { %v1979_v43 = vmul.f32 %v5295_v21, %v5291_v29  ;;  %v7612_v29 = vsel %vm5940_vm4, %v7610_v44, %v7611_v47 }
 0x52c   :  { %v5297_v55 = vpop.eup %5296 }
 0x52d   :  { %v1978_v7 = vmul.f32 %v5297_v55, %v6378_v10 }
 0x52e   :  { %v5299_v39 = vpop.eup %5298 }
 0x52f   :  { %v6438_v1 = vadd.f32 %v1979_v43, %v1978_v7 }
 0x531   :  { %5300 = vtanh.f32 %v6438_v1 }
 0x53e   :  { %v5301_v25 = vpop.eup %5300 }
 0x53f   :  { %v1982_v20 = vmul.f32 %v5301_v25, %v5299_v39 }
 0x541   :  { %1983 = vst.msk [vmem:[#allocation2 + $0x20] sm:$0xff] %vm713_vm6, %v1982_v20  ;;  %v1997_v9 = vpack.c.bf16 %v1982_v20, %v1982_v20 }
 0x542   :  { %1984 = vst.msk [vmem:[#allocation2 + $0x18] sm:$0xff] %vm715_vm7, %v1982_v20 }
 0x543   :  { %2223 = vmatmul.mubr.bf16.vlgmr.msra.gmra.mxu0 %v1997_v9  ;;  %2264 = vmatmul.mubr.bf16.vlgmr.msra.gmra.mxu1 %v1997_v9 }
 0x544   :  { %2508 = vmatpush1.bf16.msra.mxu0 %v6203_v11  ;;  %2549 = vmatpush1.bf16.msra.mxu1 %v6205_v56  ;;  %v7602_v56 = vld [vmem:[#allocation20_spill] sm:$0xff] }
 0x545   :  { %2509 = vmatprep.subr.bf16.mxu0 %v6211_v57  ;;  %2550 = vmatprep.subr.bf16.mxu1 %v6213_v4  ;;  %v7603_v57 = vsel %vm5926_vm2, %v5971_v46, %v7602_v56  ;;  %v7607_v46 = vld [vmem:[#allocation34_spill] sm:$0xff] }
 0x546   :  { %2539 = vmatprep.mubr.bf16.mxu0 %v7570_v8  ;;  %2580 = vmatprep.mubr.bf16.mxu1 %v7570_v8  ;;  %v7609_v40 = vsel %vm5944_vm5, %v7607_v46, %v7608_v38 }
 0x548   :  { %2510 = vmatpush1.bf16.msra.mxu0 %v6215_v14  ;;  %2551 = vmatpush1.bf16.msra.mxu1 %v6217_v17 }
 0x549   :  { %2511 = vmatprep.subr.bf16.mxu0 %v6283_v61  ;;  %2552 = vmatprep.subr.bf16.mxu1 %v6285_v26 }
 0x54c   :  { %2512 = vmatpush1.bf16.msra.mxu0 %v6287_v27  ;;  %2553 = vmatpush1.bf16.msra.mxu1 %v6289_v30 }
 0x54d   :  { %2513 = vmatprep.subr.bf16.mxu0 %v6295_v32  ;;  %2554 = vmatprep.subr.bf16.mxu1 %v6297_v33 }
 0x550   :  { %2514 = vmatpush1.bf16.msra.mxu0 %v6299_v34  ;;  %2555 = vmatpush1.bf16.msra.mxu1 %v6301_v35 }
 0x551   :  { %2515 = vmatprep.subr.bf16.mxu0 %v6309_v37  ;;  %2556 = vmatprep.subr.bf16.mxu1 %v6313_v42 }
 0x554   :  { %2516 = vmatpush1.bf16.msra.mxu0 %v6307_v36  ;;  %2557 = vmatpush1.bf16.msra.mxu1 %v6311_v41 }
 0x555   :  { %2517 = vmatprep.subr.bf16.mxu0 %v6315_v45  ;;  %2558 = vmatprep.subr.bf16.mxu1 %v6318_v12 }
 0x558   :  { %2518 = vmatpush1.bf16.msra.mxu0 %v6323_v18  ;;  %2559 = vmatpush1.bf16.msra.mxu1 %v6325_v19 }
 0x559   :  { %2519 = vmatprep.subr.bf16.mxu0 %v6329_v58  ;;  %2560 = vmatprep.subr.bf16.mxu1 %v6331_v0 }
 0x55c   :  { %2520 = vmatpush1.bf16.msra.mxu0 %v6335_v62  ;;  %2561 = vmatpush1.bf16.msra.mxu1 %v6337_v59 }
 0x55d   :  { %2521 = vmatprep.subr.bf16.mxu0 %v6341_v52  ;;  %2562 = vmatprep.subr.bf16.mxu1 %v6343_v31 }
 0x560   :  { %2522 = vmatpush1.bf16.msra.mxu0 %v6347_v16  ;;  %2563 = vmatpush1.bf16.msra.mxu1 %v6349_v63 }
 0x561   :  { %2865 = vmatprep.subr.bf16.mxu1 %v5115_v54  ;;  %v5139_v54 = vld [vmem:[#allocation6 + $0xac] ss:$16 sps:$4 sm:$0xff]  }
 0x603   :  { %v2224_v10 = vpop.f32.mrf.mxu0  ;;  %v2265_v11 = vpop.f32.mrf.mxu1 }
 0x604   :  { %v2272_v4 = vadd.f32 %v2224_v10, %v7603_v57  ;;  %v2274_v51 = vadd.f32 %v2265_v11, %v7612_v29 }
 0x605   :  { %v2226_v14 = vpop.f32.mrf.mxu0  ;;  %v2267_v17 = vpop.f32.mrf.mxu1 }
 0x606   :  { %v4803_v48 = vmul.f32 -1.442695, %v2272_v4  ;;  %v2273_v53 = vadd.f32 %v2226_v14, %v7606_v60  ;;  %v2275_v28 = vadd.f32 %v2267_v17, %v7609_v40  ;;  %v5113_v60 = vld [vmem:[#allocation4 + $0xe8] ss:$16 sps:$4 sm:$0xff]  }
 0x607   :  { %v2228_v13 = vpop.f32.mrf.mxu0  ;;  %v2269_v22 = vpop.f32.mrf.mxu1 }
 0x608   :  { %5302 = vpow2.f32 %v4803_v48  ;;  %v4804_v23 = vmul.f32 -1.442695, %v2273_v53  ;;  %v4805_v21 = vmul.f32 -1.442695, %v2275_v28  ;;  %v5118_v53 = vld [vmem:[#allocation4 + $0xc4] ss:$16 sps:$4 sm:$0xff]  }
 0x609   :  { %v2229_v24 = vpop.f32.mrf.mxu0  ;;  %v2270_v2 = vpop.f32.mrf.mxu1  ;;  %v5121_v13 = vld [vmem:[#allocation4 + $0xcc] ss:$16 sps:$4 sm:$0xff]   ;;  %v5116_v22 = vld [vmem:[#allocation4 + $0xc0] ss:$16 sps:$4 sm:$0xff]  }
 0x60a   :  { %5304 = vpow2.f32 %v4804_v23  ;;  %v5119_v23 = vld [vmem:[#allocation4 + $0xc8] ss:$16 sps:$4 sm:$0xff]  }
 0x60b   :  { %5306 = vtanh.f32 %v2274_v51 }
 0x60c   :  { %5308 = vpow2.f32 %v4805_v21 }
 0x615   :  { %v5303_v43 = vpop.eup %5302 }
 0x616   :  { %v2279_v55 = vadd.f32 1.0, %v5303_v43 }
 0x617   :  { %v5305_v6 = vpop.eup %5304 }
 0x618   :  { %5310 = vrcp.f32 %v2279_v55  ;;  %v2285_v7 = vadd.f32 1.0, %v5305_v6  ;;  %v5307_v39 = vpop.eup %5306 }
 0x619   :  { %v5309_v25 = vpop.eup %5308 }
 0x61a   :  { %5312 = vrcp.f32 %v2285_v7  ;;  %v2292_v56 = vadd.f32 1.0, %v5309_v25 }
 0x61c   :  { %5314 = vrcp.f32 %v2292_v56  ;;  %v5127_v56 = vld [vmem:[#allocation6 + $0xec] ss:$16 sps:$4 sm:$0xff]  }
 0x625   :  { %v5311_v20 = vpop.eup %5310 }
 0x626   :  { %v2296_v9 = vmul.f32 %v5311_v20, %v5307_v39 }
 0x627   :  { %v5313_v10 = vpop.eup %5312 }
 0x628   :  { %v2295_v57 = vmul.f32 %v5313_v10, %v6438_v1  ;;  %v5112_v1 = vld [vmem:[#allocation4 + $0xe4] ss:$16 sps:$4 sm:$0xff]  }
 0x629   :  { %v5315_v11 = vpop.eup %5314  ;;  %2824 = vmatprep.subr.bf16.mxu0 %v5112_v1  ;;  %v5124_v10 = vld [vmem:[#allocation6 + $0xe4] ss:$16 sps:$4 sm:$0xff]  }
 0x62a   :  { %v6496_v4 = vadd.f32 %v2296_v9, %v2295_v57  ;;  %v5122_v57 = vld [vmem:[#allocation6 + $0xe0] ss:$16 sps:$4 sm:$0xff]   ;;  %v5136_v1 = vld [vmem:[#allocation6 + $0xa4] ss:$16 sps:$4 sm:$0xff]  }
 0x62c   :  { %5316 = vtanh.f32 %v6496_v4 }
 0x639   :  { %v5317_v14 = vpop.eup %5316 }
 0x63a   :  { %v2299_v17 = vmul.f32 %v5317_v14, %v5315_v11  ;;  %v5130_v11 = vld [vmem:[#allocation6 + $0xc4] ss:$16 sps:$4 sm:$0xff]   ;;  %v5133_v14 = vld [vmem:[#allocation6 + $0xcc] ss:$16 sps:$4 sm:$0xff]  }
 0x63c   :  { %2300 = vst.msk [vmem:[#allocation2 + $0x28] sm:$0xff] %vm713_vm6, %v2299_v17  ;;  %v2314_v48 = vpack.c.bf16 %v2299_v17, %v2299_v17 }
 0x63d   :  { %2301 = vst.msk [vmem:[#allocation2 + $0x10] sm:$0xff] %vm715_vm7, %v2299_v17  ;;  %v5128_v17 = vld [vmem:[#allocation6 + $0xc0] ss:$16 sps:$4 sm:$0xff]  }
 0x63e   :  { %2540 = vmatmul.mubr.bf16.vlgmr.msra.gmra.mxu0 %v2314_v48  ;;  %2581 = vmatmul.mubr.bf16.vlgmr.msra.gmra.mxu1 %v2314_v48  ;;  %v5131_v48 = vld [vmem:[#allocation6 + $0xc8] ss:$16 sps:$4 sm:$0xff]  }
 0x63f   :  { %2856 = vmatprep.mubr.bf16.mxu0 %v7570_v8  ;;  %2897 = vmatprep.mubr.bf16.mxu1 %v7570_v8 }
 0x640   :  { %2825 = vmatpush1.bf16.msra.mxu0 %v5110_v5  ;;  %2866 = vmatpush1.bf16.msra.mxu1 %v5113_v60  ;;  %v5134_v5 = vld [vmem:[#allocation6 + $0xa0] ss:$16 sps:$4 sm:$0xff]   ;;  %v5137_v60 = vld [vmem:[#allocation6 + $0xa8] ss:$16 sps:$4 sm:$0xff]  }
 0x641   :  { %2826 = vmatprep.subr.bf16.mxu0 %v5118_v53  ;;  %2867 = vmatprep.subr.bf16.mxu1 %v5121_v13  ;;  %v5142_v53 = vld [vmem:[#allocation6 + $0x84] ss:$16 sps:$4 sm:$0xff]   ;;  %v5145_v13 = vld [vmem:[#allocation6 + $0x8c] ss:$16 sps:$4 sm:$0xff]  }
 0x644   :  { %2827 = vmatpush1.bf16.msra.mxu0 %v5116_v22  ;;  %2868 = vmatpush1.bf16.msra.mxu1 %v5119_v23  ;;  %v5140_v22 = vld [vmem:[#allocation6 + $0x80] ss:$16 sps:$4 sm:$0xff]   ;;  %v5143_v23 = vld [vmem:[#allocation6 + $0x88] ss:$16 sps:$4 sm:$0xff]  }
 0x645   :  { %2828 = vmatprep.subr.bf16.mxu0 %v6283_v61  ;;  %2869 = vmatprep.subr.bf16.mxu1 %v6285_v26 }
 0x648   :  { %2829 = vmatpush1.bf16.msra.mxu0 %v6287_v27  ;;  %2870 = vmatpush1.bf16.msra.mxu1 %v6289_v30  ;;  %v7613_v27 = vld [vmem:[#allocation35_spill] sm:$0xff]  ;;  %v7614_v30 = vld [vmem:[#allocation16_spill] sm:$0xff] }
 0x649   :  { %2830 = vmatprep.subr.bf16.mxu0 %v6295_v32  ;;  %2871 = vmatprep.subr.bf16.mxu1 %v6297_v33  ;;  %v7615_v32 = vsel %vm5926_vm2, %v7613_v27, %v7614_v30  ;;  %v5146_v27 = vld [vmem:[#allocation6 + $0x60] ss:$16 sps:$4 sm:$0xff]   ;;  %v5149_v30 = vld [vmem:[#allocation6 + $0x68] ss:$16 sps:$4 sm:$0xff]  }
 0x64c   :  { %2831 = vmatpush1.bf16.msra.mxu0 %v6299_v34  ;;  %2872 = vmatpush1.bf16.msra.mxu1 %v6301_v35 }
 0x64d   :  { %2832 = vmatprep.subr.bf16.mxu0 %v6309_v37  ;;  %2873 = vmatprep.subr.bf16.mxu1 %v6313_v42  ;;  %v7616_v37 = vld [vmem:[#allocation37_spill] sm:$0xff] }
 0x650   :  { %2833 = vmatpush1.bf16.msra.mxu0 %v6307_v36  ;;  %2874 = vmatpush1.bf16.msra.mxu1 %v6311_v41  ;;  %v7617_v41 = vld [vmem:[#allocation18_spill] sm:$0xff] }
 0x651   :  { %2834 = vmatprep.subr.bf16.mxu0 %v6315_v45  ;;  %2875 = vmatprep.subr.bf16.mxu1 %v6318_v12  ;;  %v7618_v42 = vsel %vm5936_vm3, %v7616_v37, %v7617_v41  ;;  %v5160_v37 = vld [vmem:[#allocation6 + $0x24] ss:$16 sps:$4 sm:$0xff]   ;;  %v5161_v41 = vld [vmem:[#allocation6 + $0x28] ss:$16 sps:$4 sm:$0xff]  }
 0x654   :  { %2835 = vmatpush1.bf16.msra.mxu0 %v6323_v18  ;;  %2876 = vmatpush1.bf16.msra.mxu1 %v6325_v19 }
 0x655   :  { %2836 = vmatprep.subr.bf16.mxu0 %v6329_v58  ;;  %2877 = vmatprep.subr.bf16.mxu1 %v6331_v0 }
 0x658   :  { %2837 = vmatpush1.bf16.msra.mxu0 %v6335_v62  ;;  %2878 = vmatpush1.bf16.msra.mxu1 %v6337_v59  ;;  %v7619_v62 = vld [vmem:[#allocation38_spill] sm:$0xff]  ;;  %v7620_v59 = vld [vmem:[#allocation19_spill] sm:$0xff] }
 0x659   :  { %2838 = vmatprep.subr.bf16.mxu0 %v6341_v52  ;;  %2879 = vmatprep.subr.bf16.mxu1 %v6343_v31  ;;  %v7621_v52 = vsel %vm5944_vm5, %v7619_v62, %v7620_v59 }
 0x65c   :  { %2839 = vmatpush1.bf16.msra.mxu0 %v6347_v16  ;;  %2880 = vmatpush1.bf16.msra.mxu1 %v6349_v63  ;;  %v7622_v16 = vld [vmem:[#allocation36_spill] sm:$0xff]  ;;  %v7623_v63 = vld [vmem:[#allocation17_spill] sm:$0xff] }
 0x65d   :  { %v7624_v24 = vsel %vm5940_vm4, %v7622_v16, %v7623_v63  ;;  %3162 = vmatprep.subr.bf16.mxu0 %v5124_v10  ;;  %3235 = vmatprep.subr.bf16.mxu1 %v5127_v56 }
 0x6fe   :  { %v2541_v61 = vpop.f32.mrf.mxu0  ;;  %v2582_v26 = vpop.f32.mrf.mxu1 }
 0x6ff   :  { %v2589_v33 = vadd.f32 %v2541_v61, %v7615_v32  ;;  %v2591_v2 = vadd.f32 %v2582_v26, %v7624_v24  ;;  %v5148_v61 = vld [vmem:[#allocation6 + $0x64] ss:$16 sps:$4 sm:$0xff]   ;;  %v5151_v26 = vld [vmem:[#allocation6 + $0x6c] ss:$16 sps:$4 sm:$0xff]  }
 0x700   :  { %v2543_v34 = vpop.f32.mrf.mxu0  ;;  %v2584_v35 = vpop.f32.mrf.mxu1  ;;  %v5154_v32 = vld [vmem:[#allocation6 + $0x44] ss:$16 sps:$4 sm:$0xff]  }
 0x701   :  { %v4838_v36 = vmul.f32 -1.442695, %v2589_v33  ;;  %v2590_v45 = vadd.f32 %v2543_v34, %v7618_v42  ;;  %v2592_v31 = vadd.f32 %v2584_v35, %v7621_v52  ;;  %v5157_v33 = vld [vmem:[#allocation6 + $0x4c] ss:$16 sps:$4 sm:$0xff]   ;;  %v5152_v34 = vld [vmem:[#allocation6 + $0x40] ss:$16 sps:$4 sm:$0xff]  }
 0x702   :  { %v2545_v12 = vpop.f32.mrf.mxu0  ;;  %v2586_v18 = vpop.f32.mrf.mxu1  ;;  %v5155_v35 = vld [vmem:[#allocation6 + $0x48] ss:$16 sps:$4 sm:$0xff]   ;;  %v5163_v42 = vld [vmem:[#allocation6 + $0x2c] ss:$16 sps:$4 sm:$0xff]   ;;  %v7627_v52 = vld [vmem:[#allocation40_spill] sm:$0xff] }
 0x703   :  { %5318 = vpow2.f32 %v4838_v36  ;;  %v4839_v19 = vmul.f32 -1.442695, %v2590_v45  ;;  %v4840_v46 = vmul.f32 -1.442695, %v2592_v31  ;;  %v5158_v36 = vld [vmem:[#allocation6 + $0x20] ss:$16 sps:$4 sm:$0xff]  }
 0x704   :  { %v2546_v58 = vpop.f32.mrf.mxu0  ;;  %v2587_v0 = vpop.f32.mrf.mxu1  ;;  %v5166_v45 = vld [vmem:[#allocation6 + $0x4] ss:$16 sps:$4 sm:$0xff]   ;;  %v5169_v12 = vld [vmem:[#allocation6 + $0xc] ss:$16 sps:$4 sm:$0xff]   ;;  %v5164_v18 = vld [vmem:[#allocation6] ss:$16 sps:$4 sm:$0xff]  }
 0x705   :  { %5320 = vpow2.f32 %v4839_v19  ;;  %v5167_v19 = vld [vmem:[#allocation6 + $0x8] ss:$16 sps:$4 sm:$0xff]   ;;  %v6555_v58 = vld [vmem:[#allocation8 + $0xe4] ss:$16 sps:$4 sm:$0xff]   ;;  %v6557_v0 = vld [vmem:[#allocation8 + $0xec] ss:$16 sps:$4 sm:$0xff]  }
 0x706   :  { %5322 = vtanh.f32 %v2591_v2  ;;  %7625 = vst [vmem:[#allocation14_spill] sm:$0xff] %v6555_v58  ;;  %7626 = vst [vmem:[#allocation24_spill] sm:$0xff] %v6557_v0  ;;  %v7628_v31 = vld [vmem:[#allocation39_spill] sm:$0xff] }
 0x707   :  { %5324 = vpow2.f32 %v4840_v46  ;;  %v7629_v16 = vsel %vm5926_vm2, %v7627_v52, %v7628_v31  ;;  %v6616_v52 = vld [vmem:[#allocation8 + $0x8c] ss:$16 sps:$4 sm:$0xff]   ;;  %v6620_v31 = vld [vmem:[#allocation8 + $0x80] ss:$16 sps:$4 sm:$0xff]  }
 0x710   :  { %v5319_v38 = vpop.eup %5318 }
 0x711   :  { %v2596_v40 = vadd.f32 1.0, %v5319_v38  ;;  %v7630_v38 = vld [vmem:[#allocation44_spill] sm:$0xff] }
 0x712   :  { %v5321_v28 = vpop.eup %5320 }
 0x713   :  { %5326 = vrcp.f32 %v2596_v40  ;;  %v2602_v44 = vadd.f32 1.0, %v5321_v28  ;;  %v5323_v47 = vpop.eup %5322  ;;  %v7631_v40 = vld [vmem:[#allocation43_spill] sm:$0xff] }
 0x714   :  { %v5325_v29 = vpop.eup %5324  ;;  %v7632_v28 = vsel %vm5936_vm3, %v7630_v38, %v7631_v40  ;;  %v6634_v38 = vld [vmem:[#allocation8 + $0x60] ss:$16 sps:$4 sm:$0xff]   ;;  %v6636_v40 = vld [vmem:[#allocation8 + $0x68] ss:$16 sps:$4 sm:$0xff]  }
 0x715   :  { %5328 = vrcp.f32 %v2602_v44  ;;  %v2609_v55 = vadd.f32 1.0, %v5325_v29 }
 0x717   :  { %5330 = vrcp.f32 %v2609_v55  ;;  %v7633_v55 = vld [vmem:[#allocation45_spill] sm:$0xff] }
 0x720   :  { %v5327_v51 = vpop.eup %5326 }
 0x721   :  { %v2613_v21 = vmul.f32 %v5327_v51, %v5323_v47 }
 0x722   :  { %v5329_v43 = vpop.eup %5328 }
 0x723   :  { %v2612_v6 = vmul.f32 %v5329_v43, %v6496_v4  ;;  %v5125_v4 = vld [vmem:[#allocation6 + $0xe8] ss:$16 sps:$4 sm:$0xff]  }
 0x724   :  { %v5331_v39 = vpop.eup %5330 }
 0x725   :  { %v6548_v7 = vadd.f32 %v2613_v21, %v2612_v6  ;;  %v7634_v6 = vld [vmem:[#allocation46_spill] sm:$0xff] }
 0x727   :  { %5332 = vtanh.f32 %v6548_v7 }
 0x734   :  { %v5333_v25 = vpop.eup %5332 }
 0x735   :  { %v2616_v20 = vmul.f32 %v5333_v25, %v5331_v39  ;;  %v7635_v39 = vsel %vm5944_vm5, %v7633_v55, %v7634_v6 }
 0x737   :  { %2617 = vst.msk [vmem:[#allocation2 + $0x30] sm:$0xff] %vm713_vm6, %v2616_v20  ;;  %v2631_v9 = vpack.c.bf16 %v2616_v20, %v2616_v20 }
 0x738   :  { %2618 = vst.msk [vmem:[#allocation2 + $0x8] sm:$0xff] %vm715_vm7, %v2616_v20  ;;  %v7636_v20 = vld [vmem:[#allocation41_spill] sm:$0xff] }
 0x739   :  { %2857 = vmatmul.mubr.bf16.vlgmr.msra.gmra.mxu0 %v2631_v9  ;;  %2898 = vmatmul.mubr.bf16.vlgmr.msra.gmra.mxu1 %v2631_v9  ;;  %v7637_v9 = vld [vmem:[#allocation42_spill] sm:$0xff] }
 0x73a   :  { %3194 = vmatprep.mubr.bf16.mxu0 %v7570_v8  ;;  %3267 = vmatprep.mubr.bf16.mxu1 %v7570_v8  ;;  %v7638_v10 = vsel %vm5940_vm4, %v7636_v20, %v7637_v9  ;;  %v6666_v9 = vld [vmem:[#allocation8 + $0x4] ss:$16 sps:$4 sm:$0xff]  }
 0x73b   :  { %3163 = vmatpush1.bf16.msra.mxu0 %v5122_v57  ;;  %3236 = vmatpush1.bf16.msra.mxu1 %v5125_v4 }
 0x73c   :  { %3164 = vmatprep.subr.bf16.mxu0 %v5130_v11  ;;  %3237 = vmatprep.subr.bf16.mxu1 %v5133_v14 }
 0x73e   :  { %v2942_v6 = vld [vmem:[#allocation2 + $0x30] sm:$0xff] }
 0x73f   :  { %3165 = vmatpush1.bf16.msra.mxu0 %v5128_v17  ;;  %3238 = vmatpush1.bf16.msra.mxu1 %v5131_v48 }
 0x740   :  { %3166 = vmatprep.subr.bf16.mxu0 %v5136_v1  ;;  %3239 = vmatprep.subr.bf16.mxu1 %v5139_v54 }
 0x743   :  { %3167 = vmatpush1.bf16.msra.mxu0 %v5134_v5  ;;  %3240 = vmatpush1.bf16.msra.mxu1 %v5137_v60 }
 0x744   :  { %3168 = vmatprep.subr.bf16.mxu0 %v5142_v53  ;;  %3241 = vmatprep.subr.bf16.mxu1 %v5145_v13 }
 0x747   :  { %3169 = vmatpush1.bf16.msra.mxu0 %v5140_v22  ;;  %3242 = vmatpush1.bf16.msra.mxu1 %v5143_v23 }
 0x748   :  { %3170 = vmatprep.subr.bf16.mxu0 %v5148_v61  ;;  %3243 = vmatprep.subr.bf16.mxu1 %v5151_v26 }
 0x74b   :  { %3171 = vmatpush1.bf16.msra.mxu0 %v5146_v27  ;;  %3244 = vmatpush1.bf16.msra.mxu1 %v5149_v30  ;;  %v2937_v27 = vld [vmem:[#allocation2 + $0x8] sm:$0xff] }
 0x74c   :  { %3172 = vmatprep.subr.bf16.mxu0 %v5154_v32  ;;  %3245 = vmatprep.subr.bf16.mxu1 %v5157_v33  ;;  %v6584_v32 = vld [vmem:[#allocation8 + $0xe0] ss:$16 sps:$4 sm:$0xff]   ;;  %v6586_v33 = vld [vmem:[#allocation8 + $0xe8] ss:$16 sps:$4 sm:$0xff]  }
 0x74f   :  { %3173 = vmatpush1.bf16.msra.mxu0 %v5152_v34  ;;  %3246 = vmatpush1.bf16.msra.mxu1 %v5155_v35  ;;  %v6588_v35 = vld [vmem:[#allocation8 + $0xc4] ss:$16 sps:$4 sm:$0xff]  }
 0x750   :  { %3174 = vmatprep.subr.bf16.mxu0 %v5160_v37  ;;  %3247 = vmatprep.subr.bf16.mxu1 %v5163_v42  ;;  %v6596_v37 = vld [vmem:[#allocation8 + $0xc8] ss:$16 sps:$4 sm:$0xff]   ;;  %v6602_v42 = vld [vmem:[#allocation8 + $0xac] ss:$16 sps:$4 sm:$0xff]  }
 0x753   :  { %3175 = vmatpush1.bf16.msra.mxu0 %v5158_v36  ;;  %3248 = vmatpush1.bf16.msra.mxu1 %v5161_v41  ;;  %v6594_v36 = vld [vmem:[#allocation8 + $0xc0] ss:$16 sps:$4 sm:$0xff]   ;;  %v6600_v41 = vld [vmem:[#allocation8 + $0xa4] ss:$16 sps:$4 sm:$0xff]  }
 0x754   :  { %3176 = vmatprep.subr.bf16.mxu0 %v5166_v45  ;;  %3249 = vmatprep.subr.bf16.mxu1 %v5169_v12  ;;  %v2938_v45 = vld [vmem:[#allocation2 + $0x10] sm:$0xff]  ;;  %v2939_v12 = vld [vmem:[#allocation2 + $0x18] sm:$0xff] }
 0x757   :  { %3177 = vmatpush1.bf16.msra.mxu0 %v5164_v18  ;;  %3250 = vmatpush1.bf16.msra.mxu1 %v5167_v19  ;;  %v6608_v18 = vld [vmem:[#allocation8 + $0xa0] ss:$16 sps:$4 sm:$0xff]   ;;  %v6610_v19 = vld [vmem:[#allocation8 + $0xa8] ss:$16 sps:$4 sm:$0xff]  }
 0x758   :  { %3544 = vmatprep.subr.bf16.mxu0 %v6555_v58  ;;  %3585 = vmatprep.subr.bf16.mxu1 %v6557_v0 }
 0x7f9   :  { %v2858_v62 = vpop.f32.mrf.mxu0  ;;  %v2899_v59 = vpop.f32.mrf.mxu1 }
 0x7fa   :  { %v2906_v63 = vadd.f32 %v2858_v62, %v7629_v16  ;;  %v2908_v56 = vadd.f32 %v2899_v59, %v7638_v10  ;;  %v2945_v62 = vpack.c.bf16 %v2939_v12, %v2938_v45  ;;  %v6614_v59 = vld [vmem:[#allocation8 + $0x84] ss:$16 sps:$4 sm:$0xff]   ;;  %v6622_v16 = vld [vmem:[#allocation8 + $0x88] ss:$16 sps:$4 sm:$0xff]   ;;  %v6668_v10 = vld [vmem:[#allocation8 + $0xc] ss:$16 sps:$4 sm:$0xff]  }
 0x7fb   :  { %v2860_v24 = vpop.f32.mrf.mxu0  ;;  %v2901_v2 = vpop.f32.mrf.mxu1 }
 0x7fc   :  { %v4873_v46 = vmul.f32 -1.442695, %v2906_v63  ;;  %v2907_v44 = vadd.f32 %v2860_v24, %v7632_v28  ;;  %v2909_v25 = vadd.f32 %v2901_v2, %v7635_v39  ;;  %v6626_v63 = vld [vmem:[#allocation8 + $0x64] ss:$16 sps:$4 sm:$0xff]   ;;  %v6628_v24 = vld [vmem:[#allocation8 + $0x6c] ss:$16 sps:$4 sm:$0xff]  }
 0x7fd   :  { %v2862_v47 = vpop.f32.mrf.mxu0  ;;  %v2903_v29 = vpop.f32.mrf.mxu1  ;;  %v2941_v2 = vld [vmem:[#allocation2 + $0x28] sm:$0xff]  ;;  %v6660_v39 = vld [vmem:[#allocation8 + $0x20] ss:$16 sps:$4 sm:$0xff]  }
 0x7fe   :  { %5334 = vpow2.f32 %v4873_v46  ;;  %v4874_v51 = vmul.f32 -1.442695, %v2907_v44  ;;  %v4875_v57 = vmul.f32 -1.442695, %v2909_v25  ;;  %v2940_v46 = vld [vmem:[#allocation2 + $0x20] sm:$0xff] }
 0x7ff   :  { %v2863_v21 = vpop.f32.mrf.mxu0  ;;  %v2904_v43 = vpop.f32.mrf.mxu1  ;;  %v2946_v28 = vpack.c.bf16 %v2941_v2, %v2940_v46  ;;  %v6640_v44 = vld [vmem:[#allocation8 + $0x44] ss:$16 sps:$4 sm:$0xff]   ;;  %v6642_v47 = vld [vmem:[#allocation8 + $0x4c] ss:$16 sps:$4 sm:$0xff]   ;;  %v6646_v29 = vld [vmem:[#allocation8 + $0x40] ss:$16 sps:$4 sm:$0xff]  }
 0x800   :  { %5336 = vpow2.f32 %v4874_v51  ;;  %v6648_v51 = vld [vmem:[#allocation8 + $0x48] ss:$16 sps:$4 sm:$0xff]   ;;  %v6652_v21 = vld [vmem:[#allocation8 + $0x24] ss:$16 sps:$4 sm:$0xff]   ;;  %v6654_v43 = vld [vmem:[#allocation8 + $0x2c] ss:$16 sps:$4 sm:$0xff]  }
 0x801   :  { %5338 = vtanh.f32 %v2908_v56  ;;  %v6662_v25 = vld [vmem:[#allocation8 + $0x28] ss:$16 sps:$4 sm:$0xff]   ;;  %v6672_v56 = vld [vmem:[#allocation8] ss:$16 sps:$4 sm:$0xff]  }
 0x802   :  { %5340 = vpow2.f32 %v4875_v57  ;;  %7639 = vst [vmem:[#allocation28_spill] sm:$0xff] %v6672_v56  ;;  %v6674_v57 = vld [vmem:[#allocation8 + $0x8] ss:$16 sps:$4 sm:$0xff]  }
 0x803   :  { %7640 = vst [vmem:[#allocation26_spill] sm:$0xff] %v6674_v57 }
 0x80b   :  { %v5335_v4 = vpop.eup %5334 }
 0x80c   :  { %v2913_v11 = vadd.f32 1.0, %v5335_v4  ;;  %v2980_v4 = vld [vmem:[%s7418_s6] sm:$0xf] }
 0x80d   :  { %v5337_v14 = vpop.eup %5336 }
 0x80e   :  { %5342 = vrcp.f32 %v2913_v11  ;;  %v2919_v17 = vadd.f32 1.0, %v5337_v14  ;;  %v5339_v48 = vpop.eup %5338 }
 0x80f   :  { %v5341_v1 = vpop.eup %5340 }
 0x810   :  { %5344 = vrcp.f32 %v2919_v17  ;;  %v2926_v53 = vadd.f32 1.0, %v5341_v1  ;;  %v7641_v1 = vld [vmem:[#allocation15_spill] sm:$0xff] }
 0x812   :  { %5346 = vrcp.f32 %v2926_v53 }
 0x81b   :  { %v5343_v54 = vpop.eup %5342 }
 0x81c   :  { %v2930_v5 = vmul.f32 %v5343_v54, %v5339_v48  ;;  %v7642_v54 = vsub.s32 0, %v7641_v1 }
 0x81d   :  { %v5345_v60 = vpop.eup %5344 }
 0x81e   :  { %v2929_v13 = vmul.f32 %v5345_v60, %v6548_v7  ;;  %v6590_v7 = vld [vmem:[#allocation8 + $0xcc] ss:$16 sps:$4 sm:$0xff]   ;;  %v7643_v60 = vsub.s32 2, %v7641_v1 }
 0x81f   :  { %v5347_v23 = vpop.eup %5346 }
 0x820   :  { %v2931_v22 = vadd.f32 %v2930_v5, %v2929_v13  ;;  %v6733_v5 = vrot.slane %v2980_v4, %v7642_v54  ;;  %v6737_v53 = vrot.slane %v2980_v4, %v7643_v60 }
 0x822   :  { %5348 = vtanh.f32 %v2931_v22 }
 0x82f   :  { %v5349_v61 = vpop.eup %5348 }
 0x830   :  { %v2933_v26 = vmul.f32 %v5349_v61, %v5347_v23  ;;  %v7644_v23 = vsub.s32 1, %v7641_v1 }
 0x832   :  { %2934 = vst.msk [vmem:[#allocation2 + $0x38] sm:$0xff] %vm713_vm6, %v2933_v26  ;;  %v6741_v61 = vrot.slane %v2980_v4, %v7644_v23 }
 0x833   :  { %2935 = vst.msk [vmem:[#allocation2] sm:$0xff] %vm715_vm7, %v2933_v26  ;;  %v7645_v26 = vsub.s32 3, %v7641_v1 }
 0x839   :  { %v2943_v55 = vld [vmem:[#allocation2 + $0x38] sm:$0xff] }
 0x83a   :  { %v2936_v30 = vld [vmem:[#allocation2] sm:$0xff]  ;;  %v2947_v20 = vpack.c.bf16 %v2943_v55, %v2942_v6 }
 0x83b   :  { %v2944_v34 = vpack.c.bf16 %v2937_v27, %v2936_v30  ;;  %v6745_v27 = vrot.slane %v2980_v4, %v7645_v26 }
 0x83d   :  { %3195 = vmatmul.mubr.bf16.vlgmr.msra.gmra.mxu0 %v2944_v34  ;;  %3268 = vmatmul.mubr.bf16.vlgmr.msra.gmra.mxu1 %v2944_v34 }
 0x83e   :  { %3545 = vmatpush1.bf16.msra.mxu0 %v6584_v32  ;;  %3586 = vmatpush1.bf16.msra.mxu1 %v6586_v33 }
 0x83f   :  { %3546 = vmatprep.subr.bf16.mxu0 %v6588_v35  ;;  %3587 = vmatprep.subr.bf16.mxu1 %v6590_v7 }
 0x840   :  { %3204 = vmatprep.mubr.bf16.mxu0 %v7570_v8  ;;  %3277 = vmatprep.mubr.bf16.mxu1 %v7570_v8 }
 0x842   :  { %3547 = vmatpush1.bf16.msra.mxu0 %v6594_v36  ;;  %3588 = vmatpush1.bf16.msra.mxu1 %v6596_v37 }
 0x843   :  { %3548 = vmatprep.subr.bf16.mxu0 %v6600_v41  ;;  %3589 = vmatprep.subr.bf16.mxu1 %v6602_v42 }
 0x845   :  { %3205 = vmatmul.mubr.bf16.gmra.mxu0 %v2945_v62  ;;  %3278 = vmatmul.mubr.bf16.gmra.mxu1 %v2945_v62 }
 0x846   :  { %3549 = vmatpush1.bf16.msra.mxu0 %v6608_v18  ;;  %3590 = vmatpush1.bf16.msra.mxu1 %v6610_v19 }
 0x847   :  { %3550 = vmatprep.subr.bf16.mxu0 %v6614_v59  ;;  %3591 = vmatprep.subr.bf16.mxu1 %v6616_v52 }
 0x848   :  { %3214 = vmatprep.mubr.bf16.mxu0 %v7570_v8  ;;  %3287 = vmatprep.mubr.bf16.mxu1 %v7570_v8 }
 0x84a   :  { %3551 = vmatpush1.bf16.msra.mxu0 %v6620_v31  ;;  %3592 = vmatpush1.bf16.msra.mxu1 %v6622_v16 }
 0x84b   :  { %3552 = vmatprep.subr.bf16.mxu0 %v6626_v63  ;;  %3593 = vmatprep.subr.bf16.mxu1 %v6628_v24 }
 0x84d   :  { %3215 = vmatmul.mubr.bf16.gmra.mxu0 %v2946_v28  ;;  %3288 = vmatmul.mubr.bf16.gmra.mxu1 %v2946_v28 }
 0x84e   :  { %3553 = vmatpush1.bf16.msra.mxu0 %v6634_v38  ;;  %3594 = vmatpush1.bf16.msra.mxu1 %v6636_v40 }
 0x84f   :  { %3554 = vmatprep.subr.bf16.mxu0 %v6640_v44  ;;  %3595 = vmatprep.subr.bf16.mxu1 %v6642_v47 }
 0x850   :  { %3224 = vmatprep.mubr.bf16.mxu0 %v7570_v8  ;;  %3297 = vmatprep.mubr.bf16.mxu1 %v7570_v8 }
 0x852   :  { %3555 = vmatpush1.bf16.msra.mxu0 %v6646_v29  ;;  %3596 = vmatpush1.bf16.msra.mxu1 %v6648_v51 }
 0x853   :  { %3556 = vmatprep.subr.bf16.mxu0 %v6652_v21  ;;  %3597 = vmatprep.subr.bf16.mxu1 %v6654_v43 }
 0x855   :  { %3225 = vmatmul.mubr.bf16.gmra.mxu0 %v2947_v20  ;;  %3298 = vmatmul.mubr.bf16.gmra.mxu1 %v2947_v20 }
 0x856   :  { %3557 = vmatpush1.bf16.msra.mxu0 %v6660_v39  ;;  %3598 = vmatpush1.bf16.msra.mxu1 %v6662_v25 }
 0x857   :  { %3558 = vmatprep.subr.bf16.mxu0 %v6666_v9  ;;  %3599 = vmatprep.subr.bf16.mxu1 %v6668_v10 }
 0x858   :  { %3576 = vmatprep.mubr.bf16.mxu0 %v7570_v8  ;;  %3617 = vmatprep.mubr.bf16.mxu1 %v7570_v8 }
 0x85a   :  { %3559 = vmatpush1.bf16.msra.mxu0 %v6672_v56  ;;  %3600 = vmatpush1.bf16.msra.mxu1 %v6674_v57 }
 0x85b   :  { %3667 = vmatprep.subr.bf16.mxu0 %v6555_v58  ;;  %3708 = vmatprep.subr.bf16.mxu1 %v6557_v0 }
 0x85d   :  { %3577 = vmatmul.mubr.bf16.vlgmr.msra.gmra.mxu0 %v7570_v8  ;;  %3618 = vmatmul.mubr.bf16.vlgmr.msra.gmra.mxu1 %v7570_v8 }
 0x85e   :  { %3668 = vmatpush1.bf16.msra.mxu0 %v6584_v32  ;;  %3709 = vmatpush1.bf16.msra.mxu1 %v6586_v33 }
 0x85f   :  { %3669 = vmatprep.subr.bf16.mxu0 %v6588_v35  ;;  %3710 = vmatprep.subr.bf16.mxu1 %v6590_v7 }
 0x860   :  { %3699 = vmatprep.mubr.bf16.mxu0 %v7570_v8  ;;  %3740 = vmatprep.mubr.bf16.mxu1 %v7570_v8 }
 0x862   :  { %3670 = vmatpush1.bf16.msra.mxu0 %v6594_v36  ;;  %3711 = vmatpush1.bf16.msra.mxu1 %v6596_v37 }
 0x863   :  { %3671 = vmatprep.subr.bf16.mxu0 %v6600_v41  ;;  %3712 = vmatprep.subr.bf16.mxu1 %v6602_v42 }
 0x866   :  { %3672 = vmatpush1.bf16.msra.mxu0 %v6608_v18  ;;  %3713 = vmatpush1.bf16.msra.mxu1 %v6610_v19 }
 0x867   :  { %3673 = vmatprep.subr.bf16.mxu0 %v6614_v59  ;;  %3714 = vmatprep.subr.bf16.mxu1 %v6616_v52 }
 0x86a   :  { %3674 = vmatpush1.bf16.msra.mxu0 %v6620_v31  ;;  %3715 = vmatpush1.bf16.msra.mxu1 %v6622_v16 }
 0x86b   :  { %3675 = vmatprep.subr.bf16.mxu0 %v6626_v63  ;;  %3716 = vmatprep.subr.bf16.mxu1 %v6628_v24 }
 0x86e   :  { %3676 = vmatpush1.bf16.msra.mxu0 %v6634_v38  ;;  %3717 = vmatpush1.bf16.msra.mxu1 %v6636_v40 }
 0x86f   :  { %3677 = vmatprep.subr.bf16.mxu0 %v6640_v44  ;;  %3718 = vmatprep.subr.bf16.mxu1 %v6642_v47 }
 0x872   :  { %3678 = vmatpush1.bf16.msra.mxu0 %v6646_v29  ;;  %3719 = vmatpush1.bf16.msra.mxu1 %v6648_v51 }
 0x873   :  { %3679 = vmatprep.subr.bf16.mxu0 %v6652_v21  ;;  %3720 = vmatprep.subr.bf16.mxu1 %v6654_v43 }
 0x876   :  { %3680 = vmatpush1.bf16.msra.mxu0 %v6660_v39  ;;  %3721 = vmatpush1.bf16.msra.mxu1 %v6662_v25 }
 0x877   :  { %3681 = vmatprep.subr.bf16.mxu0 %v6666_v9  ;;  %3722 = vmatprep.subr.bf16.mxu1 %v6668_v10 }
 0x87a   :  { %3682 = vmatpush1.bf16.msra.mxu0 %v6672_v56  ;;  %3723 = vmatpush1.bf16.msra.mxu1 %v6674_v57 }
 0x87b   :  { %3790 = vmatprep.subr.bf16.mxu0 %v6555_v58  ;;  %3831 = vmatprep.subr.bf16.mxu1 %v6557_v0 }
 0x8fd   :  { %v6723_v11 = vpop.f32.mrf.mxu0  ;;  %v6725_v14 = vpop.f32.mrf.mxu1 }
 0x8ff   :  { %v6727_v17 = vpop.f32.mrf.mxu0  ;;  %v6729_v48 = vpop.f32.mrf.mxu1 }
 0x901   :  { %v3200_v13 = vpop.f32.mrf.mxu0  ;;  %v3273_v22 = vpop.f32.mrf.mxu1 }
 0x902   :  { %v6748_v30 = vadd.f32 %v3200_v13, %v6733_v5  ;;  %v6751_v34 = vadd.f32 %v3273_v22, %v6737_v53 }
 0x903   :  { %v3202_v45 = vpop.f32.mrf.mxu0  ;;  %v3275_v12 = vpop.f32.mrf.mxu1 }
 0x904   :  { %7646 = vst [vmem:[#allocation30_spill] sm:$0xff] %v6748_v30  ;;  %7647 = vst [vmem:[#allocation27_spill] sm:$0xff] %v6751_v34  ;;  %v6754_v62 = vadd.f32 %v3202_v45, %v6741_v61  ;;  %v6757_v2 = vadd.f32 %v3275_v12, %v6745_v27 }
 0x905   :  { %v3206_v46 = vpop.f32.mrf.mxu0  ;;  %v3279_v28 = vpop.f32.mrf.mxu1 }
 0x906   :  { %7648 = vst [vmem:[#allocation31_spill] sm:$0xff] %v6754_v62  ;;  %7649 = vst [vmem:[#allocation25_spill] sm:$0xff] %v6757_v2  ;;  %v6760_v55 = vadd.f32 %v3206_v46, %v6733_v5  ;;  %v6763_v6 = vadd.f32 %v3279_v28, %v6737_v53 }
 0x907   :  { %v3208_v20 = vpop.f32.mrf.mxu0  ;;  %v3281_v4 = vpop.f32.mrf.mxu1 }
 0x908   :  { %7650 = vst [vmem:[#allocation29_spill] sm:$0xff] %v6763_v6  ;;  %v6766_v1 = vadd.f32 %v3208_v20, %v6741_v61  ;;  %v6769_v54 = vadd.f32 %v3281_v4, %v6745_v27 }
 0x909   :  { %v3210_v60 = vpop.f32.mrf.mxu0  ;;  %v3283_v13 = vpop.f32.mrf.mxu1 }
 0x90a   :  { %7651 = vst [vmem:[#allocation20_spill] sm:$0xff] %v6766_v1  ;;  %7652 = vst [vmem:[#allocation33_spill] sm:$0xff] %v6769_v54  ;;  %v6772_v22 = vadd.f32 %v3210_v60, %v6733_v5  ;;  %v6775_v23 = vadd.f32 %v3283_v13, %v6737_v53 }
 0x90b   :  { %v3212_v26 = vpop.f32.mrf.mxu0  ;;  %v3285_v45 = vpop.f32.mrf.mxu1 }
 0x90c   :  { %7653 = vst [vmem:[#allocation22_spill] sm:$0xff] %v6772_v22  ;;  %7654 = vst [vmem:[#allocation34_spill] sm:$0xff] %v6775_v23  ;;  %v6778_v12 = vadd.f32 %v3212_v26, %v6741_v61  ;;  %v6781_v46 = vadd.f32 %v3285_v45, %v6745_v27 }
 0x90d   :  { %v3216_v28 = vpop.f32.mrf.mxu0  ;;  %v3289_v20 = vpop.f32.mrf.mxu1 }
 0x90e   :  { %7655 = vst [vmem:[#allocation23_spill] sm:$0xff] %v6778_v12  ;;  %7656 = vst [vmem:[#allocation32_spill] sm:$0xff] %v6781_v46  ;;  %v6784_v4 = vadd.f32 %v3216_v28, %v6733_v5  ;;  %v6787_v0 = vadd.f32 %v3289_v20, %v6737_v53 }
 0x90f   :  { %v3218_v60 = vpop.f32.mrf.mxu0  ;;  %v3291_v58 = vpop.f32.mrf.mxu1 }
 0x910   :  { %7657 = vst [vmem:[#allocation21_spill] sm:$0xff] %v6784_v4  ;;  %7658 = vst [vmem:[#allocation35_spill] sm:$0xff] %v6787_v0  ;;  %v6790_v13 = vadd.f32 %v3218_v60, %v6741_v61  ;;  %v6793_v57 = vadd.f32 %v3291_v58, %v6745_v27 }
 0x911   :  { %v3220_v28 = vpop.f32.mrf.mxu0  ;;  %v3293_v20 = vpop.f32.mrf.mxu1 }
 0x912   :  { %7659 = vst [vmem:[#allocation16_spill] sm:$0xff] %v6790_v13  ;;  %7660 = vst [vmem:[#allocation37_spill] sm:$0xff] %v6793_v57  ;;  %v6812_v56 = vadd.f32 %v3220_v28, %v6733_v5  ;;  %v6815_v26 = vadd.f32 %v3293_v20, %v6737_v53  ;;  %v6893_v13 = vadd.f32 %v6723_v11, %v6733_v5 }
 0x913   :  { %v3222_v4 = vpop.f32.mrf.mxu0  ;;  %v3295_v22 = vpop.f32.mrf.mxu1  ;;  %v6931_v11 = vadd.f32 %v6727_v17, %v6741_v61 }
 0x914   :  { %7661 = vst [vmem:[#allocation18_spill] sm:$0xff] %v6815_v26  ;;  %v6834_v58 = vadd.f32 %v3222_v4, %v6741_v61  ;;  %v6837_v45 = vadd.f32 %v3295_v22, %v6745_v27  ;;  %7668 = vst [vmem:[#allocation44_spill] sm:$0xff] %v6893_v13  ;;  %v6919_v26 = vadd.f32 %v6725_v14, %v6737_v53 }
 0x915   :  { %v3226_v0 = vpop.f32.mrf.mxu0  ;;  %v3299_v23 = vpop.f32.mrf.mxu1  ;;  %7672 = vst [vmem:[#allocation41_spill] sm:$0xff] %v6931_v11 }
 0x916   :  { %7662 = vst [vmem:[#allocation38_spill] sm:$0xff] %v6834_v58  ;;  %7663 = vst [vmem:[#allocation19_spill] sm:$0xff] %v6837_v45  ;;  %v6856_v20 = vadd.f32 %v3226_v0, %v6733_v5  ;;  %v6859_v60 = vadd.f32 %v3299_v23, %v6737_v53 }
 0x917   :  { %v3228_v57 = vpop.f32.mrf.mxu0  ;;  %v3301_v46 = vpop.f32.mrf.mxu1  ;;  %7671 = vst [vmem:[#allocation46_spill] sm:$0xff] %v6919_v26 }
 0x918   :  { %7664 = vst [vmem:[#allocation36_spill] sm:$0xff] %v6856_v20  ;;  %7665 = vst [vmem:[#allocation17_spill] sm:$0xff] %v6859_v60  ;;  %v6878_v22 = vadd.f32 %v3228_v57, %v6741_v61  ;;  %v6881_v28 = vadd.f32 %v3301_v46, %v6745_v27 }
 0x919   :  { %v3230_v23 = vpop.f32.mrf.mxu0  ;;  %v3303_v57 = vpop.f32.mrf.mxu1 }
 0x91a   :  { %7666 = vst [vmem:[#allocation40_spill] sm:$0xff] %v6878_v22  ;;  %7667 = vst [vmem:[#allocation39_spill] sm:$0xff] %v6881_v28  ;;  %v6904_v12 = vadd.f32 %v3230_v23, %v6733_v5  ;;  %v6907_v0 = vadd.f32 %v3303_v57, %v6737_v53  ;;  %v6945_v23 = vadd.f32 %v6729_v48, %v6745_v27 }
 0x91b   :  { %v3232_v4 = vpop.f32.mrf.mxu0  ;;  %v3305_v5 = vpop.f32.mrf.mxu1 }
 0x91c   :  { %7669 = vst [vmem:[#allocation43_spill] sm:$0xff] %v6904_v12  ;;  %7670 = vst [vmem:[#allocation45_spill] sm:$0xff] %v6907_v0  ;;  %v6934_v46 = vadd.f32 %v3232_v4, %v6741_v61  ;;  %v6937_v14 = vadd.f32 %v3305_v5, %v6745_v27  ;;  %v3348_v53 = vsel %vm5926_vm2, %v6893_v13, %v6904_v12 }
 0x91d   :  { %7675 = vst [vmem:[#allocation47_spill] sm:$0xff] %v6945_v23  ;;  %v3578_v57 = vpop.f32.mrf.mxu0  ;;  %v3619_v6 = vpop.f32.mrf.mxu1  ;;  %v3350_v17 = vsel %vm5940_vm4, %v6919_v26, %v6907_v0 }
 0x91e   :  { %7673 = vst [vmem:[#allocation42_spill] sm:$0xff] %v6934_v46  ;;  %7674 = vst [vmem:[#allocation15_spill] sm:$0xff] %v6937_v14  ;;  %v3626_v4 = vadd.f32 %v3578_v57, %v3348_v53  ;;  %v3349_v5 = vsel %vm5936_vm3, %v6931_v11, %v6934_v46  ;;  %v3351_v1 = vsel %vm5944_vm5, %v6945_v23, %v6937_v14 }
 0x91f   :  { %v3580_v48 = vpop.f32.mrf.mxu0  ;;  %v3621_v27 = vpop.f32.mrf.mxu1 }
 0x920   :  { %v4940_v13 = vmul.f32 -1.442695, %v3626_v4  ;;  %v3627_v61 = vadd.f32 %v3580_v48, %v3349_v5  ;;  %v3629_v45 = vadd.f32 %v3621_v27, %v3351_v1  ;;  %v3628_v48 = vadd.f32 %v3619_v6, %v3350_v17 }
 0x921   :  { %v3582_v57 = vpop.f32.mrf.mxu0  ;;  %v3623_v53 = vpop.f32.mrf.mxu1 }
 0x922   :  { %5350 = vpow2.f32 %v4940_v13  ;;  %v4941_v12 = vmul.f32 -1.442695, %v3627_v61  ;;  %v4942_v4 = vmul.f32 -1.442695, %v3629_v45 }
 0x923   :  { %v3583_v54 = vpop.f32.mrf.mxu0  ;;  %v3624_v58 = vpop.f32.mrf.mxu1  ;;  %v7740_v15 = vld [vmem:[#allocation45_spill] sm:$0xff] }
 0x924   :  { %5352 = vpow2.f32 %v4941_v12 }
 0x925   :  { %5354 = vpow2.f32 %v4942_v4  ;;  %v7737_v3 = vld [vmem:[#allocation15_spill] sm:$0xff] }
 0x92f   :  { %v5351_v5 = vpop.eup %5350 }
 0x930   :  { %v3633_v57 = vadd.f32 1.0, %v5351_v5  ;;  %v7677_v5 = vld [vmem:[#allocation26_spill] sm:$0xff] }
 0x931   :  { %v5353_v13 = vpop.eup %5352 }
 0x932   :  { %5356 = vrcp.f32 %v3633_v57  ;;  %v3639_v54 = vadd.f32 1.0, %v5353_v13  ;;  %v5355_v12 = vpop.eup %5354  ;;  %v7679_v57 = vld [vmem:[#allocation24_spill] sm:$0xff] }
 0x933   :  { %5358 = vtanh.f32 %v3628_v48  ;;  %v3646_v1 = vadd.f32 1.0, %v5355_v12  ;;  %v7678_v48 = vld [vmem:[#allocation14_spill] sm:$0xff]  ;;  %v7680_v12 = vsel %vm5926_vm2, %v6748_v30, %v6856_v20 }
 0x934   :  { %5360 = vrcp.f32 %v3639_v54 }
 0x935   :  { %5362 = vrcp.f32 %v3646_v1 }
 0x93f   :  { %v5357_v58 = vpop.eup %5356 }
 0x940   :  { %v5359_v61 = vpop.eup %5358 }
 0x941   :  { %v5361_v53 = vpop.eup %5360  ;;  %v3650_v23 = vmul.f32 %v5359_v61, %v5357_v58 }
 0x942   :  { %v3649_v27 = vmul.f32 0.0, %v5361_v53  ;;  %v5363_v6 = vpop.eup %5362 }
 0x944   :  { %v6975_v14 = vadd.f32 %v3650_v23, %v3649_v27  ;;  %v7676_v23 = vld [vmem:[#allocation28_spill] sm:$0xff]  ;;  %v7681_v27 = vsel %vm5936_vm3, %v6754_v62, %v6878_v22 }
 0x946   :  { %5364 = vtanh.f32 %v6975_v14 }
 0x953   :  { %v5365_v45 = vpop.eup %5364 }
 0x954   :  { %v3653_v17 = vmul.f32 %v5365_v45, %v5363_v6 }
 0x956   :  { %v3666_v4 = vpack.c.bf16 %v3653_v17, %v3653_v17 }
 0x958   :  { %3700 = vmatmul.mubr.bf16.vlgmr.msra.gmra.mxu0 %v3666_v4  ;;  %3741 = vmatmul.mubr.bf16.vlgmr.msra.gmra.mxu1 %v3666_v4 }
 0x959   :  { %3791 = vmatpush1.bf16.msra.mxu0 %v6584_v32  ;;  %3832 = vmatpush1.bf16.msra.mxu1 %v6586_v33 }
 0x95a   :  { %3792 = vmatprep.subr.bf16.mxu0 %v6588_v35  ;;  %3833 = vmatprep.subr.bf16.mxu1 %v6590_v7 }
 0x95b   :  { %3822 = vmatprep.mubr.bf16.mxu0 %v7570_v8  ;;  %3863 = vmatprep.mubr.bf16.mxu1 %v7570_v8 }
 0x95d   :  { %3793 = vmatpush1.bf16.msra.mxu0 %v6594_v36  ;;  %3834 = vmatpush1.bf16.msra.mxu1 %v6596_v37 }
 0x95e   :  { %3794 = vmatprep.subr.bf16.mxu0 %v6600_v41  ;;  %3835 = vmatprep.subr.bf16.mxu1 %v6602_v42 }
 0x961   :  { %3795 = vmatpush1.bf16.msra.mxu0 %v6608_v18  ;;  %3836 = vmatpush1.bf16.msra.mxu1 %v6610_v19 }
 0x962   :  { %3796 = vmatprep.subr.bf16.mxu0 %v6614_v59  ;;  %3837 = vmatprep.subr.bf16.mxu1 %v6616_v52 }
 0x965   :  { %3797 = vmatpush1.bf16.msra.mxu0 %v6620_v31  ;;  %3838 = vmatpush1.bf16.msra.mxu1 %v6622_v16 }
 0x966   :  { %3798 = vmatprep.subr.bf16.mxu0 %v6626_v63  ;;  %3839 = vmatprep.subr.bf16.mxu1 %v6628_v24 }
 0x969   :  { %3799 = vmatpush1.bf16.msra.mxu0 %v6634_v38  ;;  %3840 = vmatpush1.bf16.msra.mxu1 %v6636_v40 }
 0x96a   :  { %3800 = vmatprep.subr.bf16.mxu0 %v6640_v44  ;;  %3841 = vmatprep.subr.bf16.mxu1 %v6642_v47 }
 0x96d   :  { %3801 = vmatpush1.bf16.msra.mxu0 %v6646_v29  ;;  %3842 = vmatpush1.bf16.msra.mxu1 %v6648_v51 }
 0x96e   :  { %3802 = vmatprep.subr.bf16.mxu0 %v6652_v21  ;;  %3843 = vmatprep.subr.bf16.mxu1 %v6654_v43 }
 0x971   :  { %3803 = vmatpush1.bf16.msra.mxu0 %v6660_v39  ;;  %3844 = vmatpush1.bf16.msra.mxu1 %v6662_v25 }
 0x972   :  { %3804 = vmatprep.subr.bf16.mxu0 %v6666_v9  ;;  %3845 = vmatprep.subr.bf16.mxu1 %v6668_v10 }
 0x975   :  { %3805 = vmatpush1.bf16.msra.mxu0 %v7676_v23  ;;  %3846 = vmatpush1.bf16.msra.mxu1 %v7677_v5 }
 0x976   :  { %3913 = vmatprep.subr.bf16.mxu0 %v7678_v48  ;;  %3954 = vmatprep.subr.bf16.mxu1 %v7679_v57 }
 0xa18   :  { %v3701_v13 = vpop.f32.mrf.mxu0  ;;  %v3742_v54 = vpop.f32.mrf.mxu1 }
 0xa19   :  { %v3749_v58 = vadd.f32 %v3701_v13, %v7680_v12  ;;  %v7682_v13 = vsel %vm5944_vm5, %v6757_v2, %v6881_v28 }
 0xa1a   :  { %v3703_v61 = vpop.f32.mrf.mxu0  ;;  %v3744_v53 = vpop.f32.mrf.mxu1 }
 0xa1b   :  { %v4943_v1 = vmul.f32 -1.442695, %v3749_v58  ;;  %v3750_v6 = vadd.f32 %v3703_v61, %v7681_v27  ;;  %v3752_v12 = vadd.f32 %v3744_v53, %v7682_v13  ;;  %v7683_v58 = vsel %vm5940_vm4, %v6751_v34, %v6859_v60  ;;  %v7692_v60 = vld [vmem:[#allocation18_spill] sm:$0xff] }
 0xa1c   :  { %v3705_v45 = vpop.f32.mrf.mxu0  ;;  %v3746_v17 = vpop.f32.mrf.mxu1  ;;  %v3751_v11 = vadd.f32 %v3742_v54, %v7683_v58 }
 0xa1d   :  { %5366 = vpow2.f32 %v4943_v1  ;;  %v4944_v4 = vmul.f32 -1.442695, %v3750_v6  ;;  %v4945_v61 = vmul.f32 -1.442695, %v3752_v12 }
 0xa1e   :  { %v3706_v26 = vpop.f32.mrf.mxu0  ;;  %v3747_v0 = vpop.f32.mrf.mxu1 }
 0xa1f   :  { %5368 = vpow2.f32 %v4944_v4 }
 0xa20   :  { %5370 = vtanh.f32 %v3751_v11 }
 0xa21   :  { %5372 = vpow2.f32 %v4945_v61  ;;  %v7684_v61 = vsel %vm5926_vm2, %v6760_v55, %v6812_v56 }
 0xa2a   :  { %v5367_v27 = vpop.eup %5366 }
 0xa2b   :  { %v3756_v45 = vadd.f32 1.0, %v5367_v27 }
 0xa2c   :  { %v5369_v1 = vpop.eup %5368 }
 0xa2d   :  { %5374 = vrcp.f32 %v3756_v45  ;;  %v3762_v26 = vadd.f32 1.0, %v5369_v1  ;;  %v5371_v0 = vpop.eup %5370 }
 0xa2e   :  { %v5373_v6 = vpop.eup %5372 }
 0xa2f   :  { %5376 = vrcp.f32 %v3762_v26  ;;  %v3769_v13 = vadd.f32 1.0, %v5373_v6  ;;  %v7686_v6 = vld [vmem:[#allocation38_spill] sm:$0xff] }
 0xa31   :  { %5378 = vrcp.f32 %v3769_v13 }
 0xa3a   :  { %v5375_v17 = vpop.eup %5374 }
 0xa3b   :  { %v3773_v4 = vmul.f32 %v5375_v17, %v5371_v0  ;;  %v7685_v0 = vld [vmem:[#allocation20_spill] sm:$0xff] }
 0xa3c   :  { %v5377_v53 = vpop.eup %5376  ;;  %v7687_v17 = vsel %vm5936_vm3, %v7685_v0, %v7686_v6 }
 0xa3d   :  { %v3772_v46 = vmul.f32 %v5377_v53, %v6975_v14 }
 0xa3e   :  { %v5379_v54 = vpop.eup %5378 }
 0xa3f   :  { %v7033_v2 = vadd.f32 %v3773_v4, %v3772_v46 }
 0xa41   :  { %5380 = vtanh.f32 %v7033_v2 }
 0xa4e   :  { %v5381_v11 = vpop.eup %5380 }
 0xa4f   :  { %v3776_v12 = vmul.f32 %v5381_v11, %v5379_v54 }
 0xa51   :  { %v3789_v58 = vpack.c.bf16 %v3776_v12, %v3776_v12 }
 0xa53   :  { %3823 = vmatmul.mubr.bf16.vlgmr.msra.gmra.mxu0 %v3789_v58  ;;  %3864 = vmatmul.mubr.bf16.vlgmr.msra.gmra.mxu1 %v3789_v58  ;;  %v7688_v58 = vld [vmem:[#allocation33_spill] sm:$0xff] }
 0xa54   :  { %3914 = vmatpush1.bf16.msra.mxu0 %v6584_v32  ;;  %3955 = vmatpush1.bf16.msra.mxu1 %v6586_v33 }
 0xa55   :  { %3915 = vmatprep.subr.bf16.mxu0 %v6588_v35  ;;  %3956 = vmatprep.subr.bf16.mxu1 %v6590_v7 }
 0xa56   :  { %3945 = vmatprep.mubr.bf16.mxu0 %v7570_v8  ;;  %3986 = vmatprep.mubr.bf16.mxu1 %v7570_v8 }
 0xa58   :  { %3916 = vmatpush1.bf16.msra.mxu0 %v6594_v36  ;;  %3957 = vmatpush1.bf16.msra.mxu1 %v6596_v37 }
 0xa59   :  { %3917 = vmatprep.subr.bf16.mxu0 %v6600_v41  ;;  %3958 = vmatprep.subr.bf16.mxu1 %v6602_v42 }
 0xa5c   :  { %3918 = vmatpush1.bf16.msra.mxu0 %v6608_v18  ;;  %3959 = vmatpush1.bf16.msra.mxu1 %v6610_v19 }
 0xa5d   :  { %3919 = vmatprep.subr.bf16.mxu0 %v6614_v59  ;;  %3960 = vmatprep.subr.bf16.mxu1 %v6616_v52 }
 0xa60   :  { %3920 = vmatpush1.bf16.msra.mxu0 %v6620_v31  ;;  %3961 = vmatpush1.bf16.msra.mxu1 %v6622_v16 }
 0xa61   :  { %3921 = vmatprep.subr.bf16.mxu0 %v6626_v63  ;;  %3962 = vmatprep.subr.bf16.mxu1 %v6628_v24 }
 0xa64   :  { %3922 = vmatpush1.bf16.msra.mxu0 %v6634_v38  ;;  %3963 = vmatpush1.bf16.msra.mxu1 %v6636_v40 }
 0xa65   :  { %3923 = vmatprep.subr.bf16.mxu0 %v6640_v44  ;;  %3964 = vmatprep.subr.bf16.mxu1 %v6642_v47 }
 0xa68   :  { %3924 = vmatpush1.bf16.msra.mxu0 %v6646_v29  ;;  %3965 = vmatpush1.bf16.msra.mxu1 %v6648_v51 }
 0xa69   :  { %3925 = vmatprep.subr.bf16.mxu0 %v6652_v21  ;;  %3966 = vmatprep.subr.bf16.mxu1 %v6654_v43 }
 0xa6c   :  { %3926 = vmatpush1.bf16.msra.mxu0 %v6660_v39  ;;  %3967 = vmatpush1.bf16.msra.mxu1 %v6662_v25 }
 0xa6d   :  { %3927 = vmatprep.subr.bf16.mxu0 %v6666_v9  ;;  %3968 = vmatprep.subr.bf16.mxu1 %v6668_v10 }
 0xa70   :  { %3928 = vmatpush1.bf16.msra.mxu0 %v7676_v23  ;;  %3969 = vmatpush1.bf16.msra.mxu1 %v7677_v5 }
 0xa71   :  { %4028 = vmatprep.subr.bf16.mxu0 %v7678_v48  ;;  %4069 = vmatprep.subr.bf16.mxu1 %v7679_v57 }
 0xb13   :  { %v3824_v46 = vpop.f32.mrf.mxu0  ;;  %v3865_v14 = vpop.f32.mrf.mxu1 }
 0xb14   :  { %v3872_v27 = vadd.f32 %v3824_v46, %v7684_v61  ;;  %v7689_v46 = vld [vmem:[#allocation19_spill] sm:$0xff] }
 0xb15   :  { %v3826_v45 = vpop.f32.mrf.mxu0  ;;  %v3867_v1 = vpop.f32.mrf.mxu1  ;;  %v7690_v61 = vsel %vm5944_vm5, %v7688_v58, %v7689_v46 }
 0xb16   :  { %v4946_v26 = vmul.f32 -1.442695, %v3872_v27  ;;  %v3873_v4 = vadd.f32 %v3826_v45, %v7687_v17  ;;  %v3875_v34 = vadd.f32 %v3867_v1, %v7690_v61  ;;  %v7691_v27 = vld [vmem:[#allocation29_spill] sm:$0xff] }
 0xb17   :  { %v3828_v53 = vpop.f32.mrf.mxu0  ;;  %v3869_v13 = vpop.f32.mrf.mxu1  ;;  %v7693_v28 = vsel %vm5940_vm4, %v7691_v27, %v7692_v60  ;;  %v7704_v27 = vld [vmem:[#allocation35_spill] sm:$0xff] }
 0xb18   :  { %5382 = vpow2.f32 %v4946_v26  ;;  %v4947_v54 = vmul.f32 -1.442695, %v3873_v4  ;;  %v3874_v62 = vadd.f32 %v3865_v14, %v7693_v28  ;;  %v4948_v45 = vmul.f32 -1.442695, %v3875_v34 }
 0xb19   :  { %v3829_v11 = vpop.f32.mrf.mxu0  ;;  %v3870_v12 = vpop.f32.mrf.mxu1 }
 0xb1a   :  { %5384 = vpow2.f32 %v4947_v54 }
 0xb1b   :  { %5386 = vtanh.f32 %v3874_v62 }
 0xb1c   :  { %5388 = vpow2.f32 %v4948_v45  ;;  %v7694_v45 = vld [vmem:[#allocation22_spill] sm:$0xff] }
 0xb25   :  { %v5383_v17 = vpop.eup %5382 }
 0xb26   :  { %v3879_v53 = vadd.f32 1.0, %v5383_v17  ;;  %v7695_v17 = vld [vmem:[#allocation21_spill] sm:$0xff] }
 0xb27   :  { %v5385_v26 = vpop.eup %5384 }
 0xb28   :  { %5390 = vrcp.f32 %v3879_v53  ;;  %v3885_v4 = vadd.f32 1.0, %v5385_v26  ;;  %v5387_v13 = vpop.eup %5386  ;;  %v7696_v53 = vsel %vm5926_vm2, %v7694_v45, %v7695_v17 }
 0xb29   :  { %v5389_v54 = vpop.eup %5388 }
 0xb2a   :  { %5392 = vrcp.f32 %v3885_v4  ;;  %v3892_v61 = vadd.f32 1.0, %v5389_v54 }
 0xb2c   :  { %5394 = vrcp.f32 %v3892_v61 }
 0xb35   :  { %v5391_v11 = vpop.eup %5390 }
 0xb36   :  { %v3896_v12 = vmul.f32 %v5391_v11, %v5387_v13  ;;  %v7697_v11 = vld [vmem:[#allocation23_spill] sm:$0xff] }
 0xb37   :  { %v5393_v1 = vpop.eup %5392 }
 0xb38   :  { %v3895_v22 = vmul.f32 %v5393_v1, %v7033_v2 }
 0xb39   :  { %v5395_v34 = vpop.eup %5394 }
 0xb3a   :  { %v7091_v30 = vadd.f32 %v3896_v12, %v3895_v22  ;;  %v7698_v12 = vld [vmem:[#allocation16_spill] sm:$0xff] }
 0xb3b   :  { %v7699_v1 = vsel %vm5936_vm3, %v7697_v11, %v7698_v12 }
 0xb3c   :  { %5396 = vtanh.f32 %v7091_v30 }
 0xb49   :  { %v5397_v62 = vpop.eup %5396 }
 0xb4a   :  { %v3899_v28 = vmul.f32 %v5397_v62, %v5395_v34 }
 0xb4c   :  { %v3912_v14 = vpack.c.bf16 %v3899_v28, %v3899_v28 }
 0xb4e   :  { %3946 = vmatmul.mubr.bf16.vlgmr.msra.gmra.mxu0 %v3912_v14  ;;  %3987 = vmatmul.mubr.bf16.vlgmr.msra.gmra.mxu1 %v3912_v14  ;;  %v7700_v14 = vld [vmem:[#allocation32_spill] sm:$0xff] }
 0xb4f   :  { %4029 = vmatpush1.bf16.msra.mxu0 %v6584_v32  ;;  %4070 = vmatpush1.bf16.msra.mxu1 %v6586_v33 }
 0xb50   :  { %4030 = vmatprep.subr.bf16.mxu0 %v6588_v35  ;;  %4071 = vmatprep.subr.bf16.mxu1 %v6590_v7 }
 0xb51   :  { %4060 = vmatprep.mubr.bf16.mxu0 %v7570_v8  ;;  %4101 = vmatprep.mubr.bf16.mxu1 %v7570_v8 }
 0xb53   :  { %4031 = vmatpush1.bf16.msra.mxu0 %v6594_v36  ;;  %4072 = vmatpush1.bf16.msra.mxu1 %v6596_v37 }
 0xb54   :  { %4032 = vmatprep.subr.bf16.mxu0 %v6600_v41  ;;  %4073 = vmatprep.subr.bf16.mxu1 %v6602_v42 }
 0xb57   :  { %4033 = vmatpush1.bf16.msra.mxu0 %v6608_v18  ;;  %4074 = vmatpush1.bf16.msra.mxu1 %v6610_v19 }
 0xb58   :  { %4034 = vmatprep.subr.bf16.mxu0 %v6614_v59  ;;  %4075 = vmatprep.subr.bf16.mxu1 %v6616_v52 }
 0xb5b   :  { %4035 = vmatpush1.bf16.msra.mxu0 %v6620_v31  ;;  %4076 = vmatpush1.bf16.msra.mxu1 %v6622_v16 }
 0xb5c   :  { %4036 = vmatprep.subr.bf16.mxu0 %v6626_v63  ;;  %4077 = vmatprep.subr.bf16.mxu1 %v6628_v24 }
 0xb5f   :  { %4037 = vmatpush1.bf16.msra.mxu0 %v6634_v38  ;;  %4078 = vmatpush1.bf16.msra.mxu1 %v6636_v40 }
 0xb60   :  { %4038 = vmatprep.subr.bf16.mxu0 %v6640_v44  ;;  %4079 = vmatprep.subr.bf16.mxu1 %v6642_v47 }
 0xb63   :  { %4039 = vmatpush1.bf16.msra.mxu0 %v6646_v29  ;;  %4080 = vmatpush1.bf16.msra.mxu1 %v6648_v51 }
 0xb64   :  { %4040 = vmatprep.subr.bf16.mxu0 %v6652_v21  ;;  %4081 = vmatprep.subr.bf16.mxu1 %v6654_v43 }
 0xb67   :  { %4041 = vmatpush1.bf16.msra.mxu0 %v6660_v39  ;;  %4082 = vmatpush1.bf16.msra.mxu1 %v6662_v25 }
 0xb68   :  { %4042 = vmatprep.subr.bf16.mxu0 %v6666_v9  ;;  %4083 = vmatprep.subr.bf16.mxu1 %v6668_v10 }
 0xb6b   :  { %4043 = vmatpush1.bf16.msra.mxu0 %v7676_v23  ;;  %4084 = vmatpush1.bf16.msra.mxu1 %v7677_v5 }
 0xb6c   :  { %4143 = vmatprep.subr.bf16.mxu0 %v7678_v48  ;;  %4184 = vmatprep.subr.bf16.mxu1 %v7679_v57 }
 0xc0e   :  { %v3947_v2 = vpop.f32.mrf.mxu0  ;;  %v3988_v22 = vpop.f32.mrf.mxu1 }
 0xc0f   :  { %v3995_v26 = vadd.f32 %v3947_v2, %v7696_v53  ;;  %v7701_v2 = vld [vmem:[#allocation37_spill] sm:$0xff] }
 0xc10   :  { %v3949_v4 = vpop.f32.mrf.mxu0  ;;  %v3990_v13 = vpop.f32.mrf.mxu1  ;;  %v7702_v53 = vsel %vm5944_vm5, %v7700_v14, %v7701_v2 }
 0xc11   :  { %v4949_v54 = vmul.f32 -1.442695, %v3995_v26  ;;  %v3996_v61 = vadd.f32 %v3949_v4, %v7699_v1  ;;  %v3998_v20 = vadd.f32 %v3990_v13, %v7702_v53  ;;  %v7703_v26 = vld [vmem:[#allocation34_spill] sm:$0xff] }
 0xc12   :  { %v3951_v48 = vpop.f32.mrf.mxu0  ;;  %v3992_v34 = vpop.f32.mrf.mxu1  ;;  %v7705_v60 = vsel %vm5940_vm4, %v7703_v26, %v7704_v27 }
 0xc13   :  { %5398 = vpow2.f32 %v4949_v54  ;;  %v4950_v57 = vmul.f32 -1.442695, %v3996_v61  ;;  %v3997_v58 = vadd.f32 %v3988_v22, %v7705_v60  ;;  %v4951_v4 = vmul.f32 -1.442695, %v3998_v20 }
 0xc14   :  { %v3952_v62 = vpop.f32.mrf.mxu0  ;;  %v3993_v28 = vpop.f32.mrf.mxu1 }
 0xc15   :  { %5400 = vpow2.f32 %v4950_v57 }
 0xc16   :  { %5402 = vtanh.f32 %v3997_v58 }
 0xc17   :  { %5404 = vpow2.f32 %v4951_v4  ;;  %v7228_v4 = vld [vmem:[#allocation8 + $0xc0] ss:$16 sps:$4 sm:$0xff]  }
 0xc20   :  { %v5399_v1 = vpop.eup %5398 }
 0xc21   :  { %v4002_v48 = vadd.f32 1.0, %v5399_v1  ;;  %v7231_v1 = vld [vmem:[#allocation8 + $0xc8] ss:$16 sps:$4 sm:$0xff]  }
 0xc22   :  { %v5401_v54 = vpop.eup %5400 }
 0xc23   :  { %5406 = vrcp.f32 %v4002_v48  ;;  %v4008_v61 = vadd.f32 1.0, %v5401_v54  ;;  %v5403_v34 = vpop.eup %5402  ;;  %v7234_v48 = vld [vmem:[#allocation8 + $0xa4] ss:$16 sps:$4 sm:$0xff]   ;;  %v7237_v54 = vld [vmem:[#allocation8 + $0xac] ss:$16 sps:$4 sm:$0xff]  }
 0xc24   :  { %v5405_v57 = vpop.eup %5404 }
 0xc25   :  { %5408 = vrcp.f32 %v4008_v61  ;;  %v4015_v53 = vadd.f32 1.0, %v5405_v57  ;;  %v7240_v61 = vld [vmem:[#allocation8 + $0xa0] ss:$16 sps:$4 sm:$0xff]   ;;  %v7246_v57 = vld [vmem:[#allocation8 + $0x84] ss:$16 sps:$4 sm:$0xff]  }
 0xc27   :  { %5410 = vrcp.f32 %v4015_v53  ;;  %v7258_v53 = vld [vmem:[#allocation8 + $0x64] ss:$16 sps:$4 sm:$0xff]  }
 0xc30   :  { %v5407_v62 = vpop.eup %5406 }
 0xc31   :  { %v4019_v28 = vmul.f32 %v5407_v62, %v5403_v34  ;;  %v7243_v34 = vld [vmem:[#allocation8 + $0xa8] ss:$16 sps:$4 sm:$0xff]   ;;  %v7249_v62 = vld [vmem:[#allocation8 + $0x8c] ss:$16 sps:$4 sm:$0xff]  }
 0xc32   :  { %v5409_v13 = vpop.eup %5408 }
 0xc33   :  { %v4018_v46 = vmul.f32 %v5409_v13, %v7091_v30  ;;  %v7255_v13 = vld [vmem:[#allocation8 + $0x88] ss:$16 sps:$4 sm:$0xff]  }
 0xc34   :  { %v5411_v60 = vpop.eup %5410 }
 0xc35   :  { %v7149_v0 = vadd.f32 %v4019_v28, %v4018_v46  ;;  %v7252_v28 = vld [vmem:[#allocation8 + $0x80] ss:$16 sps:$4 sm:$0xff]  }
 0xc37   :  { %5412 = vtanh.f32 %v7149_v0 }
 0xc44   :  { %v5413_v20 = vpop.eup %5412 }
 0xc45   :  { %v4022_v58 = vmul.f32 %v5413_v20, %v5411_v60  ;;  %v7261_v60 = vld [vmem:[#allocation8 + $0x6c] ss:$16 sps:$4 sm:$0xff]   ;;  %v7264_v20 = vld [vmem:[#allocation8 + $0x60] ss:$16 sps:$4 sm:$0xff]  }
 0xc47   :  { %v4027_v22 = vpack.c.bf16 %v4022_v58, %v4022_v58  ;;  %v7267_v58 = vld [vmem:[#allocation8 + $0x68] ss:$16 sps:$4 sm:$0xff]  }
 0xc49   :  { %4061 = vmatmul.mubr.bf16.vlgmr.msra.gmra.mxu0 %v4027_v22  ;;  %4102 = vmatmul.mubr.bf16.vlgmr.msra.gmra.mxu1 %v4027_v22  ;;  %v7270_v22 = vld [vmem:[#allocation8 + $0x44] ss:$16 sps:$4 sm:$0xff]  }
 0xc4a   :  { %4144 = vmatpush1.bf16.msra.mxu0 %v6584_v32  ;;  %4185 = vmatpush1.bf16.msra.mxu1 %v6586_v33  ;;  %v7184_v32 = vld [vmem:[#allocation8 + $0xe4] ss:$16 sps:$4 sm:$0xff]   ;;  %v7187_v33 = vld [vmem:[#allocation8 + $0xec] ss:$16 sps:$4 sm:$0xff]  }
 0xc4b   :  { %4145 = vmatprep.subr.bf16.mxu0 %v6588_v35  ;;  %4186 = vmatprep.subr.bf16.mxu1 %v6590_v7 }
 0xc4c   :  { %4175 = vmatprep.mubr.bf16.mxu0 %v7570_v8  ;;  %4216 = vmatprep.mubr.bf16.mxu1 %v7570_v8 }
 0xc4e   :  { %4146 = vmatpush1.bf16.msra.mxu0 %v6594_v36  ;;  %4187 = vmatpush1.bf16.msra.mxu1 %v6596_v37  ;;  %v7706_v36 = vsel %vm5926_vm2, %v7695_v17, %v7694_v45 }
 0xc4f   :  { %4147 = vmatprep.subr.bf16.mxu0 %v6600_v41  ;;  %4188 = vmatprep.subr.bf16.mxu1 %v6602_v42 }
 0xc52   :  { %4148 = vmatpush1.bf16.msra.mxu0 %v6608_v18  ;;  %4189 = vmatpush1.bf16.msra.mxu1 %v6610_v19  ;;  %v7707_v19 = vsel %vm5936_vm3, %v7698_v12, %v7697_v11 }
 0xc53   :  { %4149 = vmatprep.subr.bf16.mxu0 %v6614_v59  ;;  %4190 = vmatprep.subr.bf16.mxu1 %v6616_v52 }
 0xc56   :  { %4150 = vmatpush1.bf16.msra.mxu0 %v6620_v31  ;;  %4191 = vmatpush1.bf16.msra.mxu1 %v6622_v16 }
 0xc57   :  { %4151 = vmatprep.subr.bf16.mxu0 %v6626_v63  ;;  %4192 = vmatprep.subr.bf16.mxu1 %v6628_v24 }
 0xc5a   :  { %4152 = vmatpush1.bf16.msra.mxu0 %v6634_v38  ;;  %4193 = vmatpush1.bf16.msra.mxu1 %v6636_v40  ;;  %v7708_v38 = vsel %vm5944_vm5, %v7701_v2, %v7700_v14  ;;  %v7214_v14 = vld [vmem:[#allocation8 + $0xe0] ss:$16 sps:$4 sm:$0xff]   ;;  %v7217_v2 = vld [vmem:[#allocation8 + $0xe8] ss:$16 sps:$4 sm:$0xff]  }
 0xc5b   :  { %4153 = vmatprep.subr.bf16.mxu0 %v6640_v44  ;;  %4194 = vmatprep.subr.bf16.mxu1 %v6642_v47  ;;  %v7709_v44 = vsel %vm5940_vm4, %v7704_v27, %v7703_v26  ;;  %v7223_v26 = vld [vmem:[#allocation8 + $0xcc] ss:$16 sps:$4 sm:$0xff]  }
 0xc5e   :  { %4154 = vmatpush1.bf16.msra.mxu0 %v6646_v29  ;;  %4195 = vmatpush1.bf16.msra.mxu1 %v6648_v51 }
 0xc5f   :  { %4155 = vmatprep.subr.bf16.mxu0 %v6652_v21  ;;  %4196 = vmatprep.subr.bf16.mxu1 %v6654_v43 }
 0xc62   :  { %4156 = vmatpush1.bf16.msra.mxu0 %v6660_v39  ;;  %4197 = vmatpush1.bf16.msra.mxu1 %v6662_v25 }
 0xc63   :  { %4157 = vmatprep.subr.bf16.mxu0 %v6666_v9  ;;  %4198 = vmatprep.subr.bf16.mxu1 %v6668_v10 }
 0xc66   :  { %4158 = vmatpush1.bf16.msra.mxu0 %v7676_v23  ;;  %4199 = vmatpush1.bf16.msra.mxu1 %v7677_v5 }
 0xc67   :  { %4258 = vmatprep.subr.bf16.mxu0 %v7184_v32  ;;  %4299 = vmatprep.subr.bf16.mxu1 %v7187_v33 }
 0xd09   :  { %v4062_v35 = vpop.f32.mrf.mxu0  ;;  %v4103_v7 = vpop.f32.mrf.mxu1 }
 0xd0a   :  { %v4110_v37 = vadd.f32 %v4062_v35, %v7706_v36  ;;  %v4112_v47 = vadd.f32 %v4103_v7, %v7709_v44  ;;  %v7273_v35 = vld [vmem:[#allocation8 + $0x4c] ss:$16 sps:$4 sm:$0xff]   ;;  %v7276_v7 = vld [vmem:[#allocation8 + $0x40] ss:$16 sps:$4 sm:$0xff]   ;;  %v7279_v36 = vld [vmem:[#allocation8 + $0x48] ss:$16 sps:$4 sm:$0xff]  }
 0xd0b   :  { %v4064_v41 = vpop.f32.mrf.mxu0  ;;  %v4105_v42 = vpop.f32.mrf.mxu1 }
 0xd0c   :  { %v4952_v18 = vmul.f32 -1.442695, %v4110_v37  ;;  %v4111_v59 = vadd.f32 %v4064_v41, %v7707_v19  ;;  %v4113_v40 = vadd.f32 %v4105_v42, %v7708_v38  ;;  %v7282_v37 = vld [vmem:[#allocation8 + $0x24] ss:$16 sps:$4 sm:$0xff]   ;;  %v7285_v41 = vld [vmem:[#allocation8 + $0x2c] ss:$16 sps:$4 sm:$0xff]  }
 0xd0d   :  { %v4066_v52 = vpop.f32.mrf.mxu0  ;;  %v4107_v31 = vpop.f32.mrf.mxu1  ;;  %v7288_v42 = vld [vmem:[#allocation8 + $0x20] ss:$16 sps:$4 sm:$0xff]   ;;  %v7294_v19 = vld [vmem:[#allocation8 + $0x4] ss:$16 sps:$4 sm:$0xff]  }
 0xd0e   :  { %5414 = vpow2.f32 %v4952_v18  ;;  %v4953_v16 = vmul.f32 -1.442695, %v4111_v59  ;;  %v4954_v29 = vmul.f32 -1.442695, %v4113_v40  ;;  %v7291_v18 = vld [vmem:[#allocation8 + $0x28] ss:$16 sps:$4 sm:$0xff]  }
 0xd0f   :  { %v4067_v63 = vpop.f32.mrf.mxu0  ;;  %v4108_v24 = vpop.f32.mrf.mxu1  ;;  %v7297_v59 = vld [vmem:[#allocation8 + $0xc] ss:$16 sps:$4 sm:$0xff]   ;;  %v7300_v52 = vld [vmem:[#allocation8] ss:$16 sps:$4 sm:$0xff]   ;;  %v7303_v31 = vld [vmem:[#allocation8 + $0x8] ss:$16 sps:$4 sm:$0xff]  }
 0xd10   :  { %5416 = vpow2.f32 %v4953_v16  ;;  %v7710_v24 = vsel %vm5926_vm2, %v6812_v56, %v6760_v55  ;;  %v7713_v56 = vld [vmem:[#allocation19_spill] sm:$0xff]  ;;  %v7714_v55 = vld [vmem:[#allocation33_spill] sm:$0xff] }
 0xd11   :  { %5418 = vtanh.f32 %v4112_v47 }
 0xd12   :  { %5420 = vpow2.f32 %v4954_v29  ;;  %v7711_v29 = vld [vmem:[#allocation20_spill] sm:$0xff] }
 0xd1b   :  { %v5415_v51 = vpop.eup %5414 }
 0xd1c   :  { %v4117_v21 = vadd.f32 1.0, %v5415_v51  ;;  %v7712_v51 = vsel %vm5936_vm3, %v7686_v6, %v7711_v29 }
 0xd1d   :  { %v5417_v43 = vpop.eup %5416 }
 0xd1e   :  { %5422 = vrcp.f32 %v4117_v21  ;;  %v4123_v39 = vadd.f32 1.0, %v5417_v43  ;;  %v5419_v25 = vpop.eup %5418 }
 0xd1f   :  { %v5421_v9 = vpop.eup %5420 }
 0xd20   :  { %5424 = vrcp.f32 %v4123_v39  ;;  %v4130_v5 = vadd.f32 1.0, %v5421_v9  ;;  %v7715_v9 = vsel %vm5944_vm5, %v7713_v56, %v7714_v55 }
 0xd22   :  { %5426 = vrcp.f32 %v4130_v5 }
 0xd2b   :  { %v5423_v10 = vpop.eup %5422 }
 0xd2c   :  { %v4134_v30 = vmul.f32 %v5423_v10, %v5419_v25 }
 0xd2d   :  { %v5425_v23 = vpop.eup %5424 }
 0xd2e   :  { %v4133_v46 = vmul.f32 %v5425_v23, %v7149_v0  ;;  %v7220_v0 = vld [vmem:[#allocation8 + $0xc4] ss:$16 sps:$4 sm:$0xff]   ;;  %v7717_v23 = vld [vmem:[#allocation29_spill] sm:$0xff] }
 0xd2f   :  { %v5427_v27 = vpop.eup %5426 }
 0xd30   :  { %v7211_v45 = vadd.f32 %v4134_v30, %v4133_v46  ;;  %v7716_v30 = vld [vmem:[#allocation18_spill] sm:$0xff] }
 0xd31   :  { %v7718_v5 = vsel %vm5940_vm4, %v7716_v30, %v7717_v23 }
 0xd32   :  { %5428 = vtanh.f32 %v7211_v45 }
 0xd3f   :  { %v5429_v17 = vpop.eup %5428 }
 0xd40   :  { %v4137_v11 = vmul.f32 %v5429_v17, %v5427_v27 }
 0xd42   :  { %v4142_v12 = vpack.c.bf16 %v4137_v11, %v4137_v11 }
 0xd44   :  { %4176 = vmatmul.mubr.bf16.vlgmr.msra.gmra.mxu0 %v4142_v12  ;;  %4217 = vmatmul.mubr.bf16.vlgmr.msra.gmra.mxu1 %v4142_v12 }
 0xd45   :  { %4259 = vmatpush1.bf16.msra.mxu0 %v7214_v14  ;;  %4300 = vmatpush1.bf16.msra.mxu1 %v7217_v2 }
 0xd46   :  { %4260 = vmatprep.subr.bf16.mxu0 %v7220_v0  ;;  %4301 = vmatprep.subr.bf16.mxu1 %v7223_v26 }
 0xd47   :  { %4290 = vmatprep.mubr.bf16.mxu0 %v7570_v8  ;;  %4331 = vmatprep.mubr.bf16.mxu1 %v7570_v8 }
 0xd49   :  { %4261 = vmatpush1.bf16.msra.mxu0 %v7228_v4  ;;  %4302 = vmatpush1.bf16.msra.mxu1 %v7231_v1 }
 0xd4a   :  { %4262 = vmatprep.subr.bf16.mxu0 %v7234_v48  ;;  %4303 = vmatprep.subr.bf16.mxu1 %v7237_v54 }
 0xd4d   :  { %4263 = vmatpush1.bf16.msra.mxu0 %v7240_v61  ;;  %4304 = vmatpush1.bf16.msra.mxu1 %v7243_v34 }
 0xd4e   :  { %4264 = vmatprep.subr.bf16.mxu0 %v7246_v57  ;;  %4305 = vmatprep.subr.bf16.mxu1 %v7249_v62 }
 0xd51   :  { %4265 = vmatpush1.bf16.msra.mxu0 %v7252_v28  ;;  %4306 = vmatpush1.bf16.msra.mxu1 %v7255_v13 }
 0xd52   :  { %4266 = vmatprep.subr.bf16.mxu0 %v7258_v53  ;;  %4307 = vmatprep.subr.bf16.mxu1 %v7261_v60 }
 0xd55   :  { %4267 = vmatpush1.bf16.msra.mxu0 %v7264_v20  ;;  %4308 = vmatpush1.bf16.msra.mxu1 %v7267_v58 }
 0xd56   :  { %4268 = vmatprep.subr.bf16.mxu0 %v7270_v22  ;;  %4309 = vmatprep.subr.bf16.mxu1 %v7273_v35 }
 0xd59   :  { %4269 = vmatpush1.bf16.msra.mxu0 %v7276_v7  ;;  %4310 = vmatpush1.bf16.msra.mxu1 %v7279_v36 }
 0xd5a   :  { %4270 = vmatprep.subr.bf16.mxu0 %v7282_v37  ;;  %4311 = vmatprep.subr.bf16.mxu1 %v7285_v41 }
 0xd5d   :  { %4271 = vmatpush1.bf16.msra.mxu0 %v7288_v42  ;;  %4312 = vmatpush1.bf16.msra.mxu1 %v7291_v18 }
 0xd5e   :  { %4272 = vmatprep.subr.bf16.mxu0 %v7294_v19  ;;  %4313 = vmatprep.subr.bf16.mxu1 %v7297_v59 }
 0xd61   :  { %4273 = vmatpush1.bf16.msra.mxu0 %v7300_v52  ;;  %4314 = vmatpush1.bf16.msra.mxu1 %v7303_v31 }
 0xd62   :  { %4373 = vmatprep.subr.bf16.mxu0 %v7184_v32  ;;  %4414 = vmatprep.subr.bf16.mxu1 %v7187_v33 }
 0xe04   :  { %v4177_v16 = vpop.f32.mrf.mxu0  ;;  %v4218_v63 = vpop.f32.mrf.mxu1 }
 0xe05   :  { %v4225_v38 = vadd.f32 %v4177_v16, %v7710_v24  ;;  %v4227_v6 = vadd.f32 %v4218_v63, %v7718_v5 }
 0xe06   :  { %v4179_v40 = vpop.f32.mrf.mxu0  ;;  %v4220_v44 = vpop.f32.mrf.mxu1 }
 0xe07   :  { %v4955_v47 = vmul.f32 -1.442695, %v4225_v38  ;;  %v4226_v21 = vadd.f32 %v4179_v40, %v7712_v51  ;;  %v4228_v10 = vadd.f32 %v4220_v44, %v7715_v9 }
 0xe08   :  { %v4181_v32 = vpop.f32.mrf.mxu0  ;;  %v4222_v43 = vpop.f32.mrf.mxu1 }
 0xe09   :  { %5430 = vpow2.f32 %v4955_v47  ;;  %v4956_v33 = vmul.f32 -1.442695, %v4226_v21  ;;  %v4957_v46 = vmul.f32 -1.442695, %v4228_v10 }
 0xe0a   :  { %v4182_v39 = vpop.f32.mrf.mxu0  ;;  %v4223_v25 = vpop.f32.mrf.mxu1 }
 0xe0b   :  { %5432 = vpow2.f32 %v4956_v33 }
 0xe0c   :  { %5434 = vtanh.f32 %v4227_v6 }
 0xe0d   :  { %5436 = vpow2.f32 %v4957_v46  ;;  %v5218_v46 = vld [vmem:[#allocation9 + $0x18] sm:$0xff]  }
 0xe16   :  { %v5431_v27 = vpop.eup %5430 }
 0xe17   :  { %v4232_v17 = vadd.f32 1.0, %v5431_v27  ;;  %v5605_v27 = vmov 0.0  }
 0xe18   :  { %v5433_v11 = vpop.eup %5432 }
 0xe19   :  { %5438 = vrcp.f32 %v4232_v17  ;;  %v4238_v12 = vadd.f32 1.0, %v5433_v11  ;;  %v5435_v16 = vpop.eup %5434  ;;  %v5219_v17 = vld [vmem:[#allocation9 + $0x10] sm:$0xff]   ;;  %v5220_v11 = vld [vmem:[#allocation9 + $0x8] sm:$0xff]  }
 0xe1a   :  { %v5437_v24 = vpop.eup %5436 }
 0xe1b   :  { %5440 = vrcp.f32 %v4238_v12  ;;  %v4245_v47 = vadd.f32 1.0, %v5437_v24  ;;  %v5221_v12 = vld [vmem:[#allocation9] sm:$0xff]  }
 0xe1d   :  { %5442 = vrcp.f32 %v4245_v47 }
 0xe26   :  { %v5439_v38 = vpop.eup %5438 }
 0xe27   :  { %v4249_v40 = vmul.f32 %v5439_v38, %v5435_v16  ;;  %v7731_v38 = vld [vmem:[#allocation43_spill] sm:$0xff] }
 0xe28   :  { %v5441_v44 = vpop.eup %5440 }
 0xe29   :  { %v4248_v29 = vmul.f32 %v5441_v44, %v7211_v45 }
 0xe2a   :  { %v5443_v63 = vpop.eup %5442 }
 0xe2b   :  { %v7329_v51 = vadd.f32 %v4249_v40, %v4248_v29  ;;  %v7732_v40 = vld [vmem:[#allocation44_spill] sm:$0xff] }
 0xe2c   :  { %v7733_v44 = vsel %vm5926_vm2, %v7731_v38, %v7732_v40 }
 0xe2d   :  { %5444 = vtanh.f32 %v7329_v51 }
 0xe3a   :  { %v5445_v21 = vpop.eup %5444 }
 0xe3b   :  { %v4252_v32 = vmul.f32 %v5445_v21, %v5443_v63  ;;  %v7734_v21 = vld [vmem:[#allocation42_spill] sm:$0xff] }
 0xe3d   :  { %v4257_v43 = vpack.c.bf16 %v4252_v32, %v4252_v32  ;;  %v7735_v32 = vld [vmem:[#allocation41_spill] sm:$0xff] }
 0xe3f   :  { %4291 = vmatmul.mubr.bf16.vlgmr.msra.gmra.mxu0 %v4257_v43  ;;  %4332 = vmatmul.mubr.bf16.vlgmr.msra.gmra.mxu1 %v4257_v43  ;;  %v7736_v43 = vsel %vm5936_vm3, %v7734_v21, %v7735_v32 }
 0xe40   :  { %4374 = vmatpush1.bf16.msra.mxu0 %v7214_v14  ;;  %4415 = vmatpush1.bf16.msra.mxu1 %v7217_v2  ;;  %v7719_v14 = vld [vmem:[#allocation36_spill] sm:$0xff]  ;;  %v7720_v2 = vld [vmem:[#allocation30_spill] sm:$0xff] }
 0xe41   :  { %4375 = vmatprep.subr.bf16.mxu0 %v7220_v0  ;;  %4416 = vmatprep.subr.bf16.mxu1 %v7223_v26  ;;  %v7721_v0 = vsel %vm5926_vm2, %v7719_v14, %v7720_v2 }
 0xe42   :  { %4405 = vmatprep.mubr.bf16.mxu0 %v7570_v8  ;;  %4446 = vmatprep.mubr.bf16.mxu1 %v7570_v8 }
 0xe44   :  { %4376 = vmatpush1.bf16.msra.mxu0 %v7228_v4  ;;  %4417 = vmatpush1.bf16.msra.mxu1 %v7231_v1 }
 0xe45   :  { %4377 = vmatprep.subr.bf16.mxu0 %v7234_v48  ;;  %4418 = vmatprep.subr.bf16.mxu1 %v7237_v54  ;;  %v7722_v54 = vld [vmem:[#allocation40_spill] sm:$0xff] }
 0xe48   :  { %4378 = vmatpush1.bf16.msra.mxu0 %v7240_v61  ;;  %4419 = vmatpush1.bf16.msra.mxu1 %v7243_v34  ;;  %v7723_v61 = vld [vmem:[#allocation31_spill] sm:$0xff] }
 0xe49   :  { %4379 = vmatprep.subr.bf16.mxu0 %v7246_v57  ;;  %4420 = vmatprep.subr.bf16.mxu1 %v7249_v62  ;;  %v7724_v34 = vsel %vm5936_vm3, %v7722_v54, %v7723_v61  ;;  %v7741_v54 = vld [vmem:[#allocation46_spill] sm:$0xff] }
 0xe4a   :  { %v7742_v61 = vsel %vm5940_vm4, %v7740_v15, %v7741_v54 }
 0xe4c   :  { %4380 = vmatpush1.bf16.msra.mxu0 %v7252_v28  ;;  %4421 = vmatpush1.bf16.msra.mxu1 %v7255_v13 }
 0xe4d   :  { %4381 = vmatprep.subr.bf16.mxu0 %v7258_v53  ;;  %4422 = vmatprep.subr.bf16.mxu1 %v7261_v60 }
 0xe50   :  { %4382 = vmatpush1.bf16.msra.mxu0 %v7264_v20  ;;  %4423 = vmatpush1.bf16.msra.mxu1 %v7267_v58  ;;  %v7725_v20 = vld [vmem:[#allocation39_spill] sm:$0xff]  ;;  %v7726_v58 = vld [vmem:[#allocation25_spill] sm:$0xff] }
 0xe51   :  { %4383 = vmatprep.subr.bf16.mxu0 %v7270_v22  ;;  %4424 = vmatprep.subr.bf16.mxu1 %v7273_v35  ;;  %v7727_v22 = vsel %vm5944_vm5, %v7725_v20, %v7726_v58 }
 0xe54   :  { %4384 = vmatpush1.bf16.msra.mxu0 %v7276_v7  ;;  %4425 = vmatpush1.bf16.msra.mxu1 %v7279_v36  ;;  %v7728_v7 = vld [vmem:[#allocation17_spill] sm:$0xff]  ;;  %v7729_v36 = vld [vmem:[#allocation27_spill] sm:$0xff] }
 0xe55   :  { %4385 = vmatprep.subr.bf16.mxu0 %v7282_v37  ;;  %4426 = vmatprep.subr.bf16.mxu1 %v7285_v41  ;;  %v7730_v37 = vsel %vm5940_vm4, %v7728_v7, %v7729_v36 }
 0xe58   :  { %4386 = vmatpush1.bf16.msra.mxu0 %v7288_v42  ;;  %4427 = vmatpush1.bf16.msra.mxu1 %v7291_v18 }
 0xe59   :  { %4387 = vmatprep.subr.bf16.mxu0 %v7294_v19  ;;  %4428 = vmatprep.subr.bf16.mxu1 %v7297_v59 }
 0xe5c   :  { %4388 = vmatpush1.bf16.msra.mxu0 %v7300_v52  ;;  %4429 = vmatpush1.bf16.msra.mxu1 %v7303_v31 }
 0xe5d   :  { %4975 = vmatprep.subr.bf16.mxu0 %v5605_v27 }
 0xeff   :  { %v4292_v8 = vpop.f32.mrf.mxu0  ;;  %v4333_v45 = vpop.f32.mrf.mxu1 }
 0xf00   :  { %v4340_v26 = vadd.f32 %v4292_v8, %v7721_v0  ;;  %v4342_v41 = vadd.f32 %v4333_v45, %v7730_v37 }
 0xf01   :  { %v4294_v4 = vpop.f32.mrf.mxu0  ;;  %v4335_v1 = vpop.f32.mrf.mxu1 }
 0xf02   :  { %v4958_v48 = vmul.f32 -1.442695, %v4340_v26  ;;  %v4341_v57 = vadd.f32 %v4294_v4, %v7724_v34  ;;  %v4343_v35 = vadd.f32 %v4335_v1, %v7727_v22  ;;  %v7738_v4 = vld [vmem:[#allocation47_spill] sm:$0xff] }
 0xf03   :  { %v4296_v62 = vpop.f32.mrf.mxu0  ;;  %v4337_v28 = vpop.f32.mrf.mxu1  ;;  %v7739_v1 = vsel %vm5944_vm5, %v7737_v3, %v7738_v4 }
 0xf04   :  { %5446 = vpow2.f32 %v4958_v48  ;;  %v4959_v13 = vmul.f32 -1.442695, %v4341_v57  ;;  %v4960_v42 = vmul.f32 -1.442695, %v4343_v35 }
 0xf05   :  { %v4297_v53 = vpop.f32.mrf.mxu0  ;;  %v4338_v60 = vpop.f32.mrf.mxu1 }
 0xf06   :  { %5448 = vpow2.f32 %v4959_v13 }
 0xf07   :  { %5450 = vtanh.f32 %v4342_v41 }
 0xf08   :  { %5452 = vpow2.f32 %v4960_v42 }
 0xf11   :  { %v5447_v18 = vpop.eup %5446 }
 0xf12   :  { %v4347_v19 = vadd.f32 1.0, %v5447_v18  ;;  %v4964_v18 = vld [vmem:[%s7420_s8] ss:$0 sm:$0xff] }
 0xf13   :  { %v5449_v59 = vpop.eup %5448 }
 0xf14   :  { %5454 = vrcp.f32 %v4347_v19  ;;  %v4353_v52 = vadd.f32 1.0, %v5449_v59  ;;  %v5451_v31 = vpop.eup %5450 }
 0xf15   :  { %v5453_v33 = vpop.eup %5452 }
 0xf16   :  { %5456 = vrcp.f32 %v4353_v52  ;;  %v4360_v55 = vadd.f32 1.0, %v5453_v33 }
 0xf18   :  { %5458 = vrcp.f32 %v4360_v55 }
 0xf21   :  { %v5455_v39 = vpop.eup %5454 }
 0xf22   :  { %v4364_v25 = vmul.f32 %v5455_v39, %v5451_v31 }
 0xf23   :  { %v5457_v56 = vpop.eup %5456 }
 0xf24   :  { %v4363_v9 = vmul.f32 %v5457_v56, %v7329_v51 }
 0xf25   :  { %v5459_v30 = vpop.eup %5458 }
 0xf26   :  { %v4365_v10 = vadd.f32 %v4364_v25, %v4363_v9 }
 0xf28   :  { %5460 = vtanh.f32 %v4365_v10 }
 0xf35   :  { %v5461_v23 = vpop.eup %5460 }
 0xf36   :  { %v4367_v5 = vmul.f32 %v5461_v23, %v5459_v30 }
 0xf38   :  { %v4372_v6 = vpack.c.bf16 %v4367_v5, %v4367_v5 }
 0xf3a   :  { %4406 = vmatmul.mubr.bf16.vlgmr.msra.gmra.mxu0 %v4372_v6  ;;  %4447 = vmatmul.mubr.bf16.vlgmr.msra.gmra.mxu1 %v4372_v6 }
 0xf3b   :  { %4983 = vmatprep.mubr.msk.bf16.mxu0 %vm5606_vm8, %v5605_v27  ;;  %4976 = vmatpush3.bf16.msra.mxu0 %v5218_v46 }
 0xf3c   :  { %4977 = vmatprep.subr.bf16.mxu0 %v5605_v27 }
 0xf3f   :  { %4978 = vmatpush3.bf16.msra.mxu0 %v5219_v17 }
 0xf40   :  { %4979 = vmatprep.subr.bf16.mxu0 %v5605_v27 }
 0xf43   :  { %4980 = vmatpush3.bf16.msra.mxu0 %v5220_v11 }
 0xf44   :  { %4981 = vmatprep.subr.bf16.mxu0 %v5605_v27 }
 0xf47   :  { %4982 = vmatpush3.bf16.msra.mxu0 %v5221_v12 }
 0xffa   :  { %v4407_v16 = vpop.f32.mrf.mxu0  ;;  %v4448_v24 = vpop.f32.mrf.mxu1 }
 0xffb   :  { %v4455_v47 = vadd.f32 %v4407_v16, %v7733_v44  ;;  %v4457_v34 = vadd.f32 %v4448_v24, %v7742_v61 }
 0xffc   :  { %v4409_v29 = vpop.f32.mrf.mxu0  ;;  %v4450_v51 = vpop.f32.mrf.mxu1 }
 0xffd   :  { %v4961_v63 = vmul.f32 -1.442695, %v4455_v47  ;;  %v4456_v8 = vadd.f32 %v4409_v29, %v7736_v43  ;;  %v4458_v48 = vadd.f32 %v4450_v51, %v7739_v1 }
 0xffe   :  { %v4411_v45 = vpop.f32.mrf.mxu0  ;;  %v4452_v14 = vpop.f32.mrf.mxu1 }
 0xfff   :  { %5462 = vpow2.f32 %v4961_v63  ;;  %v4962_v2 = vmul.f32 -1.442695, %v4456_v8  ;;  %v4963_v57 = vmul.f32 -1.442695, %v4458_v48 }
0x1000   :  { %v4412_v0 = vpop.f32.mrf.mxu0  ;;  %v4453_v26 = vpop.f32.mrf.mxu1 }
0x1001   :  { %5464 = vpow2.f32 %v4962_v2 }
0x1002   :  { %5466 = vtanh.f32 %v4457_v34 }
0x1003   :  { %5468 = vpow2.f32 %v4963_v57 }
0x100c   :  { %v5463_v62 = vpop.eup %5462 }
0x100d   :  { %v4462_v28 = vadd.f32 1.0, %v5463_v62 }
0x100e   :  { %v5465_v13 = vpop.eup %5464 }
0x100f   :  { %5470 = vrcp.f32 %v4462_v28  ;;  %v4468_v53 = vadd.f32 1.0, %v5465_v13  ;;  %v5467_v50 = vpop.eup %5466 }
0x1010   :  { %v5469_v60 = vpop.eup %5468 }
0x1011   :  { %5472 = vrcp.f32 %v4468_v53  ;;  %v4475_v35 = vadd.f32 1.0, %v5469_v60 }
0x1013   :  { %5474 = vrcp.f32 %v4475_v35 }
0x101c   :  { %v5471_v20 = vpop.eup %5470 }
0x101d   :  { %v4479_v58 = vmul.f32 %v5471_v20, %v5467_v50 }
0x101e   :  { %v5473_v22 = vpop.eup %5472 }
0x101f   :  { %v4478_v49 = vmul.f32 %v5473_v22, %v4365_v10 }
0x1020   :  { %v5475_v36 = vpop.eup %5474 }
0x1021   :  { %v4480_v7 = vadd.f32 %v4479_v58, %v4478_v49 }
0x1023   :  { %5476 = vtanh.f32 %v4480_v7 }
0x1030   :  { %v5477_v37 = vpop.eup %5476 }
0x1031   :  { %v4482_v41 = vmul.f32 %v5477_v37, %v5475_v36 }
0x1033   :  { %v4483_v42 = vpack.c.bf16 %v4482_v41, %v4482_v41 }
0x1035   :  { %4984 = vmatmul.mubr.msk.bf16.vlgmr.msra.gmra.mxu0 %vm713_vm6, %v4483_v42 }
0x10f5   :  { %v4560_v19 = vpop.f32.mrf.mxu0 }
0x10f6   :  { %v4561_v59 = vadd.f32 %v4964_v18, %v4560_v19 }
0x10f7   :  { %v4985_v52 = vpop.f32.mrf.mxu0 }
0x10f8   :  { %4566 = vst [vmem:[%s7421_s9] sm:$0xff] %v4561_v59 }
0x10f9   :  { %v4563_v31 = vpop.f32.mrf.mxu0 }
0x10fb   :  { %v4986_v33 = vpop.f32.mrf.mxu0 }
0x10fc   :  { %4571 = vsyncpa [#allocation5], 1 }
0x10fd   :  { %4572 = vsyncpa [#allocation7], 1 }
0x10fe   :  { %4573 = vsyncpa [#allocation10], 1 }

</bundles_post_ra>
